<compile_context>
chip_gen: v6e
topology: v6e:2x2x1
jax: 0.10.0
libtpu: 0.0.40
codegen_flags: <defaults>
</compile_context>

<pallas_src>
import functools

import numpy as np
import jax
import jax.numpy as jnp
from jax.experimental import pallas as pl
from jax.experimental.pallas import tpu as pltpu


# ---- config (mirrors the retrieve(...) keys of SupervisedTransformer) --------
CFG = dict(
    n_split=2,                 # Transformer/n_split
    in_channels=24,            # Transformer/in_channels (not a power of 2 on purpose)
    n_flow_sub=2,              # Transformer/n_flow_sub
    hidden_depth=1,            # Transformer/hidden_depth (submodule depth)
    hidden_dim_multiplier=2,   # Transformer/hidden_dim_multiplier
    embedding_dim=32,          # Transformer/embedding_dim
    num_classes=10,            # Transformer/num_classes
    conditioning_option="none",
)

ALPHA = 0.9        # InvLeakyReLU slope (forward logdet contribution is 0, as in reference)
NEG_SLOPE = 0.01   # nn.LeakyReLU default inside BasicFullyConnectedNet

_SUBFLOW_PARAM_ORDER = (
    "loc_scale", "perm", "w_in_x", "w_in_e", "b_in",
    "w_hid", "b_hid", "w_out", "b_out",
)
_N_PARAMS_PER_SUBFLOW = len(_SUBFLOW_PARAM_ORDER)


# =============================== fused Pallas kernel ==========================

def _fused_flow_kernel(labels_ref, x_ref, wemb_ref, *refs,
                       dims, all_dims, alpha, neg_slope):
    """Entire SupervisedTransformer forward for one batch tile.

    refs = [9 packed param refs per subflow ...] + [z_ref, logdet_ref]
    """
    n_sub = len(dims)
    param_refs = refs[: n_sub * _N_PARAMS_PER_SUBFLOW]
    z_ref = refs[n_sub * _N_PARAMS_PER_SUBFLOW]
    logdet_ref = refs[n_sub * _N_PARAMS_PER_SUBFLOW + 1]

    B = x_ref.shape[0]
    n_classes = wemb_ref.shape[0]

    def lrelu(v):
        return jnp.where(v >= 0, v, neg_slope * v)

    def mm(a, w):
        return jnp.dot(a, w, preferred_element_type=jnp.float32)

    # ---- class embedding: one_hot(labels) @ W_emb^T (in-kernel, no extra launch)
    iota = jax.lax.broadcasted_iota(jnp.int32, (B, n_classes), 1)
    one_hot = (iota == labels_ref[...]).astype(jnp.float32)           # (B, nc)
    emb = mm(one_hot, wemb_ref[...])                                  # (B, E)

    logdet = jnp.zeros((B, 1), jnp.float32)
    x = x_ref[...]
    z_parts = []

    for si, C in enumerate(dims):
        (loc_scale_r, perm_r, w_in_x_r, w_in_e_r, b_in_r,
         w_hid_r, b_hid_r, w_out_r, b_out_r) = param_refs[
             si * _N_PARAMS_PER_SUBFLOW:(si + 1) * _N_PARAMS_PER_SUBFLOW]
        half = C // 2
        n_blocks = loc_scale_r.shape[0]
        depth = w_hid_r.shape[1]

        for blk in range(n_blocks):
            # --- ActNorm: h = scale * (x + loc); logdet += sum(log|scale|) (H=W=1)
            loc = loc_scale_r[blk, 0]                                  # (1, C)
            scale = loc_scale_r[blk, 1]                                # (1, C)
            h = scale * (x + loc)
            logdet = logdet + jnp.sum(jnp.log(jnp.abs(scale)), axis=1, keepdims=True)
            # --- InvLeakyReLU forward (logdet contribution is 0 in the reference)
            h = h * jnp.where(h >= 0, 1.0, alpha)

            # --- ConditionalDoubleVectorCouplingBlock (2 half-steps); halves kept
            #     as separate values so the i%2 swap is a free variable swap.
            a = h[:, :half]
            b = h[:, half:]
            for i in range(2):
                if i % 2 != 0:
                    a, b = b, a
                idx = 2 * blk + i
                # Packed s/t conditioner: one fused matmul chain; the s|t split is
                # carried by the block structure of the packed weights.
                hh = lrelu(mm(a, w_in_x_r[idx]) + mm(emb, w_in_e_r[idx]) + b_in_r[idx])
                for d in range(depth):                                  # static depth
                    hh = lrelu(mm(hh, w_hid_r[idx, d]) + b_hid_r[idx, d])
                s = jnp.tanh(mm(hh, w_out_r[idx, 0]) + b_out_r[idx, 0])  # (B, half)
                t = mm(hh, w_out_r[idx, 1]) + b_out_r[idx, 1]            # (B, half)
                b = b * jnp.exp(s) + t
                logdet = logdet + jnp.sum(s, axis=1, keepdims=True)

            # --- Shuffle: [a|b] @ P, with the permutation folded into constant
            #     one-hot matrices split by input halves (no runtime gather).
            x = mm(a, perm_r[blk, 0]) + mm(b, perm_r[blk, 1])          # (B, C)

        # --- early split (ConditionalFlatSplitFlow.f)
        dim_out = C - all_dims[si + 1]
        if dim_out > 0:
            z_parts.append(x[:, :dim_out])
            x = x[:, dim_out:]

    z_parts.append(x)
    z_ref[...] = jnp.concatenate(z_parts, axis=1)
    logdet_ref[...] = logdet


# =================================== wrapper ==================================

def _round_up(n, m):
    return ((n + m - 1) // m) * m


def _const_spec(shape):
    rank = len(shape)
    return pl.BlockSpec(tuple(shape), lambda i, _r=rank: (0,) * _r)


def supervised_transformer_forward(x, labels, params):
    """SupervisedTransformer.forward (embed + ConditionalFlatSplitFlow.f), fused."""
    B, C0 = x.shape
    dims = params["dims"]
    all_dims = params["all_dims"]
    assert C0 == dims[0]

    # Pad batch to a sublane multiple (>=8 rows) and tile it over a parallel grid.
    TB = min(128, _round_up(max(B, 1), 8))
    B_pad = _round_up(B, TB)
    if B_pad != B:
        x = jnp.pad(x, ((0, B_pad - B), (0, 0)))
        labels = jnp.pad(labels, ((0, B_pad - B),))
    labels2d = labels.astype(jnp.int32).reshape(B_pad, 1)

    flat_params, flat_specs = [], []
    for sf in params["subflows"]:
        for name in _SUBFLOW_PARAM_ORDER:
            arr = sf[name]
            flat_params.append(arr)
            flat_specs.append(_const_spec(arr.shape))   # constant -> stays VMEM-resident
    wemb_t = params["embedder_w_t"]

    kernel = functools.partial(
        _fused_flow_kernel,
        dims=tuple(dims), all_dims=tuple(all_dims),
        alpha=ALPHA, neg_slope=NEG_SLOPE)

    def batch_spec(bs):
        return pl.BlockSpec(bs, lambda i: (i, 0))

    z, ld = pl.pallas_call(
        kernel,
        out_shape=(jax.ShapeDtypeStruct((B_pad, C0), jnp.float32),
                   jax.ShapeDtypeStruct((B_pad, 1), jnp.float32)),
        grid=(B_pad // TB,),
        in_specs=[batch_spec((TB, 1)),            # labels
                  batch_spec((TB, C0)),           # x
                  _const_spec(wemb_t.shape)]      # class-embedding weight
                 + flat_specs,                    # packed flow params
        out_specs=(batch_spec((TB, C0)),          # z
                   batch_spec((TB, 1))),          # per-sample logdet
        compiler_params=pltpu.CompilerParams(
            dimension_semantics=("parallel",)),
    )(labels2d, x, wemb_t, *flat_params)

    return z[:B], ld[:B, 0]


# =========================== parameter construction ===========================

def _init_linear(key, fan_in, fan_out):
    kw, kb = jax.random.split(key)
    bound = 1.0 / float(np.sqrt(fan_in))
    w = jax.random.uniform(kw, (fan_in, fan_out), jnp.float32, -bound, bound)
    b = jax.random.uniform(kb, (1, fan_out), jnp.float32, -bound, bound)
    return w, b


def _init_mlp(key, din, hidden, dout, depth):
    ks = jax.random.split(key, depth + 2)
    w_in, b_in = _init_linear(ks[0], din, hidden)
    w_hid, b_hid = [], []
    for d in range(depth):
        w, b = _init_linear(ks[1 + d], hidden, hidden)
        w_hid.append(w)
        b_hid.append(b)
    w_out, b_out = _init_linear(ks[-1], hidden, dout)
    return dict(w_in=w_in, b_in=b_in, w_hid=w_hid, b_hid=b_hid,
                w_out=w_out, b_out=b_out)


def _init_block(key, C, E, hidden, depth):
    k = jax.random.split(key, 7)
    half = C // 2
    din = half + E
    halfsteps = []
    for i in range(2):
        s = _init_mlp(k[2 * i], din, hidden, half, depth)
        t = _init_mlp(k[2 * i + 1], din, hidden, half, depth)
        halfsteps.append(dict(s=s, t=t))
    loc = 0.1 * jax.random.normal(k[4], (1, C), jnp.float32)
    scale = 1.0 + 0.1 * jax.random.normal(k[5], (1, C), jnp.float32)
    perm = jax.random.permutation(k[6], C)                  # Shuffle buffer
    return dict(loc=loc, scale=scale, perm=perm, halfsteps=halfsteps)


def _block_diag(a, b):
    m, n = a.shape
    p, q = b.shape
    top = jnp.concatenate([a, jnp.zeros((m, q), a.dtype)], axis=1)
    bot = jnp.concatenate([jnp.zeros((p, n), b.dtype), b], axis=1)
    return jnp.concatenate([top, bot], axis=0)


def _pack_subflow(blocks, C, hidden, depth):
    """Pack s/t MLPs into one matmul chain and fold the Shuffle into matrices."""
    half = C // 2
    loc_scale, perm = [], []
    w_in_x, w_in_e, b_in = [], [], []
    w_hid, b_hid, w_out, b_out = [], [], [], []
    eye = jnp.eye(C, dtype=jnp.float32)
    zpad = jnp.zeros((hidden, half), jnp.float32)
    for blk in blocks:
        loc_scale.append(jnp.stack([blk["loc"], blk["scale"]]))        # (2, 1, C)
        P = eye[blk["perm"]].T                                         # h @ P == take(h, perm, 1)
        perm.append(jnp.stack([P[:half, :], P[half:, :]]))             # (2, half, C)
        for hs in blk["halfsteps"]:
            s, t = hs["s"], hs["t"]
            w_cat = jnp.concatenate([s["w_in"], t["w_in"]], axis=1)    # (half+E, 2H)
            w_in_x.append(w_cat[:half, :])                             # (half, 2H)
            w_in_e.append(w_cat[half:, :])                             # (E, 2H)
            b_in.append(jnp.concatenate([s["b_in"], t["b_in"]], axis=1))
            w_hid.append(jnp.stack(
                [_block_diag(s["w_hid"][d], t["w_hid"][d]) for d in range(depth)]))
            b_hid.append(jnp.stack(
                [jnp.concatenate([s["b_hid"][d], t["b_hid"][d]], axis=1)
                 for d in range(depth)]))
            w_out.append(jnp.stack([jnp.concatenate([s["w_out"], zpad], axis=0),
                                    jnp.concatenate([zpad, t["w_out"]], axis=0)]))
            b_out.append(jnp.stack([s["b_out"], t["b_out"]]))
    return dict(
        loc_scale=jnp.stack(loc_scale),   # (n_blocks, 2, 1, C)
        perm=jnp.stack(perm),             # (n_blocks, 2, half, C)
        w_in_x=jnp.stack(w_in_x),         # (n_hs, half, 2H)
        w_in_e=jnp.stack(w_in_e),         # (n_hs, E, 2H)
        b_in=jnp.stack(b_in),             # (n_hs, 1, 2H)
        w_hid=jnp.stack(w_hid),           # (n_hs, depth, 2H, 2H)
        b_hid=jnp.stack(b_hid),           # (n_hs, depth, 1, 2H)
        w_out=jnp.stack(w_out),           # (n_hs, 2, 2H, half)
        b_out=jnp.stack(b_out),           # (n_hs, 2, 1, half)
    )


def make_dims(n_scale, z_dim):
    dims = [z_dim, 2 ** int(np.log2(z_dim))]
    for _ in range(1, n_scale):
        dims.append(dims[-1] // 2)
    assert dims[-1] > 0
    return dims


def init_params(key, cfg):
    dims = make_dims(cfg["n_split"], cfg["in_channels"])
    all_dims = dims + [dims[-1]]
    diffs = np.abs(np.diff(np.array(dims)))
    assert diffs[-1] > 1
    E = cfg["embedding_dim"]
    keys = jax.random.split(key, len(dims) + 1)
    raw_subflows, packed_subflows = [], []
    for i, C in enumerate(dims):
        hidden = C * cfg["hidden_dim_multiplier"]
        bkeys = jax.random.split(keys[i], cfg["n_flow_sub"])
        blocks = [_init_block(bk, C, E, hidden, cfg["hidden_depth"]) for bk in bkeys]
        raw_subflows.append(blocks)
        packed_subflows.append(_pack_subflow(blocks, C, hidden, cfg["hidden_depth"]))
    embedder_w = 0.1 * jax.random.normal(
        keys[-1], (E, cfg["num_classes"]), jnp.float32)      # PyTorch (out, in) layout
    packed = dict(embedder_w_t=jnp.transpose(embedder_w),
                  subflows=packed_subflows, dims=dims, all_dims=all_dims)
    raw = dict(embedder_w=embedder_w, subflows=raw_subflows,
               dims=dims, all_dims=all_dims)
    return packed, raw


# ===================== plain-JAX reference (for validation) ===================

def reference_forward(x, labels, raw, alpha=ALPHA, neg_slope=NEG_SLOPE):
    w_emb = raw["embedder_w"]                                # (E, n_classes)
    one_hot = jax.nn.one_hot(labels, w_emb.shape[1], dtype=jnp.float32)
    emb = one_hot @ w_emb.T

    def mlp(p, ci, use_tanh):
        h = ci @ p["w_in"] + p["b_in"]
        h = jnp.where(h >= 0, h, neg_slope * h)
        for d in range(len(p["w_hid"])):
            h = h @ p["w_hid"][d] + p["b_hid"][d]
            h = jnp.where(h >= 0, h, neg_slope * h)
        h = h @ p["w_out"] + p["b_out"]
        return jnp.tanh(h) if use_tanh else h

    dims, all_dims = raw["dims"], raw["all_dims"]
    logdet = jnp.zeros((x.shape[0],), jnp.float32)
    z_parts = []
    for si, blocks in enumerate(raw["subflows"]):
        for blk in blocks:
            h = blk["scale"] * (x + blk["loc"])
            logdet = logdet + jnp.sum(jnp.log(jnp.abs(blk["scale"])))
            h = h * jnp.where(h >= 0, 1.0, alpha)
            half = h.shape[1] // 2
            for i, hs in enumerate(blk["halfsteps"]):
                if i % 2 != 0:
                    h = jnp.concatenate([h[:, half:], h[:, :half]], axis=1)
                xa, xk = h[:, :half], h[:, half:]
                ci = jnp.concatenate([xa, emb], axis=1)
                s = mlp(hs["s"], ci, True)
                t = mlp(hs["t"], ci, False)
                h = jnp.concatenate([xa, xk * jnp.exp(s) + t], axis=1)
                logdet = logdet + jnp.sum(s, axis=1)
            x = jnp.take(h, blk["perm"], axis=1)
        dim_out = dims[si] - all_dims[si + 1]
        if dim_out > 0:
            z_parts.append(x[:, :dim_out])
            x = x[:, dim_out:]
    z_parts.append(x)
    return jnp.concatenate(z_parts, axis=1), logdet


# ==================================== main ====================================

if __name__ == "__main__":
    key = jax.random.PRNGKey(0)
    kp, kx, kl = jax.random.split(key, 3)
    packed, raw = init_params(kp, CFG)

    B = 8   # sublane-aligned batch (>= 8 f32 rows)
    x = jax.random.normal(kx, (B, CFG["in_channels"]), jnp.float32)
    labels = jax.random.randint(kl, (B,), 0, CFG["num_classes"], dtype=jnp.int32)

    fwd = jax.jit(lambda xx, ll: supervised_transformer_forward(xx, ll, packed))
    out, logdet = jax.block_until_ready(fwd(x, labels))

    assert out.shape == (B, CFG["in_channels"]), out.shape
    assert logdet.shape == (B,), logdet.shape
    assert bool(jnp.all(jnp.isfinite(out))) and bool(jnp.all(jnp.isfinite(logdet)))

    # cross-check the fused / packed kernel against a straightforward JAX reference
    ref_out, ref_ld = reference_forward(x, labels, raw)
    np.testing.assert_allclose(np.asarray(out), np.asarray(ref_out), rtol=5e-2, atol=5e-2)
    np.testing.assert_allclose(np.asarray(logdet), np.asarray(ref_ld), rtol=5e-2, atol=5e-2)

    print("KERNEL_OK")
</pallas_src>

<mosaic_0001>
module attributes {stable_mosaic.version = 11 : i64} {
  func.func @_fused_flow_kernel(%arg0: i32, %arg1: memref<8x1xi32, #tpu.memory_space<vmem>>, %arg2: memref<8x24xf32, #tpu.memory_space<vmem>>, %arg3: memref<10x32xf32, #tpu.memory_space<vmem>>, %arg4: memref<2x2x1x24xf32, #tpu.memory_space<vmem>>, %arg5: memref<2x2x12x24xf32, #tpu.memory_space<vmem>>, %arg6: memref<4x12x96xf32, #tpu.memory_space<vmem>>, %arg7: memref<4x32x96xf32, #tpu.memory_space<vmem>>, %arg8: memref<4x1x96xf32, #tpu.memory_space<vmem>>, %arg9: memref<4x1x96x96xf32, #tpu.memory_space<vmem>>, %arg10: memref<4x1x1x96xf32, #tpu.memory_space<vmem>>, %arg11: memref<4x2x96x12xf32, #tpu.memory_space<vmem>>, %arg12: memref<4x2x1x12xf32, #tpu.memory_space<vmem>>, %arg13: memref<2x2x1x16xf32, #tpu.memory_space<vmem>>, %arg14: memref<2x2x8x16xf32, #tpu.memory_space<vmem>>, %arg15: memref<4x8x64xf32, #tpu.memory_space<vmem>>, %arg16: memref<4x32x64xf32, #tpu.memory_space<vmem>>, %arg17: memref<4x1x64xf32, #tpu.memory_space<vmem>>, %arg18: memref<4x1x64x64xf32, #tpu.memory_space<vmem>>, %arg19: memref<4x1x1x64xf32, #tpu.memory_space<vmem>>, %arg20: memref<4x2x64x8xf32, #tpu.memory_space<vmem>>, %arg21: memref<4x2x1x8xf32, #tpu.memory_space<vmem>>, %arg22: memref<2x2x1x8xf32, #tpu.memory_space<vmem>>, %arg23: memref<2x2x4x8xf32, #tpu.memory_space<vmem>>, %arg24: memref<4x4x32xf32, #tpu.memory_space<vmem>>, %arg25: memref<4x32x32xf32, #tpu.memory_space<vmem>>, %arg26: memref<4x1x32xf32, #tpu.memory_space<vmem>>, %arg27: memref<4x1x32x32xf32, #tpu.memory_space<vmem>>, %arg28: memref<4x1x1x32xf32, #tpu.memory_space<vmem>>, %arg29: memref<4x2x32x4xf32, #tpu.memory_space<vmem>>, %arg30: memref<4x2x1x4xf32, #tpu.memory_space<vmem>>, %arg31: memref<8x24xf32, #tpu.memory_space<vmem>>, %arg32: memref<8x1xf32, #tpu.memory_space<vmem>>) attributes {dimension_semantics = [#tpu.dimension_semantics<parallel>], iteration_bounds = array<i64: 1>, scalar_prefetch = 0 : i64, scratch_operands = 0 : i64, tpu.core_type = #tpu.core_type<tc>, window_params = [{transform_indices = @transform_0, window_bounds = array<i64: 8, 1>}, {transform_indices = @transform_1, window_bounds = array<i64: 8, 24>}, {pipeline_mode = #tpu.pipeline_mode<synchronous>, transform_indices = @transform_2, window_bounds = array<i64: 10, 32>}, {pipeline_mode = #tpu.pipeline_mode<synchronous>, transform_indices = @transform_3, window_bounds = array<i64: 2, 2, 1, 24>}, {pipeline_mode = #tpu.pipeline_mode<synchronous>, transform_indices = @transform_4, window_bounds = array<i64: 2, 2, 12, 24>}, {pipeline_mode = #tpu.pipeline_mode<synchronous>, transform_indices = @transform_5, window_bounds = array<i64: 4, 12, 96>}, {pipeline_mode = #tpu.pipeline_mode<synchronous>, transform_indices = @transform_6, window_bounds = array<i64: 4, 32, 96>}, {pipeline_mode = #tpu.pipeline_mode<synchronous>, transform_indices = @transform_7, window_bounds = array<i64: 4, 1, 96>}, {pipeline_mode = #tpu.pipeline_mode<synchronous>, transform_indices = @transform_8, window_bounds = array<i64: 4, 1, 96, 96>}, {pipeline_mode = #tpu.pipeline_mode<synchronous>, transform_indices = @transform_9, window_bounds = array<i64: 4, 1, 1, 96>}, {pipeline_mode = #tpu.pipeline_mode<synchronous>, transform_indices = @transform_10, window_bounds = array<i64: 4, 2, 96, 12>}, {pipeline_mode = #tpu.pipeline_mode<synchronous>, transform_indices = @transform_11, window_bounds = array<i64: 4, 2, 1, 12>}, {pipeline_mode = #tpu.pipeline_mode<synchronous>, transform_indices = @transform_12, window_bounds = array<i64: 2, 2, 1, 16>}, {pipeline_mode = #tpu.pipeline_mode<synchronous>, transform_indices = @transform_13, window_bounds = array<i64: 2, 2, 8, 16>}, {pipeline_mode = #tpu.pipeline_mode<synchronous>, transform_indices = @transform_14, window_bounds = array<i64: 4, 8, 64>}, {pipeline_mode = #tpu.pipeline_mode<synchronous>, transform_indices = @transform_15, window_bounds = array<i64: 4, 32, 64>}, {pipeline_mode = #tpu.pipeline_mode<synchronous>, transform_indices = @transform_16, window_bounds = array<i64: 4, 1, 64>}, {pipeline_mode = #tpu.pipeline_mode<synchronous>, transform_indices = @transform_17, window_bounds = array<i64: 4, 1, 64, 64>}, {pipeline_mode = #tpu.pipeline_mode<synchronous>, transform_indices = @transform_18, window_bounds = array<i64: 4, 1, 1, 64>}, {pipeline_mode = #tpu.pipeline_mode<synchronous>, transform_indices = @transform_19, window_bounds = array<i64: 4, 2, 64, 8>}, {pipeline_mode = #tpu.pipeline_mode<synchronous>, transform_indices = @transform_20, window_bounds = array<i64: 4, 2, 1, 8>}, {pipeline_mode = #tpu.pipeline_mode<synchronous>, transform_indices = @transform_21, window_bounds = array<i64: 2, 2, 1, 8>}, {pipeline_mode = #tpu.pipeline_mode<synchronous>, transform_indices = @transform_22, window_bounds = array<i64: 2, 2, 4, 8>}, {pipeline_mode = #tpu.pipeline_mode<synchronous>, transform_indices = @transform_23, window_bounds = array<i64: 4, 4, 32>}, {pipeline_mode = #tpu.pipeline_mode<synchronous>, transform_indices = @transform_24, window_bounds = array<i64: 4, 32, 32>}, {pipeline_mode = #tpu.pipeline_mode<synchronous>, transform_indices = @transform_25, window_bounds = array<i64: 4, 1, 32>}, {pipeline_mode = #tpu.pipeline_mode<synchronous>, transform_indices = @transform_26, window_bounds = array<i64: 4, 1, 32, 32>}, {pipeline_mode = #tpu.pipeline_mode<synchronous>, transform_indices = @transform_27, window_bounds = array<i64: 4, 1, 1, 32>}, {pipeline_mode = #tpu.pipeline_mode<synchronous>, transform_indices = @transform_28, window_bounds = array<i64: 4, 2, 32, 4>}, {pipeline_mode = #tpu.pipeline_mode<synchronous>, transform_indices = @transform_29, window_bounds = array<i64: 4, 2, 1, 4>}, {transform_indices = @transform_30, window_bounds = array<i64: 8, 24>}, {transform_indices = @transform_31, window_bounds = array<i64: 8, 1>}]} {
    %0 = tpu.iota {dimensions = array<i32: 1>} : vector<8x10xi32>
    %c0 = arith.constant 0 : index
    %c0_0 = arith.constant 0 : index
    %1 = vector.load %arg1[%c0, %c0_0] : memref<8x1xi32, #tpu.memory_space<vmem>>, vector<8x1xi32>
    %2 = vector.broadcast %1 : vector<8x1xi32> to vector<8x10xi32>
    %3 = arith.cmpi eq, %0, %2 : vector<8x10xi32>
    %4 = arith.extui %3 : vector<8x10xi1> to vector<8x10xi32>
    %5 = arith.sitofp %4 : vector<8x10xi32> to vector<8x10xf32>
    %c0_1 = arith.constant 0 : index
    %c0_2 = arith.constant 0 : index
    %6 = vector.load %arg3[%c0_1, %c0_2] : memref<10x32xf32, #tpu.memory_space<vmem>>, vector<10x32xf32>
    %cst = arith.constant dense<0.000000e+00> : vector<8x32xf32>
    %7 = tpu.matmul %5, %6, %cst {dimension_numbers = #tpu.dot_dimension_numbers<[1], [0], [0], [1], [0, 0, 1, 1], [], []>} : vector<8x10xf32>, vector<10x32xf32>, vector<8x32xf32> -> vector<8x32xf32>
    %cst_3 = arith.constant 0.000000e+00 : f32
    %8 = vector.broadcast %cst_3 : f32 to vector<8x1xf32>
    %c0_4 = arith.constant 0 : index
    %c0_5 = arith.constant 0 : index
    %9 = vector.load %arg2[%c0_4, %c0_5] : memref<8x24xf32, #tpu.memory_space<vmem>>, vector<8x24xf32>
    %c0_6 = arith.constant 0 : index
    %c0_7 = arith.constant 0 : index
    %c0_8 = arith.constant 0 : index
    %c0_9 = arith.constant 0 : index
    %10 = vector.load %arg4[%c0_6, %c0_7, %c0_8, %c0_9] : memref<2x2x1x24xf32, #tpu.memory_space<vmem>>, vector<1x1x1x24xf32>
    %11 = vector.shape_cast %10 : vector<1x1x1x24xf32> to vector<1x24xf32>
    %c0_10 = arith.constant 0 : index
    %c1 = arith.constant 1 : index
    %c0_11 = arith.constant 0 : index
    %c0_12 = arith.constant 0 : index
    %12 = vector.load %arg4[%c0_10, %c1, %c0_11, %c0_12] : memref<2x2x1x24xf32, #tpu.memory_space<vmem>>, vector<1x1x1x24xf32>
    %13 = vector.shape_cast %12 : vector<1x1x1x24xf32> to vector<1x24xf32>
    %14 = vector.broadcast %11 : vector<1x24xf32> to vector<8x24xf32>
    %15 = arith.addf %9, %14 : vector<8x24xf32>
    %16 = vector.broadcast %13 : vector<1x24xf32> to vector<8x24xf32>
    %17 = arith.mulf %16, %15 : vector<8x24xf32>
    %18 = math.absf %13 : vector<1x24xf32>
    %19 = math.log %18 : vector<1x24xf32>
    %cst_13 = arith.constant dense<0.000000e+00> : vector<1xf32>
    %20 = vector.multi_reduction <add>, %19, %cst_13 [1] : vector<1x24xf32> to vector<1xf32>
    %21 = vector.shape_cast %20 : vector<1xf32> to vector<1x1xf32>
    %22 = vector.broadcast %21 : vector<1x1xf32> to vector<8x1xf32>
    %23 = arith.addf %8, %22 : vector<8x1xf32>
    %cst_14 = arith.constant 0.000000e+00 : f32
    %24 = vector.broadcast %cst_14 : f32 to vector<8x24xf32>
    %25 = arith.cmpf oge, %17, %24 : vector<8x24xf32>
    %cst_15 = arith.constant 1.000000e+00 : f32
    %cst_16 = arith.constant 0.899999976 : f32
    %26 = vector.broadcast %cst_15 : f32 to vector<8x24xf32>
    %27 = vector.broadcast %cst_16 : f32 to vector<8x24xf32>
    %28 = arith.select %25, %26, %27 : vector<8x24xi1>, vector<8x24xf32>
    %29 = arith.mulf %17, %28 : vector<8x24xf32>
    %30 = vector.extract_strided_slice %29 {offsets = [0, 0], sizes = [8, 12], strides = [1, 1]} : vector<8x24xf32> to vector<8x12xf32>
    %31 = vector.extract_strided_slice %29 {offsets = [0, 12], sizes = [8, 12], strides = [1, 1]} : vector<8x24xf32> to vector<8x12xf32>
    %c0_17 = arith.constant 0 : index
    %c0_18 = arith.constant 0 : index
    %c0_19 = arith.constant 0 : index
    %32 = vector.load %arg6[%c0_17, %c0_18, %c0_19] : memref<4x12x96xf32, #tpu.memory_space<vmem>>, vector<1x12x96xf32>
    %33 = vector.shape_cast %32 : vector<1x12x96xf32> to vector<12x96xf32>
    %cst_20 = arith.constant dense<0.000000e+00> : vector<8x96xf32>
    %34 = tpu.matmul %30, %33, %cst_20 {dimension_numbers = #tpu.dot_dimension_numbers<[1], [0], [0], [1], [0, 0, 1, 1], [], []>} : vector<8x12xf32>, vector<12x96xf32>, vector<8x96xf32> -> vector<8x96xf32>
    %c0_21 = arith.constant 0 : index
    %c0_22 = arith.constant 0 : index
    %c0_23 = arith.constant 0 : index
    %35 = vector.load %arg7[%c0_21, %c0_22, %c0_23] : memref<4x32x96xf32, #tpu.memory_space<vmem>>, vector<1x32x96xf32>
    %36 = vector.shape_cast %35 : vector<1x32x96xf32> to vector<32x96xf32>
    %cst_24 = arith.constant dense<0.000000e+00> : vector<8x96xf32>
    %37 = tpu.matmul %7, %36, %cst_24 {dimension_numbers = #tpu.dot_dimension_numbers<[1], [0], [0], [1], [0, 0, 1, 1], [], []>} : vector<8x32xf32>, vector<32x96xf32>, vector<8x96xf32> -> vector<8x96xf32>
    %38 = arith.addf %34, %37 : vector<8x96xf32>
    %c0_25 = arith.constant 0 : index
    %c0_26 = arith.constant 0 : index
    %c0_27 = arith.constant 0 : index
    %39 = vector.load %arg8[%c0_25, %c0_26, %c0_27] : memref<4x1x96xf32, #tpu.memory_space<vmem>>, vector<1x1x96xf32>
    %40 = vector.shape_cast %39 : vector<1x1x96xf32> to vector<1x96xf32>
    %41 = vector.broadcast %40 : vector<1x96xf32> to vector<8x96xf32>
    %42 = arith.addf %38, %41 : vector<8x96xf32>
    %cst_28 = arith.constant 0.000000e+00 : f32
    %43 = vector.broadcast %cst_28 : f32 to vector<8x96xf32>
    %44 = arith.cmpf oge, %42, %43 : vector<8x96xf32>
    %cst_29 = arith.constant 0.00999999977 : f32
    %45 = vector.broadcast %cst_29 : f32 to vector<8x96xf32>
    %46 = arith.mulf %45, %42 : vector<8x96xf32>
    %47 = arith.select %44, %42, %46 : vector<8x96xi1>, vector<8x96xf32>
    %c0_30 = arith.constant 0 : index
    %c0_31 = arith.constant 0 : index
    %c0_32 = arith.constant 0 : index
    %c0_33 = arith.constant 0 : index
    %48 = vector.load %arg9[%c0_30, %c0_31, %c0_32, %c0_33] : memref<4x1x96x96xf32, #tpu.memory_space<vmem>>, vector<1x1x96x96xf32>
    %49 = vector.shape_cast %48 : vector<1x1x96x96xf32> to vector<96x96xf32>
    %cst_34 = arith.constant dense<0.000000e+00> : vector<8x96xf32>
    %50 = tpu.matmul %47, %49, %cst_34 {dimension_numbers = #tpu.dot_dimension_numbers<[1], [0], [0], [1], [0, 0, 1, 1], [], []>} : vector<8x96xf32>, vector<96x96xf32>, vector<8x96xf32> -> vector<8x96xf32>
    %c0_35 = arith.constant 0 : index
    %c0_36 = arith.constant 0 : index
    %c0_37 = arith.constant 0 : index
    %c0_38 = arith.constant 0 : index
    %51 = vector.load %arg10[%c0_35, %c0_36, %c0_37, %c0_38] : memref<4x1x1x96xf32, #tpu.memory_space<vmem>>, vector<1x1x1x96xf32>
    %52 = vector.shape_cast %51 : vector<1x1x1x96xf32> to vector<1x96xf32>
    %53 = vector.broadcast %52 : vector<1x96xf32> to vector<8x96xf32>
    %54 = arith.addf %50, %53 : vector<8x96xf32>
    %cst_39 = arith.constant 0.000000e+00 : f32
    %55 = vector.broadcast %cst_39 : f32 to vector<8x96xf32>
    %56 = arith.cmpf oge, %54, %55 : vector<8x96xf32>
    %cst_40 = arith.constant 0.00999999977 : f32
    %57 = vector.broadcast %cst_40 : f32 to vector<8x96xf32>
    %58 = arith.mulf %57, %54 : vector<8x96xf32>
    %59 = arith.select %56, %54, %58 : vector<8x96xi1>, vector<8x96xf32>
    %c0_41 = arith.constant 0 : index
    %c0_42 = arith.constant 0 : index
    %c0_43 = arith.constant 0 : index
    %c0_44 = arith.constant 0 : index
    %60 = vector.load %arg11[%c0_41, %c0_42, %c0_43, %c0_44] : memref<4x2x96x12xf32, #tpu.memory_space<vmem>>, vector<1x1x96x12xf32>
    %61 = vector.shape_cast %60 : vector<1x1x96x12xf32> to vector<96x12xf32>
    %cst_45 = arith.constant dense<0.000000e+00> : vector<8x12xf32>
    %62 = tpu.matmul %59, %61, %cst_45 {dimension_numbers = #tpu.dot_dimension_numbers<[1], [0], [0], [1], [0, 0, 1, 1], [], []>} : vector<8x96xf32>, vector<96x12xf32>, vector<8x12xf32> -> vector<8x12xf32>
    %c0_46 = arith.constant 0 : index
    %c0_47 = arith.constant 0 : index
    %c0_48 = arith.constant 0 : index
    %c0_49 = arith.constant 0 : index
    %63 = vector.load %arg12[%c0_46, %c0_47, %c0_48, %c0_49] : memref<4x2x1x12xf32, #tpu.memory_space<vmem>>, vector<1x1x1x12xf32>
    %64 = vector.shape_cast %63 : vector<1x1x1x12xf32> to vector<1x12xf32>
    %65 = vector.broadcast %64 : vector<1x12xf32> to vector<8x12xf32>
    %66 = arith.addf %62, %65 : vector<8x12xf32>
    %67 = math.tanh %66 : vector<8x12xf32>
    %c0_50 = arith.constant 0 : index
    %c1_51 = arith.constant 1 : index
    %c0_52 = arith.constant 0 : index
    %c0_53 = arith.constant 0 : index
    %68 = vector.load %arg11[%c0_50, %c1_51, %c0_52, %c0_53] : memref<4x2x96x12xf32, #tpu.memory_space<vmem>>, vector<1x1x96x12xf32>
    %69 = vector.shape_cast %68 : vector<1x1x96x12xf32> to vector<96x12xf32>
    %cst_54 = arith.constant dense<0.000000e+00> : vector<8x12xf32>
    %70 = tpu.matmul %59, %69, %cst_54 {dimension_numbers = #tpu.dot_dimension_numbers<[1], [0], [0], [1], [0, 0, 1, 1], [], []>} : vector<8x96xf32>, vector<96x12xf32>, vector<8x12xf32> -> vector<8x12xf32>
    %c0_55 = arith.constant 0 : index
    %c1_56 = arith.constant 1 : index
    %c0_57 = arith.constant 0 : index
    %c0_58 = arith.constant 0 : index
    %71 = vector.load %arg12[%c0_55, %c1_56, %c0_57, %c0_58] : memref<4x2x1x12xf32, #tpu.memory_space<vmem>>, vector<1x1x1x12xf32>
    %72 = vector.shape_cast %71 : vector<1x1x1x12xf32> to vector<1x12xf32>
    %73 = vector.broadcast %72 : vector<1x12xf32> to vector<8x12xf32>
    %74 = arith.addf %70, %73 : vector<8x12xf32>
    %75 = math.exp %67 : vector<8x12xf32>
    %76 = arith.mulf %31, %75 : vector<8x12xf32>
    %77 = arith.addf %76, %74 : vector<8x12xf32>
    %cst_59 = arith.constant dense<0.000000e+00> : vector<8xf32>
    %78 = vector.multi_reduction <add>, %67, %cst_59 [1] : vector<8x12xf32> to vector<8xf32>
    %79 = vector.shape_cast %78 : vector<8xf32> to vector<8x1xf32>
    %80 = arith.addf %23, %79 : vector<8x1xf32>
    %c1_60 = arith.constant 1 : index
    %c0_61 = arith.constant 0 : index
    %c0_62 = arith.constant 0 : index
    %81 = vector.load %arg6[%c1_60, %c0_61, %c0_62] : memref<4x12x96xf32, #tpu.memory_space<vmem>>, vector<1x12x96xf32>
    %82 = vector.shape_cast %81 : vector<1x12x96xf32> to vector<12x96xf32>
    %cst_63 = arith.constant dense<0.000000e+00> : vector<8x96xf32>
    %83 = tpu.matmul %77, %82, %cst_63 {dimension_numbers = #tpu.dot_dimension_numbers<[1], [0], [0], [1], [0, 0, 1, 1], [], []>} : vector<8x12xf32>, vector<12x96xf32>, vector<8x96xf32> -> vector<8x96xf32>
    %c1_64 = arith.constant 1 : index
    %c0_65 = arith.constant 0 : index
    %c0_66 = arith.constant 0 : index
    %84 = vector.load %arg7[%c1_64, %c0_65, %c0_66] : memref<4x32x96xf32, #tpu.memory_space<vmem>>, vector<1x32x96xf32>
    %85 = vector.shape_cast %84 : vector<1x32x96xf32> to vector<32x96xf32>
    %cst_67 = arith.constant dense<0.000000e+00> : vector<8x96xf32>
    %86 = tpu.matmul %7, %85, %cst_67 {dimension_numbers = #tpu.dot_dimension_numbers<[1], [0], [0], [1], [0, 0, 1, 1], [], []>} : vector<8x32xf32>, vector<32x96xf32>, vector<8x96xf32> -> vector<8x96xf32>
    %87 = arith.addf %83, %86 : vector<8x96xf32>
    %c1_68 = arith.constant 1 : index
    %c0_69 = arith.constant 0 : index
    %c0_70 = arith.constant 0 : index
    %88 = vector.load %arg8[%c1_68, %c0_69, %c0_70] : memref<4x1x96xf32, #tpu.memory_space<vmem>>, vector<1x1x96xf32>
    %89 = vector.shape_cast %88 : vector<1x1x96xf32> to vector<1x96xf32>
    %90 = vector.broadcast %89 : vector<1x96xf32> to vector<8x96xf32>
    %91 = arith.addf %87, %90 : vector<8x96xf32>
    %cst_71 = arith.constant 0.000000e+00 : f32
    %92 = vector.broadcast %cst_71 : f32 to vector<8x96xf32>
    %93 = arith.cmpf oge, %91, %92 : vector<8x96xf32>
    %cst_72 = arith.constant 0.00999999977 : f32
    %94 = vector.broadcast %cst_72 : f32 to vector<8x96xf32>
    %95 = arith.mulf %94, %91 : vector<8x96xf32>
    %96 = arith.select %93, %91, %95 : vector<8x96xi1>, vector<8x96xf32>
    %c1_73 = arith.constant 1 : index
    %c0_74 = arith.constant 0 : index
    %c0_75 = arith.constant 0 : index
    %c0_76 = arith.constant 0 : index
    %97 = vector.load %arg9[%c1_73, %c0_74, %c0_75, %c0_76] : memref<4x1x96x96xf32, #tpu.memory_space<vmem>>, vector<1x1x96x96xf32>
    %98 = vector.shape_cast %97 : vector<1x1x96x96xf32> to vector<96x96xf32>
    %cst_77 = arith.constant dense<0.000000e+00> : vector<8x96xf32>
    %99 = tpu.matmul %96, %98, %cst_77 {dimension_numbers = #tpu.dot_dimension_numbers<[1], [0], [0], [1], [0, 0, 1, 1], [], []>} : vector<8x96xf32>, vector<96x96xf32>, vector<8x96xf32> -> vector<8x96xf32>
    %c1_78 = arith.constant 1 : index
    %c0_79 = arith.constant 0 : index
    %c0_80 = arith.constant 0 : index
    %c0_81 = arith.constant 0 : index
    %100 = vector.load %arg10[%c1_78, %c0_79, %c0_80, %c0_81] : memref<4x1x1x96xf32, #tpu.memory_space<vmem>>, vector<1x1x1x96xf32>
    %101 = vector.shape_cast %100 : vector<1x1x1x96xf32> to vector<1x96xf32>
    %102 = vector.broadcast %101 : vector<1x96xf32> to vector<8x96xf32>
    %103 = arith.addf %99, %102 : vector<8x96xf32>
    %cst_82 = arith.constant 0.000000e+00 : f32
    %104 = vector.broadcast %cst_82 : f32 to vector<8x96xf32>
    %105 = arith.cmpf oge, %103, %104 : vector<8x96xf32>
    %cst_83 = arith.constant 0.00999999977 : f32
    %106 = vector.broadcast %cst_83 : f32 to vector<8x96xf32>
    %107 = arith.mulf %106, %103 : vector<8x96xf32>
    %108 = arith.select %105, %103, %107 : vector<8x96xi1>, vector<8x96xf32>
    %c1_84 = arith.constant 1 : index
    %c0_85 = arith.constant 0 : index
    %c0_86 = arith.constant 0 : index
    %c0_87 = arith.constant 0 : index
    %109 = vector.load %arg11[%c1_84, %c0_85, %c0_86, %c0_87] : memref<4x2x96x12xf32, #tpu.memory_space<vmem>>, vector<1x1x96x12xf32>
    %110 = vector.shape_cast %109 : vector<1x1x96x12xf32> to vector<96x12xf32>
    %cst_88 = arith.constant dense<0.000000e+00> : vector<8x12xf32>
    %111 = tpu.matmul %108, %110, %cst_88 {dimension_numbers = #tpu.dot_dimension_numbers<[1], [0], [0], [1], [0, 0, 1, 1], [], []>} : vector<8x96xf32>, vector<96x12xf32>, vector<8x12xf32> -> vector<8x12xf32>
    %c1_89 = arith.constant 1 : index
    %c0_90 = arith.constant 0 : index
    %c0_91 = arith.constant 0 : index
    %c0_92 = arith.constant 0 : index
    %112 = vector.load %arg12[%c1_89, %c0_90, %c0_91, %c0_92] : memref<4x2x1x12xf32, #tpu.memory_space<vmem>>, vector<1x1x1x12xf32>
    %113 = vector.shape_cast %112 : vector<1x1x1x12xf32> to vector<1x12xf32>
    %114 = vector.broadcast %113 : vector<1x12xf32> to vector<8x12xf32>
    %115 = arith.addf %111, %114 : vector<8x12xf32>
    %116 = math.tanh %115 : vector<8x12xf32>
    %c1_93 = arith.constant 1 : index
    %c1_94 = arith.constant 1 : index
    %c0_95 = arith.constant 0 : index
    %c0_96 = arith.constant 0 : index
    %117 = vector.load %arg11[%c1_93, %c1_94, %c0_95, %c0_96] : memref<4x2x96x12xf32, #tpu.memory_space<vmem>>, vector<1x1x96x12xf32>
    %118 = vector.shape_cast %117 : vector<1x1x96x12xf32> to vector<96x12xf32>
    %cst_97 = arith.constant dense<0.000000e+00> : vector<8x12xf32>
    %119 = tpu.matmul %108, %118, %cst_97 {dimension_numbers = #tpu.dot_dimension_numbers<[1], [0], [0], [1], [0, 0, 1, 1], [], []>} : vector<8x96xf32>, vector<96x12xf32>, vector<8x12xf32> -> vector<8x12xf32>
    %c1_98 = arith.constant 1 : index
    %c1_99 = arith.constant 1 : index
    %c0_100 = arith.constant 0 : index
    %c0_101 = arith.constant 0 : index
    %120 = vector.load %arg12[%c1_98, %c1_99, %c0_100, %c0_101] : memref<4x2x1x12xf32, #tpu.memory_space<vmem>>, vector<1x1x1x12xf32>
    %121 = vector.shape_cast %120 : vector<1x1x1x12xf32> to vector<1x12xf32>
    %122 = vector.broadcast %121 : vector<1x12xf32> to vector<8x12xf32>
    %123 = arith.addf %119, %122 : vector<8x12xf32>
    %124 = math.exp %116 : vector<8x12xf32>
    %125 = arith.mulf %30, %124 : vector<8x12xf32>
    %126 = arith.addf %125, %123 : vector<8x12xf32>
    %cst_102 = arith.constant dense<0.000000e+00> : vector<8xf32>
    %127 = vector.multi_reduction <add>, %116, %cst_102 [1] : vector<8x12xf32> to vector<8xf32>
    %128 = vector.shape_cast %127 : vector<8xf32> to vector<8x1xf32>
    %129 = arith.addf %80, %128 : vector<8x1xf32>
    %c0_103 = arith.constant 0 : index
    %c0_104 = arith.constant 0 : index
    %c0_105 = arith.constant 0 : index
    %c0_106 = arith.constant 0 : index
    %130 = vector.load %arg5[%c0_103, %c0_104, %c0_105, %c0_106] : memref<2x2x12x24xf32, #tpu.memory_space<vmem>>, vector<1x1x12x24xf32>
    %131 = vector.shape_cast %130 : vector<1x1x12x24xf32> to vector<12x24xf32>
    %cst_107 = arith.constant dense<0.000000e+00> : vector<8x24xf32>
    %132 = tpu.matmul %77, %131, %cst_107 {dimension_numbers = #tpu.dot_dimension_numbers<[1], [0], [0], [1], [0, 0, 1, 1], [], []>} : vector<8x12xf32>, vector<12x24xf32>, vector<8x24xf32> -> vector<8x24xf32>
    %c0_108 = arith.constant 0 : index
    %c1_109 = arith.constant 1 : index
    %c0_110 = arith.constant 0 : index
    %c0_111 = arith.constant 0 : index
    %133 = vector.load %arg5[%c0_108, %c1_109, %c0_110, %c0_111] : memref<2x2x12x24xf32, #tpu.memory_space<vmem>>, vector<1x1x12x24xf32>
    %134 = vector.shape_cast %133 : vector<1x1x12x24xf32> to vector<12x24xf32>
    %cst_112 = arith.constant dense<0.000000e+00> : vector<8x24xf32>
    %135 = tpu.matmul %126, %134, %cst_112 {dimension_numbers = #tpu.dot_dimension_numbers<[1], [0], [0], [1], [0, 0, 1, 1], [], []>} : vector<8x12xf32>, vector<12x24xf32>, vector<8x24xf32> -> vector<8x24xf32>
    %136 = arith.addf %132, %135 : vector<8x24xf32>
    %c1_113 = arith.constant 1 : index
    %c0_114 = arith.constant 0 : index
    %c0_115 = arith.constant 0 : index
    %c0_116 = arith.constant 0 : index
    %137 = vector.load %arg4[%c1_113, %c0_114, %c0_115, %c0_116] : memref<2x2x1x24xf32, #tpu.memory_space<vmem>>, vector<1x1x1x24xf32>
    %138 = vector.shape_cast %137 : vector<1x1x1x24xf32> to vector<1x24xf32>
    %c1_117 = arith.constant 1 : index
    %c1_118 = arith.constant 1 : index
    %c0_119 = arith.constant 0 : index
    %c0_120 = arith.constant 0 : index
    %139 = vector.load %arg4[%c1_117, %c1_118, %c0_119, %c0_120] : memref<2x2x1x24xf32, #tpu.memory_space<vmem>>, vector<1x1x1x24xf32>
    %140 = vector.shape_cast %139 : vector<1x1x1x24xf32> to vector<1x24xf32>
    %141 = vector.broadcast %138 : vector<1x24xf32> to vector<8x24xf32>
    %142 = arith.addf %136, %141 : vector<8x24xf32>
    %143 = vector.broadcast %140 : vector<1x24xf32> to vector<8x24xf32>
    %144 = arith.mulf %143, %142 : vector<8x24xf32>
    %145 = math.absf %140 : vector<1x24xf32>
    %146 = math.log %145 : vector<1x24xf32>
    %cst_121 = arith.constant dense<0.000000e+00> : vector<1xf32>
    %147 = vector.multi_reduction <add>, %146, %cst_121 [1] : vector<1x24xf32> to vector<1xf32>
    %148 = vector.shape_cast %147 : vector<1xf32> to vector<1x1xf32>
    %149 = vector.broadcast %148 : vector<1x1xf32> to vector<8x1xf32>
    %150 = arith.addf %129, %149 : vector<8x1xf32>
    %cst_122 = arith.constant 0.000000e+00 : f32
    %151 = vector.broadcast %cst_122 : f32 to vector<8x24xf32>
    %152 = arith.cmpf oge, %144, %151 : vector<8x24xf32>
    %cst_123 = arith.constant 1.000000e+00 : f32
    %cst_124 = arith.constant 0.899999976 : f32
    %153 = vector.broadcast %cst_123 : f32 to vector<8x24xf32>
    %154 = vector.broadcast %cst_124 : f32 to vector<8x24xf32>
    %155 = arith.select %152, %153, %154 : vector<8x24xi1>, vector<8x24xf32>
    %156 = arith.mulf %144, %155 : vector<8x24xf32>
    %157 = vector.extract_strided_slice %156 {offsets = [0, 0], sizes = [8, 12], strides = [1, 1]} : vector<8x24xf32> to vector<8x12xf32>
    %158 = vector.extract_strided_slice %156 {offsets = [0, 12], sizes = [8, 12], strides = [1, 1]} : vector<8x24xf32> to vector<8x12xf32>
    %c2 = arith.constant 2 : index
    %c0_125 = arith.constant 0 : index
    %c0_126 = arith.constant 0 : index
    %159 = vector.load %arg6[%c2, %c0_125, %c0_126] : memref<4x12x96xf32, #tpu.memory_space<vmem>>, vector<1x12x96xf32>
    %160 = vector.shape_cast %159 : vector<1x12x96xf32> to vector<12x96xf32>
    %cst_127 = arith.constant dense<0.000000e+00> : vector<8x96xf32>
    %161 = tpu.matmul %157, %160, %cst_127 {dimension_numbers = #tpu.dot_dimension_numbers<[1], [0], [0], [1], [0, 0, 1, 1], [], []>} : vector<8x12xf32>, vector<12x96xf32>, vector<8x96xf32> -> vector<8x96xf32>
    %c2_128 = arith.constant 2 : index
    %c0_129 = arith.constant 0 : index
    %c0_130 = arith.constant 0 : index
    %162 = vector.load %arg7[%c2_128, %c0_129, %c0_130] : memref<4x32x96xf32, #tpu.memory_space<vmem>>, vector<1x32x96xf32>
    %163 = vector.shape_cast %162 : vector<1x32x96xf32> to vector<32x96xf32>
    %cst_131 = arith.constant dense<0.000000e+00> : vector<8x96xf32>
    %164 = tpu.matmul %7, %163, %cst_131 {dimension_numbers = #tpu.dot_dimension_numbers<[1], [0], [0], [1], [0, 0, 1, 1], [], []>} : vector<8x32xf32>, vector<32x96xf32>, vector<8x96xf32> -> vector<8x96xf32>
    %165 = arith.addf %161, %164 : vector<8x96xf32>
    %c2_132 = arith.constant 2 : index
    %c0_133 = arith.constant 0 : index
    %c0_134 = arith.constant 0 : index
    %166 = vector.load %arg8[%c2_132, %c0_133, %c0_134] : memref<4x1x96xf32, #tpu.memory_space<vmem>>, vector<1x1x96xf32>
    %167 = vector.shape_cast %166 : vector<1x1x96xf32> to vector<1x96xf32>
    %168 = vector.broadcast %167 : vector<1x96xf32> to vector<8x96xf32>
    %169 = arith.addf %165, %168 : vector<8x96xf32>
    %cst_135 = arith.constant 0.000000e+00 : f32
    %170 = vector.broadcast %cst_135 : f32 to vector<8x96xf32>
    %171 = arith.cmpf oge, %169, %170 : vector<8x96xf32>
    %cst_136 = arith.constant 0.00999999977 : f32
    %172 = vector.broadcast %cst_136 : f32 to vector<8x96xf32>
    %173 = arith.mulf %172, %169 : vector<8x96xf32>
    %174 = arith.select %171, %169, %173 : vector<8x96xi1>, vector<8x96xf32>
    %c2_137 = arith.constant 2 : index
    %c0_138 = arith.constant 0 : index
    %c0_139 = arith.constant 0 : index
    %c0_140 = arith.constant 0 : index
    %175 = vector.load %arg9[%c2_137, %c0_138, %c0_139, %c0_140] : memref<4x1x96x96xf32, #tpu.memory_space<vmem>>, vector<1x1x96x96xf32>
    %176 = vector.shape_cast %175 : vector<1x1x96x96xf32> to vector<96x96xf32>
    %cst_141 = arith.constant dense<0.000000e+00> : vector<8x96xf32>
    %177 = tpu.matmul %174, %176, %cst_141 {dimension_numbers = #tpu.dot_dimension_numbers<[1], [0], [0], [1], [0, 0, 1, 1], [], []>} : vector<8x96xf32>, vector<96x96xf32>, vector<8x96xf32> -> vector<8x96xf32>
    %c2_142 = arith.constant 2 : index
    %c0_143 = arith.constant 0 : index
    %c0_144 = arith.constant 0 : index
    %c0_145 = arith.constant 0 : index
    %178 = vector.load %arg10[%c2_142, %c0_143, %c0_144, %c0_145] : memref<4x1x1x96xf32, #tpu.memory_space<vmem>>, vector<1x1x1x96xf32>
    %179 = vector.shape_cast %178 : vector<1x1x1x96xf32> to vector<1x96xf32>
    %180 = vector.broadcast %179 : vector<1x96xf32> to vector<8x96xf32>
    %181 = arith.addf %177, %180 : vector<8x96xf32>
    %cst_146 = arith.constant 0.000000e+00 : f32
    %182 = vector.broadcast %cst_146 : f32 to vector<8x96xf32>
    %183 = arith.cmpf oge, %181, %182 : vector<8x96xf32>
    %cst_147 = arith.constant 0.00999999977 : f32
    %184 = vector.broadcast %cst_147 : f32 to vector<8x96xf32>
    %185 = arith.mulf %184, %181 : vector<8x96xf32>
    %186 = arith.select %183, %181, %185 : vector<8x96xi1>, vector<8x96xf32>
    %c2_148 = arith.constant 2 : index
    %c0_149 = arith.constant 0 : index
    %c0_150 = arith.constant 0 : index
    %c0_151 = arith.constant 0 : index
    %187 = vector.load %arg11[%c2_148, %c0_149, %c0_150, %c0_151] : memref<4x2x96x12xf32, #tpu.memory_space<vmem>>, vector<1x1x96x12xf32>
    %188 = vector.shape_cast %187 : vector<1x1x96x12xf32> to vector<96x12xf32>
    %cst_152 = arith.constant dense<0.000000e+00> : vector<8x12xf32>
    %189 = tpu.matmul %186, %188, %cst_152 {dimension_numbers = #tpu.dot_dimension_numbers<[1], [0], [0], [1], [0, 0, 1, 1], [], []>} : vector<8x96xf32>, vector<96x12xf32>, vector<8x12xf32> -> vector<8x12xf32>
    %c2_153 = arith.constant 2 : index
    %c0_154 = arith.constant 0 : index
    %c0_155 = arith.constant 0 : index
    %c0_156 = arith.constant 0 : index
    %190 = vector.load %arg12[%c2_153, %c0_154, %c0_155, %c0_156] : memref<4x2x1x12xf32, #tpu.memory_space<vmem>>, vector<1x1x1x12xf32>
    %191 = vector.shape_cast %190 : vector<1x1x1x12xf32> to vector<1x12xf32>
    %192 = vector.broadcast %191 : vector<1x12xf32> to vector<8x12xf32>
    %193 = arith.addf %189, %192 : vector<8x12xf32>
    %194 = math.tanh %193 : vector<8x12xf32>
    %c2_157 = arith.constant 2 : index
    %c1_158 = arith.constant 1 : index
    %c0_159 = arith.constant 0 : index
    %c0_160 = arith.constant 0 : index
    %195 = vector.load %arg11[%c2_157, %c1_158, %c0_159, %c0_160] : memref<4x2x96x12xf32, #tpu.memory_space<vmem>>, vector<1x1x96x12xf32>
    %196 = vector.shape_cast %195 : vector<1x1x96x12xf32> to vector<96x12xf32>
    %cst_161 = arith.constant dense<0.000000e+00> : vector<8x12xf32>
    %197 = tpu.matmul %186, %196, %cst_161 {dimension_numbers = #tpu.dot_dimension_numbers<[1], [0], [0], [1], [0, 0, 1, 1], [], []>} : vector<8x96xf32>, vector<96x12xf32>, vector<8x12xf32> -> vector<8x12xf32>
    %c2_162 = arith.constant 2 : index
    %c1_163 = arith.constant 1 : index
    %c0_164 = arith.constant 0 : index
    %c0_165 = arith.constant 0 : index
    %198 = vector.load %arg12[%c2_162, %c1_163, %c0_164, %c0_165] : memref<4x2x1x12xf32, #tpu.memory_space<vmem>>, vector<1x1x1x12xf32>
    %199 = vector.shape_cast %198 : vector<1x1x1x12xf32> to vector<1x12xf32>
    %200 = vector.broadcast %199 : vector<1x12xf32> to vector<8x12xf32>
    %201 = arith.addf %197, %200 : vector<8x12xf32>
    %202 = math.exp %194 : vector<8x12xf32>
    %203 = arith.mulf %158, %202 : vector<8x12xf32>
    %204 = arith.addf %203, %201 : vector<8x12xf32>
    %cst_166 = arith.constant dense<0.000000e+00> : vector<8xf32>
    %205 = vector.multi_reduction <add>, %194, %cst_166 [1] : vector<8x12xf32> to vector<8xf32>
    %206 = vector.shape_cast %205 : vector<8xf32> to vector<8x1xf32>
    %207 = arith.addf %150, %206 : vector<8x1xf32>
    %c3 = arith.constant 3 : index
    %c0_167 = arith.constant 0 : index
    %c0_168 = arith.constant 0 : index
    %208 = vector.load %arg6[%c3, %c0_167, %c0_168] : memref<4x12x96xf32, #tpu.memory_space<vmem>>, vector<1x12x96xf32>
    %209 = vector.shape_cast %208 : vector<1x12x96xf32> to vector<12x96xf32>
    %cst_169 = arith.constant dense<0.000000e+00> : vector<8x96xf32>
    %210 = tpu.matmul %204, %209, %cst_169 {dimension_numbers = #tpu.dot_dimension_numbers<[1], [0], [0], [1], [0, 0, 1, 1], [], []>} : vector<8x12xf32>, vector<12x96xf32>, vector<8x96xf32> -> vector<8x96xf32>
    %c3_170 = arith.constant 3 : index
    %c0_171 = arith.constant 0 : index
    %c0_172 = arith.constant 0 : index
    %211 = vector.load %arg7[%c3_170, %c0_171, %c0_172] : memref<4x32x96xf32, #tpu.memory_space<vmem>>, vector<1x32x96xf32>
    %212 = vector.shape_cast %211 : vector<1x32x96xf32> to vector<32x96xf32>
    %cst_173 = arith.constant dense<0.000000e+00> : vector<8x96xf32>
    %213 = tpu.matmul %7, %212, %cst_173 {dimension_numbers = #tpu.dot_dimension_numbers<[1], [0], [0], [1], [0, 0, 1, 1], [], []>} : vector<8x32xf32>, vector<32x96xf32>, vector<8x96xf32> -> vector<8x96xf32>
    %214 = arith.addf %210, %213 : vector<8x96xf32>
    %c3_174 = arith.constant 3 : index
    %c0_175 = arith.constant 0 : index
    %c0_176 = arith.constant 0 : index
    %215 = vector.load %arg8[%c3_174, %c0_175, %c0_176] : memref<4x1x96xf32, #tpu.memory_space<vmem>>, vector<1x1x96xf32>
    %216 = vector.shape_cast %215 : vector<1x1x96xf32> to vector<1x96xf32>
    %217 = vector.broadcast %216 : vector<1x96xf32> to vector<8x96xf32>
    %218 = arith.addf %214, %217 : vector<8x96xf32>
    %cst_177 = arith.constant 0.000000e+00 : f32
    %219 = vector.broadcast %cst_177 : f32 to vector<8x96xf32>
    %220 = arith.cmpf oge, %218, %219 : vector<8x96xf32>
    %cst_178 = arith.constant 0.00999999977 : f32
    %221 = vector.broadcast %cst_178 : f32 to vector<8x96xf32>
    %222 = arith.mulf %221, %218 : vector<8x96xf32>
    %223 = arith.select %220, %218, %222 : vector<8x96xi1>, vector<8x96xf32>
    %c3_179 = arith.constant 3 : index
    %c0_180 = arith.constant 0 : index
    %c0_181 = arith.constant 0 : index
    %c0_182 = arith.constant 0 : index
    %224 = vector.load %arg9[%c3_179, %c0_180, %c0_181, %c0_182] : memref<4x1x96x96xf32, #tpu.memory_space<vmem>>, vector<1x1x96x96xf32>
    %225 = vector.shape_cast %224 : vector<1x1x96x96xf32> to vector<96x96xf32>
    %cst_183 = arith.constant dense<0.000000e+00> : vector<8x96xf32>
    %226 = tpu.matmul %223, %225, %cst_183 {dimension_numbers = #tpu.dot_dimension_numbers<[1], [0], [0], [1], [0, 0, 1, 1], [], []>} : vector<8x96xf32>, vector<96x96xf32>, vector<8x96xf32> -> vector<8x96xf32>
    %c3_184 = arith.constant 3 : index
    %c0_185 = arith.constant 0 : index
    %c0_186 = arith.constant 0 : index
    %c0_187 = arith.constant 0 : index
    %227 = vector.load %arg10[%c3_184, %c0_185, %c0_186, %c0_187] : memref<4x1x1x96xf32, #tpu.memory_space<vmem>>, vector<1x1x1x96xf32>
    %228 = vector.shape_cast %227 : vector<1x1x1x96xf32> to vector<1x96xf32>
    %229 = vector.broadcast %228 : vector<1x96xf32> to vector<8x96xf32>
    %230 = arith.addf %226, %229 : vector<8x96xf32>
    %cst_188 = arith.constant 0.000000e+00 : f32
    %231 = vector.broadcast %cst_188 : f32 to vector<8x96xf32>
    %232 = arith.cmpf oge, %230, %231 : vector<8x96xf32>
    %cst_189 = arith.constant 0.00999999977 : f32
    %233 = vector.broadcast %cst_189 : f32 to vector<8x96xf32>
    %234 = arith.mulf %233, %230 : vector<8x96xf32>
    %235 = arith.select %232, %230, %234 : vector<8x96xi1>, vector<8x96xf32>
    %c3_190 = arith.constant 3 : index
    %c0_191 = arith.constant 0 : index
    %c0_192 = arith.constant 0 : index
    %c0_193 = arith.constant 0 : index
    %236 = vector.load %arg11[%c3_190, %c0_191, %c0_192, %c0_193] : memref<4x2x96x12xf32, #tpu.memory_space<vmem>>, vector<1x1x96x12xf32>
    %237 = vector.shape_cast %236 : vector<1x1x96x12xf32> to vector<96x12xf32>
    %cst_194 = arith.constant dense<0.000000e+00> : vector<8x12xf32>
    %238 = tpu.matmul %235, %237, %cst_194 {dimension_numbers = #tpu.dot_dimension_numbers<[1], [0], [0], [1], [0, 0, 1, 1], [], []>} : vector<8x96xf32>, vector<96x12xf32>, vector<8x12xf32> -> vector<8x12xf32>
    %c3_195 = arith.constant 3 : index
    %c0_196 = arith.constant 0 : index
    %c0_197 = arith.constant 0 : index
    %c0_198 = arith.constant 0 : index
    %239 = vector.load %arg12[%c3_195, %c0_196, %c0_197, %c0_198] : memref<4x2x1x12xf32, #tpu.memory_space<vmem>>, vector<1x1x1x12xf32>
    %240 = vector.shape_cast %239 : vector<1x1x1x12xf32> to vector<1x12xf32>
    %241 = vector.broadcast %240 : vector<1x12xf32> to vector<8x12xf32>
    %242 = arith.addf %238, %241 : vector<8x12xf32>
    %243 = math.tanh %242 : vector<8x12xf32>
    %c3_199 = arith.constant 3 : index
    %c1_200 = arith.constant 1 : index
    %c0_201 = arith.constant 0 : index
    %c0_202 = arith.constant 0 : index
    %244 = vector.load %arg11[%c3_199, %c1_200, %c0_201, %c0_202] : memref<4x2x96x12xf32, #tpu.memory_space<vmem>>, vector<1x1x96x12xf32>
    %245 = vector.shape_cast %244 : vector<1x1x96x12xf32> to vector<96x12xf32>
    %cst_203 = arith.constant dense<0.000000e+00> : vector<8x12xf32>
    %246 = tpu.matmul %235, %245, %cst_203 {dimension_numbers = #tpu.dot_dimension_numbers<[1], [0], [0], [1], [0, 0, 1, 1], [], []>} : vector<8x96xf32>, vector<96x12xf32>, vector<8x12xf32> -> vector<8x12xf32>
    %c3_204 = arith.constant 3 : index
    %c1_205 = arith.constant 1 : index
    %c0_206 = arith.constant 0 : index
    %c0_207 = arith.constant 0 : index
    %247 = vector.load %arg12[%c3_204, %c1_205, %c0_206, %c0_207] : memref<4x2x1x12xf32, #tpu.memory_space<vmem>>, vector<1x1x1x12xf32>
    %248 = vector.shape_cast %247 : vector<1x1x1x12xf32> to vector<1x12xf32>
    %249 = vector.broadcast %248 : vector<1x12xf32> to vector<8x12xf32>
    %250 = arith.addf %246, %249 : vector<8x12xf32>
    %251 = math.exp %243 : vector<8x12xf32>
    %252 = arith.mulf %157, %251 : vector<8x12xf32>
    %253 = arith.addf %252, %250 : vector<8x12xf32>
    %cst_208 = arith.constant dense<0.000000e+00> : vector<8xf32>
    %254 = vector.multi_reduction <add>, %243, %cst_208 [1] : vector<8x12xf32> to vector<8xf32>
    %255 = vector.shape_cast %254 : vector<8xf32> to vector<8x1xf32>
    %256 = arith.addf %207, %255 : vector<8x1xf32>
    %c1_209 = arith.constant 1 : index
    %c0_210 = arith.constant 0 : index
    %c0_211 = arith.constant 0 : index
    %c0_212 = arith.constant 0 : index
    %257 = vector.load %arg5[%c1_209, %c0_210, %c0_211, %c0_212] : memref<2x2x12x24xf32, #tpu.memory_space<vmem>>, vector<1x1x12x24xf32>
    %258 = vector.shape_cast %257 : vector<1x1x12x24xf32> to vector<12x24xf32>
    %cst_213 = arith.constant dense<0.000000e+00> : vector<8x24xf32>
    %259 = tpu.matmul %204, %258, %cst_213 {dimension_numbers = #tpu.dot_dimension_numbers<[1], [0], [0], [1], [0, 0, 1, 1], [], []>} : vector<8x12xf32>, vector<12x24xf32>, vector<8x24xf32> -> vector<8x24xf32>
    %c1_214 = arith.constant 1 : index
    %c1_215 = arith.constant 1 : index
    %c0_216 = arith.constant 0 : index
    %c0_217 = arith.constant 0 : index
    %260 = vector.load %arg5[%c1_214, %c1_215, %c0_216, %c0_217] : memref<2x2x12x24xf32, #tpu.memory_space<vmem>>, vector<1x1x12x24xf32>
    %261 = vector.shape_cast %260 : vector<1x1x12x24xf32> to vector<12x24xf32>
    %cst_218 = arith.constant dense<0.000000e+00> : vector<8x24xf32>
    %262 = tpu.matmul %253, %261, %cst_218 {dimension_numbers = #tpu.dot_dimension_numbers<[1], [0], [0], [1], [0, 0, 1, 1], [], []>} : vector<8x12xf32>, vector<12x24xf32>, vector<8x24xf32> -> vector<8x24xf32>
    %263 = arith.addf %259, %262 : vector<8x24xf32>
    %264 = vector.extract_strided_slice %263 {offsets = [0, 0], sizes = [8, 8], strides = [1, 1]} : vector<8x24xf32> to vector<8x8xf32>
    %265 = vector.extract_strided_slice %263 {offsets = [0, 8], sizes = [8, 16], strides = [1, 1]} : vector<8x24xf32> to vector<8x16xf32>
    %c0_219 = arith.constant 0 : index
    %c0_220 = arith.constant 0 : index
    %c0_221 = arith.constant 0 : index
    %c0_222 = arith.constant 0 : index
    %266 = vector.load %arg13[%c0_219, %c0_220, %c0_221, %c0_222] : memref<2x2x1x16xf32, #tpu.memory_space<vmem>>, vector<1x1x1x16xf32>
    %267 = vector.shape_cast %266 : vector<1x1x1x16xf32> to vector<1x16xf32>
    %c0_223 = arith.constant 0 : index
    %c1_224 = arith.constant 1 : index
    %c0_225 = arith.constant 0 : index
    %c0_226 = arith.constant 0 : index
    %268 = vector.load %arg13[%c0_223, %c1_224, %c0_225, %c0_226] : memref<2x2x1x16xf32, #tpu.memory_space<vmem>>, vector<1x1x1x16xf32>
    %269 = vector.shape_cast %268 : vector<1x1x1x16xf32> to vector<1x16xf32>
    %270 = vector.broadcast %267 : vector<1x16xf32> to vector<8x16xf32>
    %271 = arith.addf %265, %270 : vector<8x16xf32>
    %272 = vector.broadcast %269 : vector<1x16xf32> to vector<8x16xf32>
    %273 = arith.mulf %272, %271 : vector<8x16xf32>
    %274 = math.absf %269 : vector<1x16xf32>
    %275 = math.log %274 : vector<1x16xf32>
    %cst_227 = arith.constant dense<0.000000e+00> : vector<1xf32>
    %276 = vector.multi_reduction <add>, %275, %cst_227 [1] : vector<1x16xf32> to vector<1xf32>
    %277 = vector.shape_cast %276 : vector<1xf32> to vector<1x1xf32>
    %278 = vector.broadcast %277 : vector<1x1xf32> to vector<8x1xf32>
    %279 = arith.addf %256, %278 : vector<8x1xf32>
    %cst_228 = arith.constant 0.000000e+00 : f32
    %280 = vector.broadcast %cst_228 : f32 to vector<8x16xf32>
    %281 = arith.cmpf oge, %273, %280 : vector<8x16xf32>
    %cst_229 = arith.constant 1.000000e+00 : f32
    %cst_230 = arith.constant 0.899999976 : f32
    %282 = vector.broadcast %cst_229 : f32 to vector<8x16xf32>
    %283 = vector.broadcast %cst_230 : f32 to vector<8x16xf32>
    %284 = arith.select %281, %282, %283 : vector<8x16xi1>, vector<8x16xf32>
    %285 = arith.mulf %273, %284 : vector<8x16xf32>
    %286 = vector.extract_strided_slice %285 {offsets = [0, 0], sizes = [8, 8], strides = [1, 1]} : vector<8x16xf32> to vector<8x8xf32>
    %287 = vector.extract_strided_slice %285 {offsets = [0, 8], sizes = [8, 8], strides = [1, 1]} : vector<8x16xf32> to vector<8x8xf32>
    %c0_231 = arith.constant 0 : index
    %c0_232 = arith.constant 0 : index
    %c0_233 = arith.constant 0 : index
    %288 = vector.load %arg15[%c0_231, %c0_232, %c0_233] : memref<4x8x64xf32, #tpu.memory_space<vmem>>, vector<1x8x64xf32>
    %289 = vector.shape_cast %288 : vector<1x8x64xf32> to vector<8x64xf32>
    %cst_234 = arith.constant dense<0.000000e+00> : vector<8x64xf32>
    %290 = tpu.matmul %286, %289, %cst_234 {dimension_numbers = #tpu.dot_dimension_numbers<[1], [0], [0], [1], [0, 0, 1, 1], [], []>} : vector<8x8xf32>, vector<8x64xf32>, vector<8x64xf32> -> vector<8x64xf32>
    %c0_235 = arith.constant 0 : index
    %c0_236 = arith.constant 0 : index
    %c0_237 = arith.constant 0 : index
    %291 = vector.load %arg16[%c0_235, %c0_236, %c0_237] : memref<4x32x64xf32, #tpu.memory_space<vmem>>, vector<1x32x64xf32>
    %292 = vector.shape_cast %291 : vector<1x32x64xf32> to vector<32x64xf32>
    %cst_238 = arith.constant dense<0.000000e+00> : vector<8x64xf32>
    %293 = tpu.matmul %7, %292, %cst_238 {dimension_numbers = #tpu.dot_dimension_numbers<[1], [0], [0], [1], [0, 0, 1, 1], [], []>} : vector<8x32xf32>, vector<32x64xf32>, vector<8x64xf32> -> vector<8x64xf32>
    %294 = arith.addf %290, %293 : vector<8x64xf32>
    %c0_239 = arith.constant 0 : index
    %c0_240 = arith.constant 0 : index
    %c0_241 = arith.constant 0 : index
    %295 = vector.load %arg17[%c0_239, %c0_240, %c0_241] : memref<4x1x64xf32, #tpu.memory_space<vmem>>, vector<1x1x64xf32>
    %296 = vector.shape_cast %295 : vector<1x1x64xf32> to vector<1x64xf32>
    %297 = vector.broadcast %296 : vector<1x64xf32> to vector<8x64xf32>
    %298 = arith.addf %294, %297 : vector<8x64xf32>
    %cst_242 = arith.constant 0.000000e+00 : f32
    %299 = vector.broadcast %cst_242 : f32 to vector<8x64xf32>
    %300 = arith.cmpf oge, %298, %299 : vector<8x64xf32>
    %cst_243 = arith.constant 0.00999999977 : f32
    %301 = vector.broadcast %cst_243 : f32 to vector<8x64xf32>
    %302 = arith.mulf %301, %298 : vector<8x64xf32>
    %303 = arith.select %300, %298, %302 : vector<8x64xi1>, vector<8x64xf32>
    %c0_244 = arith.constant 0 : index
    %c0_245 = arith.constant 0 : index
    %c0_246 = arith.constant 0 : index
    %c0_247 = arith.constant 0 : index
    %304 = vector.load %arg18[%c0_244, %c0_245, %c0_246, %c0_247] : memref<4x1x64x64xf32, #tpu.memory_space<vmem>>, vector<1x1x64x64xf32>
    %305 = vector.shape_cast %304 : vector<1x1x64x64xf32> to vector<64x64xf32>
    %cst_248 = arith.constant dense<0.000000e+00> : vector<8x64xf32>
    %306 = tpu.matmul %303, %305, %cst_248 {dimension_numbers = #tpu.dot_dimension_numbers<[1], [0], [0], [1], [0, 0, 1, 1], [], []>} : vector<8x64xf32>, vector<64x64xf32>, vector<8x64xf32> -> vector<8x64xf32>
    %c0_249 = arith.constant 0 : index
    %c0_250 = arith.constant 0 : index
    %c0_251 = arith.constant 0 : index
    %c0_252 = arith.constant 0 : index
    %307 = vector.load %arg19[%c0_249, %c0_250, %c0_251, %c0_252] : memref<4x1x1x64xf32, #tpu.memory_space<vmem>>, vector<1x1x1x64xf32>
    %308 = vector.shape_cast %307 : vector<1x1x1x64xf32> to vector<1x64xf32>
    %309 = vector.broadcast %308 : vector<1x64xf32> to vector<8x64xf32>
    %310 = arith.addf %306, %309 : vector<8x64xf32>
    %cst_253 = arith.constant 0.000000e+00 : f32
    %311 = vector.broadcast %cst_253 : f32 to vector<8x64xf32>
    %312 = arith.cmpf oge, %310, %311 : vector<8x64xf32>
    %cst_254 = arith.constant 0.00999999977 : f32
    %313 = vector.broadcast %cst_254 : f32 to vector<8x64xf32>
    %314 = arith.mulf %313, %310 : vector<8x64xf32>
    %315 = arith.select %312, %310, %314 : vector<8x64xi1>, vector<8x64xf32>
    %c0_255 = arith.constant 0 : index
    %c0_256 = arith.constant 0 : index
    %c0_257 = arith.constant 0 : index
    %c0_258 = arith.constant 0 : index
    %316 = vector.load %arg20[%c0_255, %c0_256, %c0_257, %c0_258] : memref<4x2x64x8xf32, #tpu.memory_space<vmem>>, vector<1x1x64x8xf32>
    %317 = vector.shape_cast %316 : vector<1x1x64x8xf32> to vector<64x8xf32>
    %cst_259 = arith.constant dense<0.000000e+00> : vector<8x8xf32>
    %318 = tpu.matmul %315, %317, %cst_259 {dimension_numbers = #tpu.dot_dimension_numbers<[1], [0], [0], [1], [0, 0, 1, 1], [], []>} : vector<8x64xf32>, vector<64x8xf32>, vector<8x8xf32> -> vector<8x8xf32>
    %c0_260 = arith.constant 0 : index
    %c0_261 = arith.constant 0 : index
    %c0_262 = arith.constant 0 : index
    %c0_263 = arith.constant 0 : index
    %319 = vector.load %arg21[%c0_260, %c0_261, %c0_262, %c0_263] : memref<4x2x1x8xf32, #tpu.memory_space<vmem>>, vector<1x1x1x8xf32>
    %320 = vector.shape_cast %319 : vector<1x1x1x8xf32> to vector<1x8xf32>
    %321 = vector.broadcast %320 : vector<1x8xf32> to vector<8x8xf32>
    %322 = arith.addf %318, %321 : vector<8x8xf32>
    %323 = math.tanh %322 : vector<8x8xf32>
    %c0_264 = arith.constant 0 : index
    %c1_265 = arith.constant 1 : index
    %c0_266 = arith.constant 0 : index
    %c0_267 = arith.constant 0 : index
    %324 = vector.load %arg20[%c0_264, %c1_265, %c0_266, %c0_267] : memref<4x2x64x8xf32, #tpu.memory_space<vmem>>, vector<1x1x64x8xf32>
    %325 = vector.shape_cast %324 : vector<1x1x64x8xf32> to vector<64x8xf32>
    %cst_268 = arith.constant dense<0.000000e+00> : vector<8x8xf32>
    %326 = tpu.matmul %315, %325, %cst_268 {dimension_numbers = #tpu.dot_dimension_numbers<[1], [0], [0], [1], [0, 0, 1, 1], [], []>} : vector<8x64xf32>, vector<64x8xf32>, vector<8x8xf32> -> vector<8x8xf32>
    %c0_269 = arith.constant 0 : index
    %c1_270 = arith.constant 1 : index
    %c0_271 = arith.constant 0 : index
    %c0_272 = arith.constant 0 : index
    %327 = vector.load %arg21[%c0_269, %c1_270, %c0_271, %c0_272] : memref<4x2x1x8xf32, #tpu.memory_space<vmem>>, vector<1x1x1x8xf32>
    %328 = vector.shape_cast %327 : vector<1x1x1x8xf32> to vector<1x8xf32>
    %329 = vector.broadcast %328 : vector<1x8xf32> to vector<8x8xf32>
    %330 = arith.addf %326, %329 : vector<8x8xf32>
    %331 = math.exp %323 : vector<8x8xf32>
    %332 = arith.mulf %287, %331 : vector<8x8xf32>
    %333 = arith.addf %332, %330 : vector<8x8xf32>
    %cst_273 = arith.constant dense<0.000000e+00> : vector<8xf32>
    %334 = vector.multi_reduction <add>, %323, %cst_273 [1] : vector<8x8xf32> to vector<8xf32>
    %335 = vector.shape_cast %334 : vector<8xf32> to vector<8x1xf32>
    %336 = arith.addf %279, %335 : vector<8x1xf32>
    %c1_274 = arith.constant 1 : index
    %c0_275 = arith.constant 0 : index
    %c0_276 = arith.constant 0 : index
    %337 = vector.load %arg15[%c1_274, %c0_275, %c0_276] : memref<4x8x64xf32, #tpu.memory_space<vmem>>, vector<1x8x64xf32>
    %338 = vector.shape_cast %337 : vector<1x8x64xf32> to vector<8x64xf32>
    %cst_277 = arith.constant dense<0.000000e+00> : vector<8x64xf32>
    %339 = tpu.matmul %333, %338, %cst_277 {dimension_numbers = #tpu.dot_dimension_numbers<[1], [0], [0], [1], [0, 0, 1, 1], [], []>} : vector<8x8xf32>, vector<8x64xf32>, vector<8x64xf32> -> vector<8x64xf32>
    %c1_278 = arith.constant 1 : index
    %c0_279 = arith.constant 0 : index
    %c0_280 = arith.constant 0 : index
    %340 = vector.load %arg16[%c1_278, %c0_279, %c0_280] : memref<4x32x64xf32, #tpu.memory_space<vmem>>, vector<1x32x64xf32>
    %341 = vector.shape_cast %340 : vector<1x32x64xf32> to vector<32x64xf32>
    %cst_281 = arith.constant dense<0.000000e+00> : vector<8x64xf32>
    %342 = tpu.matmul %7, %341, %cst_281 {dimension_numbers = #tpu.dot_dimension_numbers<[1], [0], [0], [1], [0, 0, 1, 1], [], []>} : vector<8x32xf32>, vector<32x64xf32>, vector<8x64xf32> -> vector<8x64xf32>
    %343 = arith.addf %339, %342 : vector<8x64xf32>
    %c1_282 = arith.constant 1 : index
    %c0_283 = arith.constant 0 : index
    %c0_284 = arith.constant 0 : index
    %344 = vector.load %arg17[%c1_282, %c0_283, %c0_284] : memref<4x1x64xf32, #tpu.memory_space<vmem>>, vector<1x1x64xf32>
    %345 = vector.shape_cast %344 : vector<1x1x64xf32> to vector<1x64xf32>
    %346 = vector.broadcast %345 : vector<1x64xf32> to vector<8x64xf32>
    %347 = arith.addf %343, %346 : vector<8x64xf32>
    %cst_285 = arith.constant 0.000000e+00 : f32
    %348 = vector.broadcast %cst_285 : f32 to vector<8x64xf32>
    %349 = arith.cmpf oge, %347, %348 : vector<8x64xf32>
    %cst_286 = arith.constant 0.00999999977 : f32
    %350 = vector.broadcast %cst_286 : f32 to vector<8x64xf32>
    %351 = arith.mulf %350, %347 : vector<8x64xf32>
    %352 = arith.select %349, %347, %351 : vector<8x64xi1>, vector<8x64xf32>
    %c1_287 = arith.constant 1 : index
    %c0_288 = arith.constant 0 : index
    %c0_289 = arith.constant 0 : index
    %c0_290 = arith.constant 0 : index
    %353 = vector.load %arg18[%c1_287, %c0_288, %c0_289, %c0_290] : memref<4x1x64x64xf32, #tpu.memory_space<vmem>>, vector<1x1x64x64xf32>
    %354 = vector.shape_cast %353 : vector<1x1x64x64xf32> to vector<64x64xf32>
    %cst_291 = arith.constant dense<0.000000e+00> : vector<8x64xf32>
    %355 = tpu.matmul %352, %354, %cst_291 {dimension_numbers = #tpu.dot_dimension_numbers<[1], [0], [0], [1], [0, 0, 1, 1], [], []>} : vector<8x64xf32>, vector<64x64xf32>, vector<8x64xf32> -> vector<8x64xf32>
    %c1_292 = arith.constant 1 : index
    %c0_293 = arith.constant 0 : index
    %c0_294 = arith.constant 0 : index
    %c0_295 = arith.constant 0 : index
    %356 = vector.load %arg19[%c1_292, %c0_293, %c0_294, %c0_295] : memref<4x1x1x64xf32, #tpu.memory_space<vmem>>, vector<1x1x1x64xf32>
    %357 = vector.shape_cast %356 : vector<1x1x1x64xf32> to vector<1x64xf32>
    %358 = vector.broadcast %357 : vector<1x64xf32> to vector<8x64xf32>
    %359 = arith.addf %355, %358 : vector<8x64xf32>
    %cst_296 = arith.constant 0.000000e+00 : f32
    %360 = vector.broadcast %cst_296 : f32 to vector<8x64xf32>
    %361 = arith.cmpf oge, %359, %360 : vector<8x64xf32>
    %cst_297 = arith.constant 0.00999999977 : f32
    %362 = vector.broadcast %cst_297 : f32 to vector<8x64xf32>
    %363 = arith.mulf %362, %359 : vector<8x64xf32>
    %364 = arith.select %361, %359, %363 : vector<8x64xi1>, vector<8x64xf32>
    %c1_298 = arith.constant 1 : index
    %c0_299 = arith.constant 0 : index
    %c0_300 = arith.constant 0 : index
    %c0_301 = arith.constant 0 : index
    %365 = vector.load %arg20[%c1_298, %c0_299, %c0_300, %c0_301] : memref<4x2x64x8xf32, #tpu.memory_space<vmem>>, vector<1x1x64x8xf32>
    %366 = vector.shape_cast %365 : vector<1x1x64x8xf32> to vector<64x8xf32>
    %cst_302 = arith.constant dense<0.000000e+00> : vector<8x8xf32>
    %367 = tpu.matmul %364, %366, %cst_302 {dimension_numbers = #tpu.dot_dimension_numbers<[1], [0], [0], [1], [0, 0, 1, 1], [], []>} : vector<8x64xf32>, vector<64x8xf32>, vector<8x8xf32> -> vector<8x8xf32>
    %c1_303 = arith.constant 1 : index
    %c0_304 = arith.constant 0 : index
    %c0_305 = arith.constant 0 : index
    %c0_306 = arith.constant 0 : index
    %368 = vector.load %arg21[%c1_303, %c0_304, %c0_305, %c0_306] : memref<4x2x1x8xf32, #tpu.memory_space<vmem>>, vector<1x1x1x8xf32>
    %369 = vector.shape_cast %368 : vector<1x1x1x8xf32> to vector<1x8xf32>
    %370 = vector.broadcast %369 : vector<1x8xf32> to vector<8x8xf32>
    %371 = arith.addf %367, %370 : vector<8x8xf32>
    %372 = math.tanh %371 : vector<8x8xf32>
    %c1_307 = arith.constant 1 : index
    %c1_308 = arith.constant 1 : index
    %c0_309 = arith.constant 0 : index
    %c0_310 = arith.constant 0 : index
    %373 = vector.load %arg20[%c1_307, %c1_308, %c0_309, %c0_310] : memref<4x2x64x8xf32, #tpu.memory_space<vmem>>, vector<1x1x64x8xf32>
    %374 = vector.shape_cast %373 : vector<1x1x64x8xf32> to vector<64x8xf32>
    %cst_311 = arith.constant dense<0.000000e+00> : vector<8x8xf32>
    %375 = tpu.matmul %364, %374, %cst_311 {dimension_numbers = #tpu.dot_dimension_numbers<[1], [0], [0], [1], [0, 0, 1, 1], [], []>} : vector<8x64xf32>, vector<64x8xf32>, vector<8x8xf32> -> vector<8x8xf32>
    %c1_312 = arith.constant 1 : index
    %c1_313 = arith.constant 1 : index
    %c0_314 = arith.constant 0 : index
    %c0_315 = arith.constant 0 : index
    %376 = vector.load %arg21[%c1_312, %c1_313, %c0_314, %c0_315] : memref<4x2x1x8xf32, #tpu.memory_space<vmem>>, vector<1x1x1x8xf32>
    %377 = vector.shape_cast %376 : vector<1x1x1x8xf32> to vector<1x8xf32>
    %378 = vector.broadcast %377 : vector<1x8xf32> to vector<8x8xf32>
    %379 = arith.addf %375, %378 : vector<8x8xf32>
    %380 = math.exp %372 : vector<8x8xf32>
    %381 = arith.mulf %286, %380 : vector<8x8xf32>
    %382 = arith.addf %381, %379 : vector<8x8xf32>
    %cst_316 = arith.constant dense<0.000000e+00> : vector<8xf32>
    %383 = vector.multi_reduction <add>, %372, %cst_316 [1] : vector<8x8xf32> to vector<8xf32>
    %384 = vector.shape_cast %383 : vector<8xf32> to vector<8x1xf32>
    %385 = arith.addf %336, %384 : vector<8x1xf32>
    %c0_317 = arith.constant 0 : index
    %c0_318 = arith.constant 0 : index
    %c0_319 = arith.constant 0 : index
    %c0_320 = arith.constant 0 : index
    %386 = vector.load %arg14[%c0_317, %c0_318, %c0_319, %c0_320] : memref<2x2x8x16xf32, #tpu.memory_space<vmem>>, vector<1x1x8x16xf32>
    %387 = vector.shape_cast %386 : vector<1x1x8x16xf32> to vector<8x16xf32>
    %cst_321 = arith.constant dense<0.000000e+00> : vector<8x16xf32>
    %388 = tpu.matmul %333, %387, %cst_321 {dimension_numbers = #tpu.dot_dimension_numbers<[1], [0], [0], [1], [0, 0, 1, 1], [], []>} : vector<8x8xf32>, vector<8x16xf32>, vector<8x16xf32> -> vector<8x16xf32>
    %c0_322 = arith.constant 0 : index
    %c1_323 = arith.constant 1 : index
    %c0_324 = arith.constant 0 : index
    %c0_325 = arith.constant 0 : index
    %389 = vector.load %arg14[%c0_322, %c1_323, %c0_324, %c0_325] : memref<2x2x8x16xf32, #tpu.memory_space<vmem>>, vector<1x1x8x16xf32>
    %390 = vector.shape_cast %389 : vector<1x1x8x16xf32> to vector<8x16xf32>
    %cst_326 = arith.constant dense<0.000000e+00> : vector<8x16xf32>
    %391 = tpu.matmul %382, %390, %cst_326 {dimension_numbers = #tpu.dot_dimension_numbers<[1], [0], [0], [1], [0, 0, 1, 1], [], []>} : vector<8x8xf32>, vector<8x16xf32>, vector<8x16xf32> -> vector<8x16xf32>
    %392 = arith.addf %388, %391 : vector<8x16xf32>
    %c1_327 = arith.constant 1 : index
    %c0_328 = arith.constant 0 : index
    %c0_329 = arith.constant 0 : index
    %c0_330 = arith.constant 0 : index
    %393 = vector.load %arg13[%c1_327, %c0_328, %c0_329, %c0_330] : memref<2x2x1x16xf32, #tpu.memory_space<vmem>>, vector<1x1x1x16xf32>
    %394 = vector.shape_cast %393 : vector<1x1x1x16xf32> to vector<1x16xf32>
    %c1_331 = arith.constant 1 : index
    %c1_332 = arith.constant 1 : index
    %c0_333 = arith.constant 0 : index
    %c0_334 = arith.constant 0 : index
    %395 = vector.load %arg13[%c1_331, %c1_332, %c0_333, %c0_334] : memref<2x2x1x16xf32, #tpu.memory_space<vmem>>, vector<1x1x1x16xf32>
    %396 = vector.shape_cast %395 : vector<1x1x1x16xf32> to vector<1x16xf32>
    %397 = vector.broadcast %394 : vector<1x16xf32> to vector<8x16xf32>
    %398 = arith.addf %392, %397 : vector<8x16xf32>
    %399 = vector.broadcast %396 : vector<1x16xf32> to vector<8x16xf32>
    %400 = arith.mulf %399, %398 : vector<8x16xf32>
    %401 = math.absf %396 : vector<1x16xf32>
    %402 = math.log %401 : vector<1x16xf32>
    %cst_335 = arith.constant dense<0.000000e+00> : vector<1xf32>
    %403 = vector.multi_reduction <add>, %402, %cst_335 [1] : vector<1x16xf32> to vector<1xf32>
    %404 = vector.shape_cast %403 : vector<1xf32> to vector<1x1xf32>
    %405 = vector.broadcast %404 : vector<1x1xf32> to vector<8x1xf32>
    %406 = arith.addf %385, %405 : vector<8x1xf32>
    %cst_336 = arith.constant 0.000000e+00 : f32
    %407 = vector.broadcast %cst_336 : f32 to vector<8x16xf32>
    %408 = arith.cmpf oge, %400, %407 : vector<8x16xf32>
    %cst_337 = arith.constant 1.000000e+00 : f32
    %cst_338 = arith.constant 0.899999976 : f32
    %409 = vector.broadcast %cst_337 : f32 to vector<8x16xf32>
    %410 = vector.broadcast %cst_338 : f32 to vector<8x16xf32>
    %411 = arith.select %408, %409, %410 : vector<8x16xi1>, vector<8x16xf32>
    %412 = arith.mulf %400, %411 : vector<8x16xf32>
    %413 = vector.extract_strided_slice %412 {offsets = [0, 0], sizes = [8, 8], strides = [1, 1]} : vector<8x16xf32> to vector<8x8xf32>
    %414 = vector.extract_strided_slice %412 {offsets = [0, 8], sizes = [8, 8], strides = [1, 1]} : vector<8x16xf32> to vector<8x8xf32>
    %c2_339 = arith.constant 2 : index
    %c0_340 = arith.constant 0 : index
    %c0_341 = arith.constant 0 : index
    %415 = vector.load %arg15[%c2_339, %c0_340, %c0_341] : memref<4x8x64xf32, #tpu.memory_space<vmem>>, vector<1x8x64xf32>
    %416 = vector.shape_cast %415 : vector<1x8x64xf32> to vector<8x64xf32>
    %cst_342 = arith.constant dense<0.000000e+00> : vector<8x64xf32>
    %417 = tpu.matmul %413, %416, %cst_342 {dimension_numbers = #tpu.dot_dimension_numbers<[1], [0], [0], [1], [0, 0, 1, 1], [], []>} : vector<8x8xf32>, vector<8x64xf32>, vector<8x64xf32> -> vector<8x64xf32>
    %c2_343 = arith.constant 2 : index
    %c0_344 = arith.constant 0 : index
    %c0_345 = arith.constant 0 : index
    %418 = vector.load %arg16[%c2_343, %c0_344, %c0_345] : memref<4x32x64xf32, #tpu.memory_space<vmem>>, vector<1x32x64xf32>
    %419 = vector.shape_cast %418 : vector<1x32x64xf32> to vector<32x64xf32>
    %cst_346 = arith.constant dense<0.000000e+00> : vector<8x64xf32>
    %420 = tpu.matmul %7, %419, %cst_346 {dimension_numbers = #tpu.dot_dimension_numbers<[1], [0], [0], [1], [0, 0, 1, 1], [], []>} : vector<8x32xf32>, vector<32x64xf32>, vector<8x64xf32> -> vector<8x64xf32>
    %421 = arith.addf %417, %420 : vector<8x64xf32>
    %c2_347 = arith.constant 2 : index
    %c0_348 = arith.constant 0 : index
    %c0_349 = arith.constant 0 : index
    %422 = vector.load %arg17[%c2_347, %c0_348, %c0_349] : memref<4x1x64xf32, #tpu.memory_space<vmem>>, vector<1x1x64xf32>
    %423 = vector.shape_cast %422 : vector<1x1x64xf32> to vector<1x64xf32>
    %424 = vector.broadcast %423 : vector<1x64xf32> to vector<8x64xf32>
    %425 = arith.addf %421, %424 : vector<8x64xf32>
    %cst_350 = arith.constant 0.000000e+00 : f32
    %426 = vector.broadcast %cst_350 : f32 to vector<8x64xf32>
    %427 = arith.cmpf oge, %425, %426 : vector<8x64xf32>
    %cst_351 = arith.constant 0.00999999977 : f32
    %428 = vector.broadcast %cst_351 : f32 to vector<8x64xf32>
    %429 = arith.mulf %428, %425 : vector<8x64xf32>
    %430 = arith.select %427, %425, %429 : vector<8x64xi1>, vector<8x64xf32>
    %c2_352 = arith.constant 2 : index
    %c0_353 = arith.constant 0 : index
    %c0_354 = arith.constant 0 : index
    %c0_355 = arith.constant 0 : index
    %431 = vector.load %arg18[%c2_352, %c0_353, %c0_354, %c0_355] : memref<4x1x64x64xf32, #tpu.memory_space<vmem>>, vector<1x1x64x64xf32>
    %432 = vector.shape_cast %431 : vector<1x1x64x64xf32> to vector<64x64xf32>
    %cst_356 = arith.constant dense<0.000000e+00> : vector<8x64xf32>
    %433 = tpu.matmul %430, %432, %cst_356 {dimension_numbers = #tpu.dot_dimension_numbers<[1], [0], [0], [1], [0, 0, 1, 1], [], []>} : vector<8x64xf32>, vector<64x64xf32>, vector<8x64xf32> -> vector<8x64xf32>
    %c2_357 = arith.constant 2 : index
    %c0_358 = arith.constant 0 : index
    %c0_359 = arith.constant 0 : index
    %c0_360 = arith.constant 0 : index
    %434 = vector.load %arg19[%c2_357, %c0_358, %c0_359, %c0_360] : memref<4x1x1x64xf32, #tpu.memory_space<vmem>>, vector<1x1x1x64xf32>
    %435 = vector.shape_cast %434 : vector<1x1x1x64xf32> to vector<1x64xf32>
    %436 = vector.broadcast %435 : vector<1x64xf32> to vector<8x64xf32>
    %437 = arith.addf %433, %436 : vector<8x64xf32>
    %cst_361 = arith.constant 0.000000e+00 : f32
    %438 = vector.broadcast %cst_361 : f32 to vector<8x64xf32>
    %439 = arith.cmpf oge, %437, %438 : vector<8x64xf32>
    %cst_362 = arith.constant 0.00999999977 : f32
    %440 = vector.broadcast %cst_362 : f32 to vector<8x64xf32>
    %441 = arith.mulf %440, %437 : vector<8x64xf32>
    %442 = arith.select %439, %437, %441 : vector<8x64xi1>, vector<8x64xf32>
    %c2_363 = arith.constant 2 : index
    %c0_364 = arith.constant 0 : index
    %c0_365 = arith.constant 0 : index
    %c0_366 = arith.constant 0 : index
    %443 = vector.load %arg20[%c2_363, %c0_364, %c0_365, %c0_366] : memref<4x2x64x8xf32, #tpu.memory_space<vmem>>, vector<1x1x64x8xf32>
    %444 = vector.shape_cast %443 : vector<1x1x64x8xf32> to vector<64x8xf32>
    %cst_367 = arith.constant dense<0.000000e+00> : vector<8x8xf32>
    %445 = tpu.matmul %442, %444, %cst_367 {dimension_numbers = #tpu.dot_dimension_numbers<[1], [0], [0], [1], [0, 0, 1, 1], [], []>} : vector<8x64xf32>, vector<64x8xf32>, vector<8x8xf32> -> vector<8x8xf32>
    %c2_368 = arith.constant 2 : index
    %c0_369 = arith.constant 0 : index
    %c0_370 = arith.constant 0 : index
    %c0_371 = arith.constant 0 : index
    %446 = vector.load %arg21[%c2_368, %c0_369, %c0_370, %c0_371] : memref<4x2x1x8xf32, #tpu.memory_space<vmem>>, vector<1x1x1x8xf32>
    %447 = vector.shape_cast %446 : vector<1x1x1x8xf32> to vector<1x8xf32>
    %448 = vector.broadcast %447 : vector<1x8xf32> to vector<8x8xf32>
    %449 = arith.addf %445, %448 : vector<8x8xf32>
    %450 = math.tanh %449 : vector<8x8xf32>
    %c2_372 = arith.constant 2 : index
    %c1_373 = arith.constant 1 : index
    %c0_374 = arith.constant 0 : index
    %c0_375 = arith.constant 0 : index
    %451 = vector.load %arg20[%c2_372, %c1_373, %c0_374, %c0_375] : memref<4x2x64x8xf32, #tpu.memory_space<vmem>>, vector<1x1x64x8xf32>
    %452 = vector.shape_cast %451 : vector<1x1x64x8xf32> to vector<64x8xf32>
    %cst_376 = arith.constant dense<0.000000e+00> : vector<8x8xf32>
    %453 = tpu.matmul %442, %452, %cst_376 {dimension_numbers = #tpu.dot_dimension_numbers<[1], [0], [0], [1], [0, 0, 1, 1], [], []>} : vector<8x64xf32>, vector<64x8xf32>, vector<8x8xf32> -> vector<8x8xf32>
    %c2_377 = arith.constant 2 : index
    %c1_378 = arith.constant 1 : index
    %c0_379 = arith.constant 0 : index
    %c0_380 = arith.constant 0 : index
    %454 = vector.load %arg21[%c2_377, %c1_378, %c0_379, %c0_380] : memref<4x2x1x8xf32, #tpu.memory_space<vmem>>, vector<1x1x1x8xf32>
    %455 = vector.shape_cast %454 : vector<1x1x1x8xf32> to vector<1x8xf32>
    %456 = vector.broadcast %455 : vector<1x8xf32> to vector<8x8xf32>
    %457 = arith.addf %453, %456 : vector<8x8xf32>
    %458 = math.exp %450 : vector<8x8xf32>
    %459 = arith.mulf %414, %458 : vector<8x8xf32>
    %460 = arith.addf %459, %457 : vector<8x8xf32>
    %cst_381 = arith.constant dense<0.000000e+00> : vector<8xf32>
    %461 = vector.multi_reduction <add>, %450, %cst_381 [1] : vector<8x8xf32> to vector<8xf32>
    %462 = vector.shape_cast %461 : vector<8xf32> to vector<8x1xf32>
    %463 = arith.addf %406, %462 : vector<8x1xf32>
    %c3_382 = arith.constant 3 : index
    %c0_383 = arith.constant 0 : index
    %c0_384 = arith.constant 0 : index
    %464 = vector.load %arg15[%c3_382, %c0_383, %c0_384] : memref<4x8x64xf32, #tpu.memory_space<vmem>>, vector<1x8x64xf32>
    %465 = vector.shape_cast %464 : vector<1x8x64xf32> to vector<8x64xf32>
    %cst_385 = arith.constant dense<0.000000e+00> : vector<8x64xf32>
    %466 = tpu.matmul %460, %465, %cst_385 {dimension_numbers = #tpu.dot_dimension_numbers<[1], [0], [0], [1], [0, 0, 1, 1], [], []>} : vector<8x8xf32>, vector<8x64xf32>, vector<8x64xf32> -> vector<8x64xf32>
    %c3_386 = arith.constant 3 : index
    %c0_387 = arith.constant 0 : index
    %c0_388 = arith.constant 0 : index
    %467 = vector.load %arg16[%c3_386, %c0_387, %c0_388] : memref<4x32x64xf32, #tpu.memory_space<vmem>>, vector<1x32x64xf32>
    %468 = vector.shape_cast %467 : vector<1x32x64xf32> to vector<32x64xf32>
    %cst_389 = arith.constant dense<0.000000e+00> : vector<8x64xf32>
    %469 = tpu.matmul %7, %468, %cst_389 {dimension_numbers = #tpu.dot_dimension_numbers<[1], [0], [0], [1], [0, 0, 1, 1], [], []>} : vector<8x32xf32>, vector<32x64xf32>, vector<8x64xf32> -> vector<8x64xf32>
    %470 = arith.addf %466, %469 : vector<8x64xf32>
    %c3_390 = arith.constant 3 : index
    %c0_391 = arith.constant 0 : index
    %c0_392 = arith.constant 0 : index
    %471 = vector.load %arg17[%c3_390, %c0_391, %c0_392] : memref<4x1x64xf32, #tpu.memory_space<vmem>>, vector<1x1x64xf32>
    %472 = vector.shape_cast %471 : vector<1x1x64xf32> to vector<1x64xf32>
    %473 = vector.broadcast %472 : vector<1x64xf32> to vector<8x64xf32>
    %474 = arith.addf %470, %473 : vector<8x64xf32>
    %cst_393 = arith.constant 0.000000e+00 : f32
    %475 = vector.broadcast %cst_393 : f32 to vector<8x64xf32>
    %476 = arith.cmpf oge, %474, %475 : vector<8x64xf32>
    %cst_394 = arith.constant 0.00999999977 : f32
    %477 = vector.broadcast %cst_394 : f32 to vector<8x64xf32>
    %478 = arith.mulf %477, %474 : vector<8x64xf32>
    %479 = arith.select %476, %474, %478 : vector<8x64xi1>, vector<8x64xf32>
    %c3_395 = arith.constant 3 : index
    %c0_396 = arith.constant 0 : index
    %c0_397 = arith.constant 0 : index
    %c0_398 = arith.constant 0 : index
    %480 = vector.load %arg18[%c3_395, %c0_396, %c0_397, %c0_398] : memref<4x1x64x64xf32, #tpu.memory_space<vmem>>, vector<1x1x64x64xf32>
    %481 = vector.shape_cast %480 : vector<1x1x64x64xf32> to vector<64x64xf32>
    %cst_399 = arith.constant dense<0.000000e+00> : vector<8x64xf32>
    %482 = tpu.matmul %479, %481, %cst_399 {dimension_numbers = #tpu.dot_dimension_numbers<[1], [0], [0], [1], [0, 0, 1, 1], [], []>} : vector<8x64xf32>, vector<64x64xf32>, vector<8x64xf32> -> vector<8x64xf32>
    %c3_400 = arith.constant 3 : index
    %c0_401 = arith.constant 0 : index
    %c0_402 = arith.constant 0 : index
    %c0_403 = arith.constant 0 : index
    %483 = vector.load %arg19[%c3_400, %c0_401, %c0_402, %c0_403] : memref<4x1x1x64xf32, #tpu.memory_space<vmem>>, vector<1x1x1x64xf32>
    %484 = vector.shape_cast %483 : vector<1x1x1x64xf32> to vector<1x64xf32>
    %485 = vector.broadcast %484 : vector<1x64xf32> to vector<8x64xf32>
    %486 = arith.addf %482, %485 : vector<8x64xf32>
    %cst_404 = arith.constant 0.000000e+00 : f32
    %487 = vector.broadcast %cst_404 : f32 to vector<8x64xf32>
    %488 = arith.cmpf oge, %486, %487 : vector<8x64xf32>
    %cst_405 = arith.constant 0.00999999977 : f32
    %489 = vector.broadcast %cst_405 : f32 to vector<8x64xf32>
    %490 = arith.mulf %489, %486 : vector<8x64xf32>
    %491 = arith.select %488, %486, %490 : vector<8x64xi1>, vector<8x64xf32>
    %c3_406 = arith.constant 3 : index
    %c0_407 = arith.constant 0 : index
    %c0_408 = arith.constant 0 : index
    %c0_409 = arith.constant 0 : index
    %492 = vector.load %arg20[%c3_406, %c0_407, %c0_408, %c0_409] : memref<4x2x64x8xf32, #tpu.memory_space<vmem>>, vector<1x1x64x8xf32>
    %493 = vector.shape_cast %492 : vector<1x1x64x8xf32> to vector<64x8xf32>
    %cst_410 = arith.constant dense<0.000000e+00> : vector<8x8xf32>
    %494 = tpu.matmul %491, %493, %cst_410 {dimension_numbers = #tpu.dot_dimension_numbers<[1], [0], [0], [1], [0, 0, 1, 1], [], []>} : vector<8x64xf32>, vector<64x8xf32>, vector<8x8xf32> -> vector<8x8xf32>
    %c3_411 = arith.constant 3 : index
    %c0_412 = arith.constant 0 : index
    %c0_413 = arith.constant 0 : index
    %c0_414 = arith.constant 0 : index
    %495 = vector.load %arg21[%c3_411, %c0_412, %c0_413, %c0_414] : memref<4x2x1x8xf32, #tpu.memory_space<vmem>>, vector<1x1x1x8xf32>
    %496 = vector.shape_cast %495 : vector<1x1x1x8xf32> to vector<1x8xf32>
    %497 = vector.broadcast %496 : vector<1x8xf32> to vector<8x8xf32>
    %498 = arith.addf %494, %497 : vector<8x8xf32>
    %499 = math.tanh %498 : vector<8x8xf32>
    %c3_415 = arith.constant 3 : index
    %c1_416 = arith.constant 1 : index
    %c0_417 = arith.constant 0 : index
    %c0_418 = arith.constant 0 : index
    %500 = vector.load %arg20[%c3_415, %c1_416, %c0_417, %c0_418] : memref<4x2x64x8xf32, #tpu.memory_space<vmem>>, vector<1x1x64x8xf32>
    %501 = vector.shape_cast %500 : vector<1x1x64x8xf32> to vector<64x8xf32>
    %cst_419 = arith.constant dense<0.000000e+00> : vector<8x8xf32>
    %502 = tpu.matmul %491, %501, %cst_419 {dimension_numbers = #tpu.dot_dimension_numbers<[1], [0], [0], [1], [0, 0, 1, 1], [], []>} : vector<8x64xf32>, vector<64x8xf32>, vector<8x8xf32> -> vector<8x8xf32>
    %c3_420 = arith.constant 3 : index
    %c1_421 = arith.constant 1 : index
    %c0_422 = arith.constant 0 : index
    %c0_423 = arith.constant 0 : index
    %503 = vector.load %arg21[%c3_420, %c1_421, %c0_422, %c0_423] : memref<4x2x1x8xf32, #tpu.memory_space<vmem>>, vector<1x1x1x8xf32>
    %504 = vector.shape_cast %503 : vector<1x1x1x8xf32> to vector<1x8xf32>
    %505 = vector.broadcast %504 : vector<1x8xf32> to vector<8x8xf32>
    %506 = arith.addf %502, %505 : vector<8x8xf32>
    %507 = math.exp %499 : vector<8x8xf32>
    %508 = arith.mulf %413, %507 : vector<8x8xf32>
    %509 = arith.addf %508, %506 : vector<8x8xf32>
    %cst_424 = arith.constant dense<0.000000e+00> : vector<8xf32>
    %510 = vector.multi_reduction <add>, %499, %cst_424 [1] : vector<8x8xf32> to vector<8xf32>
    %511 = vector.shape_cast %510 : vector<8xf32> to vector<8x1xf32>
    %512 = arith.addf %463, %511 : vector<8x1xf32>
    %c1_425 = arith.constant 1 : index
    %c0_426 = arith.constant 0 : index
    %c0_427 = arith.constant 0 : index
    %c0_428 = arith.constant 0 : index
    %513 = vector.load %arg14[%c1_425, %c0_426, %c0_427, %c0_428] : memref<2x2x8x16xf32, #tpu.memory_space<vmem>>, vector<1x1x8x16xf32>
    %514 = vector.shape_cast %513 : vector<1x1x8x16xf32> to vector<8x16xf32>
    %cst_429 = arith.constant dense<0.000000e+00> : vector<8x16xf32>
    %515 = tpu.matmul %460, %514, %cst_429 {dimension_numbers = #tpu.dot_dimension_numbers<[1], [0], [0], [1], [0, 0, 1, 1], [], []>} : vector<8x8xf32>, vector<8x16xf32>, vector<8x16xf32> -> vector<8x16xf32>
    %c1_430 = arith.constant 1 : index
    %c1_431 = arith.constant 1 : index
    %c0_432 = arith.constant 0 : index
    %c0_433 = arith.constant 0 : index
    %516 = vector.load %arg14[%c1_430, %c1_431, %c0_432, %c0_433] : memref<2x2x8x16xf32, #tpu.memory_space<vmem>>, vector<1x1x8x16xf32>
    %517 = vector.shape_cast %516 : vector<1x1x8x16xf32> to vector<8x16xf32>
    %cst_434 = arith.constant dense<0.000000e+00> : vector<8x16xf32>
    %518 = tpu.matmul %509, %517, %cst_434 {dimension_numbers = #tpu.dot_dimension_numbers<[1], [0], [0], [1], [0, 0, 1, 1], [], []>} : vector<8x8xf32>, vector<8x16xf32>, vector<8x16xf32> -> vector<8x16xf32>
    %519 = arith.addf %515, %518 : vector<8x16xf32>
    %520 = vector.extract_strided_slice %519 {offsets = [0, 0], sizes = [8, 8], strides = [1, 1]} : vector<8x16xf32> to vector<8x8xf32>
    %521 = vector.extract_strided_slice %519 {offsets = [0, 8], sizes = [8, 8], strides = [1, 1]} : vector<8x16xf32> to vector<8x8xf32>
    %c0_435 = arith.constant 0 : index
    %c0_436 = arith.constant 0 : index
    %c0_437 = arith.constant 0 : index
    %c0_438 = arith.constant 0 : index
    %522 = vector.load %arg22[%c0_435, %c0_436, %c0_437, %c0_438] : memref<2x2x1x8xf32, #tpu.memory_space<vmem>>, vector<1x1x1x8xf32>
    %523 = vector.shape_cast %522 : vector<1x1x1x8xf32> to vector<1x8xf32>
    %c0_439 = arith.constant 0 : index
    %c1_440 = arith.constant 1 : index
    %c0_441 = arith.constant 0 : index
    %c0_442 = arith.constant 0 : index
    %524 = vector.load %arg22[%c0_439, %c1_440, %c0_441, %c0_442] : memref<2x2x1x8xf32, #tpu.memory_space<vmem>>, vector<1x1x1x8xf32>
    %525 = vector.shape_cast %524 : vector<1x1x1x8xf32> to vector<1x8xf32>
    %526 = vector.broadcast %523 : vector<1x8xf32> to vector<8x8xf32>
    %527 = arith.addf %521, %526 : vector<8x8xf32>
    %528 = vector.broadcast %525 : vector<1x8xf32> to vector<8x8xf32>
    %529 = arith.mulf %528, %527 : vector<8x8xf32>
    %530 = math.absf %525 : vector<1x8xf32>
    %531 = math.log %530 : vector<1x8xf32>
    %cst_443 = arith.constant dense<0.000000e+00> : vector<1xf32>
    %532 = vector.multi_reduction <add>, %531, %cst_443 [1] : vector<1x8xf32> to vector<1xf32>
    %533 = vector.shape_cast %532 : vector<1xf32> to vector<1x1xf32>
    %534 = vector.broadcast %533 : vector<1x1xf32> to vector<8x1xf32>
    %535 = arith.addf %512, %534 : vector<8x1xf32>
    %cst_444 = arith.constant 0.000000e+00 : f32
    %536 = vector.broadcast %cst_444 : f32 to vector<8x8xf32>
    %537 = arith.cmpf oge, %529, %536 : vector<8x8xf32>
    %cst_445 = arith.constant 1.000000e+00 : f32
    %cst_446 = arith.constant 0.899999976 : f32
    %538 = vector.broadcast %cst_445 : f32 to vector<8x8xf32>
    %539 = vector.broadcast %cst_446 : f32 to vector<8x8xf32>
    %540 = arith.select %537, %538, %539 : vector<8x8xi1>, vector<8x8xf32>
    %541 = arith.mulf %529, %540 : vector<8x8xf32>
    %542 = vector.extract_strided_slice %541 {offsets = [0, 0], sizes = [8, 4], strides = [1, 1]} : vector<8x8xf32> to vector<8x4xf32>
    %543 = vector.extract_strided_slice %541 {offsets = [0, 4], sizes = [8, 4], strides = [1, 1]} : vector<8x8xf32> to vector<8x4xf32>
    %c0_447 = arith.constant 0 : index
    %c0_448 = arith.constant 0 : index
    %c0_449 = arith.constant 0 : index
    %544 = vector.load %arg24[%c0_447, %c0_448, %c0_449] : memref<4x4x32xf32, #tpu.memory_space<vmem>>, vector<1x4x32xf32>
    %545 = vector.shape_cast %544 : vector<1x4x32xf32> to vector<4x32xf32>
    %cst_450 = arith.constant dense<0.000000e+00> : vector<8x32xf32>
    %546 = tpu.matmul %542, %545, %cst_450 {dimension_numbers = #tpu.dot_dimension_numbers<[1], [0], [0], [1], [0, 0, 1, 1], [], []>} : vector<8x4xf32>, vector<4x32xf32>, vector<8x32xf32> -> vector<8x32xf32>
    %c0_451 = arith.constant 0 : index
    %c0_452 = arith.constant 0 : index
    %c0_453 = arith.constant 0 : index
    %547 = vector.load %arg25[%c0_451, %c0_452, %c0_453] : memref<4x32x32xf32, #tpu.memory_space<vmem>>, vector<1x32x32xf32>
    %548 = vector.shape_cast %547 : vector<1x32x32xf32> to vector<32x32xf32>
    %cst_454 = arith.constant dense<0.000000e+00> : vector<8x32xf32>
    %549 = tpu.matmul %7, %548, %cst_454 {dimension_numbers = #tpu.dot_dimension_numbers<[1], [0], [0], [1], [0, 0, 1, 1], [], []>} : vector<8x32xf32>, vector<32x32xf32>, vector<8x32xf32> -> vector<8x32xf32>
    %550 = arith.addf %546, %549 : vector<8x32xf32>
    %c0_455 = arith.constant 0 : index
    %c0_456 = arith.constant 0 : index
    %c0_457 = arith.constant 0 : index
    %551 = vector.load %arg26[%c0_455, %c0_456, %c0_457] : memref<4x1x32xf32, #tpu.memory_space<vmem>>, vector<1x1x32xf32>
    %552 = vector.shape_cast %551 : vector<1x1x32xf32> to vector<1x32xf32>
    %553 = vector.broadcast %552 : vector<1x32xf32> to vector<8x32xf32>
    %554 = arith.addf %550, %553 : vector<8x32xf32>
    %cst_458 = arith.constant 0.000000e+00 : f32
    %555 = vector.broadcast %cst_458 : f32 to vector<8x32xf32>
    %556 = arith.cmpf oge, %554, %555 : vector<8x32xf32>
    %cst_459 = arith.constant 0.00999999977 : f32
    %557 = vector.broadcast %cst_459 : f32 to vector<8x32xf32>
    %558 = arith.mulf %557, %554 : vector<8x32xf32>
    %559 = arith.select %556, %554, %558 : vector<8x32xi1>, vector<8x32xf32>
    %c0_460 = arith.constant 0 : index
    %c0_461 = arith.constant 0 : index
    %c0_462 = arith.constant 0 : index
    %c0_463 = arith.constant 0 : index
    %560 = vector.load %arg27[%c0_460, %c0_461, %c0_462, %c0_463] : memref<4x1x32x32xf32, #tpu.memory_space<vmem>>, vector<1x1x32x32xf32>
    %561 = vector.shape_cast %560 : vector<1x1x32x32xf32> to vector<32x32xf32>
    %cst_464 = arith.constant dense<0.000000e+00> : vector<8x32xf32>
    %562 = tpu.matmul %559, %561, %cst_464 {dimension_numbers = #tpu.dot_dimension_numbers<[1], [0], [0], [1], [0, 0, 1, 1], [], []>} : vector<8x32xf32>, vector<32x32xf32>, vector<8x32xf32> -> vector<8x32xf32>
    %c0_465 = arith.constant 0 : index
    %c0_466 = arith.constant 0 : index
    %c0_467 = arith.constant 0 : index
    %c0_468 = arith.constant 0 : index
    %563 = vector.load %arg28[%c0_465, %c0_466, %c0_467, %c0_468] : memref<4x1x1x32xf32, #tpu.memory_space<vmem>>, vector<1x1x1x32xf32>
    %564 = vector.shape_cast %563 : vector<1x1x1x32xf32> to vector<1x32xf32>
    %565 = vector.broadcast %564 : vector<1x32xf32> to vector<8x32xf32>
    %566 = arith.addf %562, %565 : vector<8x32xf32>
    %cst_469 = arith.constant 0.000000e+00 : f32
    %567 = vector.broadcast %cst_469 : f32 to vector<8x32xf32>
    %568 = arith.cmpf oge, %566, %567 : vector<8x32xf32>
    %cst_470 = arith.constant 0.00999999977 : f32
    %569 = vector.broadcast %cst_470 : f32 to vector<8x32xf32>
    %570 = arith.mulf %569, %566 : vector<8x32xf32>
    %571 = arith.select %568, %566, %570 : vector<8x32xi1>, vector<8x32xf32>
    %c0_471 = arith.constant 0 : index
    %c0_472 = arith.constant 0 : index
    %c0_473 = arith.constant 0 : index
    %c0_474 = arith.constant 0 : index
    %572 = vector.load %arg29[%c0_471, %c0_472, %c0_473, %c0_474] : memref<4x2x32x4xf32, #tpu.memory_space<vmem>>, vector<1x1x32x4xf32>
    %573 = vector.shape_cast %572 : vector<1x1x32x4xf32> to vector<32x4xf32>
    %cst_475 = arith.constant dense<0.000000e+00> : vector<8x4xf32>
    %574 = tpu.matmul %571, %573, %cst_475 {dimension_numbers = #tpu.dot_dimension_numbers<[1], [0], [0], [1], [0, 0, 1, 1], [], []>} : vector<8x32xf32>, vector<32x4xf32>, vector<8x4xf32> -> vector<8x4xf32>
    %c0_476 = arith.constant 0 : index
    %c0_477 = arith.constant 0 : index
    %c0_478 = arith.constant 0 : index
    %c0_479 = arith.constant 0 : index
    %575 = vector.load %arg30[%c0_476, %c0_477, %c0_478, %c0_479] : memref<4x2x1x4xf32, #tpu.memory_space<vmem>>, vector<1x1x1x4xf32>
    %576 = vector.shape_cast %575 : vector<1x1x1x4xf32> to vector<1x4xf32>
    %577 = vector.broadcast %576 : vector<1x4xf32> to vector<8x4xf32>
    %578 = arith.addf %574, %577 : vector<8x4xf32>
    %579 = math.tanh %578 : vector<8x4xf32>
    %c0_480 = arith.constant 0 : index
    %c1_481 = arith.constant 1 : index
    %c0_482 = arith.constant 0 : index
    %c0_483 = arith.constant 0 : index
    %580 = vector.load %arg29[%c0_480, %c1_481, %c0_482, %c0_483] : memref<4x2x32x4xf32, #tpu.memory_space<vmem>>, vector<1x1x32x4xf32>
    %581 = vector.shape_cast %580 : vector<1x1x32x4xf32> to vector<32x4xf32>
    %cst_484 = arith.constant dense<0.000000e+00> : vector<8x4xf32>
    %582 = tpu.matmul %571, %581, %cst_484 {dimension_numbers = #tpu.dot_dimension_numbers<[1], [0], [0], [1], [0, 0, 1, 1], [], []>} : vector<8x32xf32>, vector<32x4xf32>, vector<8x4xf32> -> vector<8x4xf32>
    %c0_485 = arith.constant 0 : index
    %c1_486 = arith.constant 1 : index
    %c0_487 = arith.constant 0 : index
    %c0_488 = arith.constant 0 : index
    %583 = vector.load %arg30[%c0_485, %c1_486, %c0_487, %c0_488] : memref<4x2x1x4xf32, #tpu.memory_space<vmem>>, vector<1x1x1x4xf32>
    %584 = vector.shape_cast %583 : vector<1x1x1x4xf32> to vector<1x4xf32>
    %585 = vector.broadcast %584 : vector<1x4xf32> to vector<8x4xf32>
    %586 = arith.addf %582, %585 : vector<8x4xf32>
    %587 = math.exp %579 : vector<8x4xf32>
    %588 = arith.mulf %543, %587 : vector<8x4xf32>
    %589 = arith.addf %588, %586 : vector<8x4xf32>
    %cst_489 = arith.constant dense<0.000000e+00> : vector<8xf32>
    %590 = vector.multi_reduction <add>, %579, %cst_489 [1] : vector<8x4xf32> to vector<8xf32>
    %591 = vector.shape_cast %590 : vector<8xf32> to vector<8x1xf32>
    %592 = arith.addf %535, %591 : vector<8x1xf32>
    %c1_490 = arith.constant 1 : index
    %c0_491 = arith.constant 0 : index
    %c0_492 = arith.constant 0 : index
    %593 = vector.load %arg24[%c1_490, %c0_491, %c0_492] : memref<4x4x32xf32, #tpu.memory_space<vmem>>, vector<1x4x32xf32>
    %594 = vector.shape_cast %593 : vector<1x4x32xf32> to vector<4x32xf32>
    %cst_493 = arith.constant dense<0.000000e+00> : vector<8x32xf32>
    %595 = tpu.matmul %589, %594, %cst_493 {dimension_numbers = #tpu.dot_dimension_numbers<[1], [0], [0], [1], [0, 0, 1, 1], [], []>} : vector<8x4xf32>, vector<4x32xf32>, vector<8x32xf32> -> vector<8x32xf32>
    %c1_494 = arith.constant 1 : index
    %c0_495 = arith.constant 0 : index
    %c0_496 = arith.constant 0 : index
    %596 = vector.load %arg25[%c1_494, %c0_495, %c0_496] : memref<4x32x32xf32, #tpu.memory_space<vmem>>, vector<1x32x32xf32>
    %597 = vector.shape_cast %596 : vector<1x32x32xf32> to vector<32x32xf32>
    %cst_497 = arith.constant dense<0.000000e+00> : vector<8x32xf32>
    %598 = tpu.matmul %7, %597, %cst_497 {dimension_numbers = #tpu.dot_dimension_numbers<[1], [0], [0], [1], [0, 0, 1, 1], [], []>} : vector<8x32xf32>, vector<32x32xf32>, vector<8x32xf32> -> vector<8x32xf32>
    %599 = arith.addf %595, %598 : vector<8x32xf32>
    %c1_498 = arith.constant 1 : index
    %c0_499 = arith.constant 0 : index
    %c0_500 = arith.constant 0 : index
    %600 = vector.load %arg26[%c1_498, %c0_499, %c0_500] : memref<4x1x32xf32, #tpu.memory_space<vmem>>, vector<1x1x32xf32>
    %601 = vector.shape_cast %600 : vector<1x1x32xf32> to vector<1x32xf32>
    %602 = vector.broadcast %601 : vector<1x32xf32> to vector<8x32xf32>
    %603 = arith.addf %599, %602 : vector<8x32xf32>
    %cst_501 = arith.constant 0.000000e+00 : f32
    %604 = vector.broadcast %cst_501 : f32 to vector<8x32xf32>
    %605 = arith.cmpf oge, %603, %604 : vector<8x32xf32>
    %cst_502 = arith.constant 0.00999999977 : f32
    %606 = vector.broadcast %cst_502 : f32 to vector<8x32xf32>
    %607 = arith.mulf %606, %603 : vector<8x32xf32>
    %608 = arith.select %605, %603, %607 : vector<8x32xi1>, vector<8x32xf32>
    %c1_503 = arith.constant 1 : index
    %c0_504 = arith.constant 0 : index
    %c0_505 = arith.constant 0 : index
    %c0_506 = arith.constant 0 : index
    %609 = vector.load %arg27[%c1_503, %c0_504, %c0_505, %c0_506] : memref<4x1x32x32xf32, #tpu.memory_space<vmem>>, vector<1x1x32x32xf32>
    %610 = vector.shape_cast %609 : vector<1x1x32x32xf32> to vector<32x32xf32>
    %cst_507 = arith.constant dense<0.000000e+00> : vector<8x32xf32>
    %611 = tpu.matmul %608, %610, %cst_507 {dimension_numbers = #tpu.dot_dimension_numbers<[1], [0], [0], [1], [0, 0, 1, 1], [], []>} : vector<8x32xf32>, vector<32x32xf32>, vector<8x32xf32> -> vector<8x32xf32>
    %c1_508 = arith.constant 1 : index
    %c0_509 = arith.constant 0 : index
    %c0_510 = arith.constant 0 : index
    %c0_511 = arith.constant 0 : index
    %612 = vector.load %arg28[%c1_508, %c0_509, %c0_510, %c0_511] : memref<4x1x1x32xf32, #tpu.memory_space<vmem>>, vector<1x1x1x32xf32>
    %613 = vector.shape_cast %612 : vector<1x1x1x32xf32> to vector<1x32xf32>
    %614 = vector.broadcast %613 : vector<1x32xf32> to vector<8x32xf32>
    %615 = arith.addf %611, %614 : vector<8x32xf32>
    %cst_512 = arith.constant 0.000000e+00 : f32
    %616 = vector.broadcast %cst_512 : f32 to vector<8x32xf32>
    %617 = arith.cmpf oge, %615, %616 : vector<8x32xf32>
    %cst_513 = arith.constant 0.00999999977 : f32
    %618 = vector.broadcast %cst_513 : f32 to vector<8x32xf32>
    %619 = arith.mulf %618, %615 : vector<8x32xf32>
    %620 = arith.select %617, %615, %619 : vector<8x32xi1>, vector<8x32xf32>
    %c1_514 = arith.constant 1 : index
    %c0_515 = arith.constant 0 : index
    %c0_516 = arith.constant 0 : index
    %c0_517 = arith.constant 0 : index
    %621 = vector.load %arg29[%c1_514, %c0_515, %c0_516, %c0_517] : memref<4x2x32x4xf32, #tpu.memory_space<vmem>>, vector<1x1x32x4xf32>
    %622 = vector.shape_cast %621 : vector<1x1x32x4xf32> to vector<32x4xf32>
    %cst_518 = arith.constant dense<0.000000e+00> : vector<8x4xf32>
    %623 = tpu.matmul %620, %622, %cst_518 {dimension_numbers = #tpu.dot_dimension_numbers<[1], [0], [0], [1], [0, 0, 1, 1], [], []>} : vector<8x32xf32>, vector<32x4xf32>, vector<8x4xf32> -> vector<8x4xf32>
    %c1_519 = arith.constant 1 : index
    %c0_520 = arith.constant 0 : index
    %c0_521 = arith.constant 0 : index
    %c0_522 = arith.constant 0 : index
    %624 = vector.load %arg30[%c1_519, %c0_520, %c0_521, %c0_522] : memref<4x2x1x4xf32, #tpu.memory_space<vmem>>, vector<1x1x1x4xf32>
    %625 = vector.shape_cast %624 : vector<1x1x1x4xf32> to vector<1x4xf32>
    %626 = vector.broadcast %625 : vector<1x4xf32> to vector<8x4xf32>
    %627 = arith.addf %623, %626 : vector<8x4xf32>
    %628 = math.tanh %627 : vector<8x4xf32>
    %c1_523 = arith.constant 1 : index
    %c1_524 = arith.constant 1 : index
    %c0_525 = arith.constant 0 : index
    %c0_526 = arith.constant 0 : index
    %629 = vector.load %arg29[%c1_523, %c1_524, %c0_525, %c0_526] : memref<4x2x32x4xf32, #tpu.memory_space<vmem>>, vector<1x1x32x4xf32>
    %630 = vector.shape_cast %629 : vector<1x1x32x4xf32> to vector<32x4xf32>
    %cst_527 = arith.constant dense<0.000000e+00> : vector<8x4xf32>
    %631 = tpu.matmul %620, %630, %cst_527 {dimension_numbers = #tpu.dot_dimension_numbers<[1], [0], [0], [1], [0, 0, 1, 1], [], []>} : vector<8x32xf32>, vector<32x4xf32>, vector<8x4xf32> -> vector<8x4xf32>
    %c1_528 = arith.constant 1 : index
    %c1_529 = arith.constant 1 : index
    %c0_530 = arith.constant 0 : index
    %c0_531 = arith.constant 0 : index
    %632 = vector.load %arg30[%c1_528, %c1_529, %c0_530, %c0_531] : memref<4x2x1x4xf32, #tpu.memory_space<vmem>>, vector<1x1x1x4xf32>
    %633 = vector.shape_cast %632 : vector<1x1x1x4xf32> to vector<1x4xf32>
    %634 = vector.broadcast %633 : vector<1x4xf32> to vector<8x4xf32>
    %635 = arith.addf %631, %634 : vector<8x4xf32>
    %636 = math.exp %628 : vector<8x4xf32>
    %637 = arith.mulf %542, %636 : vector<8x4xf32>
    %638 = arith.addf %637, %635 : vector<8x4xf32>
    %cst_532 = arith.constant dense<0.000000e+00> : vector<8xf32>
    %639 = vector.multi_reduction <add>, %628, %cst_532 [1] : vector<8x4xf32> to vector<8xf32>
    %640 = vector.shape_cast %639 : vector<8xf32> to vector<8x1xf32>
    %641 = arith.addf %592, %640 : vector<8x1xf32>
    %c0_533 = arith.constant 0 : index
    %c0_534 = arith.constant 0 : index
    %c0_535 = arith.constant 0 : index
    %c0_536 = arith.constant 0 : index
    %642 = vector.load %arg23[%c0_533, %c0_534, %c0_535, %c0_536] : memref<2x2x4x8xf32, #tpu.memory_space<vmem>>, vector<1x1x4x8xf32>
    %643 = vector.shape_cast %642 : vector<1x1x4x8xf32> to vector<4x8xf32>
    %cst_537 = arith.constant dense<0.000000e+00> : vector<8x8xf32>
    %644 = tpu.matmul %589, %643, %cst_537 {dimension_numbers = #tpu.dot_dimension_numbers<[1], [0], [0], [1], [0, 0, 1, 1], [], []>} : vector<8x4xf32>, vector<4x8xf32>, vector<8x8xf32> -> vector<8x8xf32>
    %c0_538 = arith.constant 0 : index
    %c1_539 = arith.constant 1 : index
    %c0_540 = arith.constant 0 : index
    %c0_541 = arith.constant 0 : index
    %645 = vector.load %arg23[%c0_538, %c1_539, %c0_540, %c0_541] : memref<2x2x4x8xf32, #tpu.memory_space<vmem>>, vector<1x1x4x8xf32>
    %646 = vector.shape_cast %645 : vector<1x1x4x8xf32> to vector<4x8xf32>
    %cst_542 = arith.constant dense<0.000000e+00> : vector<8x8xf32>
    %647 = tpu.matmul %638, %646, %cst_542 {dimension_numbers = #tpu.dot_dimension_numbers<[1], [0], [0], [1], [0, 0, 1, 1], [], []>} : vector<8x4xf32>, vector<4x8xf32>, vector<8x8xf32> -> vector<8x8xf32>
    %648 = arith.addf %644, %647 : vector<8x8xf32>
    %c1_543 = arith.constant 1 : index
    %c0_544 = arith.constant 0 : index
    %c0_545 = arith.constant 0 : index
    %c0_546 = arith.constant 0 : index
    %649 = vector.load %arg22[%c1_543, %c0_544, %c0_545, %c0_546] : memref<2x2x1x8xf32, #tpu.memory_space<vmem>>, vector<1x1x1x8xf32>
    %650 = vector.shape_cast %649 : vector<1x1x1x8xf32> to vector<1x8xf32>
    %c1_547 = arith.constant 1 : index
    %c1_548 = arith.constant 1 : index
    %c0_549 = arith.constant 0 : index
    %c0_550 = arith.constant 0 : index
    %651 = vector.load %arg22[%c1_547, %c1_548, %c0_549, %c0_550] : memref<2x2x1x8xf32, #tpu.memory_space<vmem>>, vector<1x1x1x8xf32>
    %652 = vector.shape_cast %651 : vector<1x1x1x8xf32> to vector<1x8xf32>
    %653 = vector.broadcast %650 : vector<1x8xf32> to vector<8x8xf32>
    %654 = arith.addf %648, %653 : vector<8x8xf32>
    %655 = vector.broadcast %652 : vector<1x8xf32> to vector<8x8xf32>
    %656 = arith.mulf %655, %654 : vector<8x8xf32>
    %657 = math.absf %652 : vector<1x8xf32>
    %658 = math.log %657 : vector<1x8xf32>
    %cst_551 = arith.constant dense<0.000000e+00> : vector<1xf32>
    %659 = vector.multi_reduction <add>, %658, %cst_551 [1] : vector<1x8xf32> to vector<1xf32>
    %660 = vector.shape_cast %659 : vector<1xf32> to vector<1x1xf32>
    %661 = vector.broadcast %660 : vector<1x1xf32> to vector<8x1xf32>
    %662 = arith.addf %641, %661 : vector<8x1xf32>
    %cst_552 = arith.constant 0.000000e+00 : f32
    %663 = vector.broadcast %cst_552 : f32 to vector<8x8xf32>
    %664 = arith.cmpf oge, %656, %663 : vector<8x8xf32>
    %cst_553 = arith.constant 1.000000e+00 : f32
    %cst_554 = arith.constant 0.899999976 : f32
    %665 = vector.broadcast %cst_553 : f32 to vector<8x8xf32>
    %666 = vector.broadcast %cst_554 : f32 to vector<8x8xf32>
    %667 = arith.select %664, %665, %666 : vector<8x8xi1>, vector<8x8xf32>
    %668 = arith.mulf %656, %667 : vector<8x8xf32>
    %669 = vector.extract_strided_slice %668 {offsets = [0, 0], sizes = [8, 4], strides = [1, 1]} : vector<8x8xf32> to vector<8x4xf32>
    %670 = vector.extract_strided_slice %668 {offsets = [0, 4], sizes = [8, 4], strides = [1, 1]} : vector<8x8xf32> to vector<8x4xf32>
    %c2_555 = arith.constant 2 : index
    %c0_556 = arith.constant 0 : index
    %c0_557 = arith.constant 0 : index
    %671 = vector.load %arg24[%c2_555, %c0_556, %c0_557] : memref<4x4x32xf32, #tpu.memory_space<vmem>>, vector<1x4x32xf32>
    %672 = vector.shape_cast %671 : vector<1x4x32xf32> to vector<4x32xf32>
    %cst_558 = arith.constant dense<0.000000e+00> : vector<8x32xf32>
    %673 = tpu.matmul %669, %672, %cst_558 {dimension_numbers = #tpu.dot_dimension_numbers<[1], [0], [0], [1], [0, 0, 1, 1], [], []>} : vector<8x4xf32>, vector<4x32xf32>, vector<8x32xf32> -> vector<8x32xf32>
    %c2_559 = arith.constant 2 : index
    %c0_560 = arith.constant 0 : index
    %c0_561 = arith.constant 0 : index
    %674 = vector.load %arg25[%c2_559, %c0_560, %c0_561] : memref<4x32x32xf32, #tpu.memory_space<vmem>>, vector<1x32x32xf32>
    %675 = vector.shape_cast %674 : vector<1x32x32xf32> to vector<32x32xf32>
    %cst_562 = arith.constant dense<0.000000e+00> : vector<8x32xf32>
    %676 = tpu.matmul %7, %675, %cst_562 {dimension_numbers = #tpu.dot_dimension_numbers<[1], [0], [0], [1], [0, 0, 1, 1], [], []>} : vector<8x32xf32>, vector<32x32xf32>, vector<8x32xf32> -> vector<8x32xf32>
    %677 = arith.addf %673, %676 : vector<8x32xf32>
    %c2_563 = arith.constant 2 : index
    %c0_564 = arith.constant 0 : index
    %c0_565 = arith.constant 0 : index
    %678 = vector.load %arg26[%c2_563, %c0_564, %c0_565] : memref<4x1x32xf32, #tpu.memory_space<vmem>>, vector<1x1x32xf32>
    %679 = vector.shape_cast %678 : vector<1x1x32xf32> to vector<1x32xf32>
    %680 = vector.broadcast %679 : vector<1x32xf32> to vector<8x32xf32>
    %681 = arith.addf %677, %680 : vector<8x32xf32>
    %cst_566 = arith.constant 0.000000e+00 : f32
    %682 = vector.broadcast %cst_566 : f32 to vector<8x32xf32>
    %683 = arith.cmpf oge, %681, %682 : vector<8x32xf32>
    %cst_567 = arith.constant 0.00999999977 : f32
    %684 = vector.broadcast %cst_567 : f32 to vector<8x32xf32>
    %685 = arith.mulf %684, %681 : vector<8x32xf32>
    %686 = arith.select %683, %681, %685 : vector<8x32xi1>, vector<8x32xf32>
    %c2_568 = arith.constant 2 : index
    %c0_569 = arith.constant 0 : index
    %c0_570 = arith.constant 0 : index
    %c0_571 = arith.constant 0 : index
    %687 = vector.load %arg27[%c2_568, %c0_569, %c0_570, %c0_571] : memref<4x1x32x32xf32, #tpu.memory_space<vmem>>, vector<1x1x32x32xf32>
    %688 = vector.shape_cast %687 : vector<1x1x32x32xf32> to vector<32x32xf32>
    %cst_572 = arith.constant dense<0.000000e+00> : vector<8x32xf32>
    %689 = tpu.matmul %686, %688, %cst_572 {dimension_numbers = #tpu.dot_dimension_numbers<[1], [0], [0], [1], [0, 0, 1, 1], [], []>} : vector<8x32xf32>, vector<32x32xf32>, vector<8x32xf32> -> vector<8x32xf32>
    %c2_573 = arith.constant 2 : index
    %c0_574 = arith.constant 0 : index
    %c0_575 = arith.constant 0 : index
    %c0_576 = arith.constant 0 : index
    %690 = vector.load %arg28[%c2_573, %c0_574, %c0_575, %c0_576] : memref<4x1x1x32xf32, #tpu.memory_space<vmem>>, vector<1x1x1x32xf32>
    %691 = vector.shape_cast %690 : vector<1x1x1x32xf32> to vector<1x32xf32>
    %692 = vector.broadcast %691 : vector<1x32xf32> to vector<8x32xf32>
    %693 = arith.addf %689, %692 : vector<8x32xf32>
    %cst_577 = arith.constant 0.000000e+00 : f32
    %694 = vector.broadcast %cst_577 : f32 to vector<8x32xf32>
    %695 = arith.cmpf oge, %693, %694 : vector<8x32xf32>
    %cst_578 = arith.constant 0.00999999977 : f32
    %696 = vector.broadcast %cst_578 : f32 to vector<8x32xf32>
    %697 = arith.mulf %696, %693 : vector<8x32xf32>
    %698 = arith.select %695, %693, %697 : vector<8x32xi1>, vector<8x32xf32>
    %c2_579 = arith.constant 2 : index
    %c0_580 = arith.constant 0 : index
    %c0_581 = arith.constant 0 : index
    %c0_582 = arith.constant 0 : index
    %699 = vector.load %arg29[%c2_579, %c0_580, %c0_581, %c0_582] : memref<4x2x32x4xf32, #tpu.memory_space<vmem>>, vector<1x1x32x4xf32>
    %700 = vector.shape_cast %699 : vector<1x1x32x4xf32> to vector<32x4xf32>
    %cst_583 = arith.constant dense<0.000000e+00> : vector<8x4xf32>
    %701 = tpu.matmul %698, %700, %cst_583 {dimension_numbers = #tpu.dot_dimension_numbers<[1], [0], [0], [1], [0, 0, 1, 1], [], []>} : vector<8x32xf32>, vector<32x4xf32>, vector<8x4xf32> -> vector<8x4xf32>
    %c2_584 = arith.constant 2 : index
    %c0_585 = arith.constant 0 : index
    %c0_586 = arith.constant 0 : index
    %c0_587 = arith.constant 0 : index
    %702 = vector.load %arg30[%c2_584, %c0_585, %c0_586, %c0_587] : memref<4x2x1x4xf32, #tpu.memory_space<vmem>>, vector<1x1x1x4xf32>
    %703 = vector.shape_cast %702 : vector<1x1x1x4xf32> to vector<1x4xf32>
    %704 = vector.broadcast %703 : vector<1x4xf32> to vector<8x4xf32>
    %705 = arith.addf %701, %704 : vector<8x4xf32>
    %706 = math.tanh %705 : vector<8x4xf32>
    %c2_588 = arith.constant 2 : index
    %c1_589 = arith.constant 1 : index
    %c0_590 = arith.constant 0 : index
    %c0_591 = arith.constant 0 : index
    %707 = vector.load %arg29[%c2_588, %c1_589, %c0_590, %c0_591] : memref<4x2x32x4xf32, #tpu.memory_space<vmem>>, vector<1x1x32x4xf32>
    %708 = vector.shape_cast %707 : vector<1x1x32x4xf32> to vector<32x4xf32>
    %cst_592 = arith.constant dense<0.000000e+00> : vector<8x4xf32>
    %709 = tpu.matmul %698, %708, %cst_592 {dimension_numbers = #tpu.dot_dimension_numbers<[1], [0], [0], [1], [0, 0, 1, 1], [], []>} : vector<8x32xf32>, vector<32x4xf32>, vector<8x4xf32> -> vector<8x4xf32>
    %c2_593 = arith.constant 2 : index
    %c1_594 = arith.constant 1 : index
    %c0_595 = arith.constant 0 : index
    %c0_596 = arith.constant 0 : index
    %710 = vector.load %arg30[%c2_593, %c1_594, %c0_595, %c0_596] : memref<4x2x1x4xf32, #tpu.memory_space<vmem>>, vector<1x1x1x4xf32>
    %711 = vector.shape_cast %710 : vector<1x1x1x4xf32> to vector<1x4xf32>
    %712 = vector.broadcast %711 : vector<1x4xf32> to vector<8x4xf32>
    %713 = arith.addf %709, %712 : vector<8x4xf32>
    %714 = math.exp %706 : vector<8x4xf32>
    %715 = arith.mulf %670, %714 : vector<8x4xf32>
    %716 = arith.addf %715, %713 : vector<8x4xf32>
    %cst_597 = arith.constant dense<0.000000e+00> : vector<8xf32>
    %717 = vector.multi_reduction <add>, %706, %cst_597 [1] : vector<8x4xf32> to vector<8xf32>
    %718 = vector.shape_cast %717 : vector<8xf32> to vector<8x1xf32>
    %719 = arith.addf %662, %718 : vector<8x1xf32>
    %c3_598 = arith.constant 3 : index
    %c0_599 = arith.constant 0 : index
    %c0_600 = arith.constant 0 : index
    %720 = vector.load %arg24[%c3_598, %c0_599, %c0_600] : memref<4x4x32xf32, #tpu.memory_space<vmem>>, vector<1x4x32xf32>
    %721 = vector.shape_cast %720 : vector<1x4x32xf32> to vector<4x32xf32>
    %cst_601 = arith.constant dense<0.000000e+00> : vector<8x32xf32>
    %722 = tpu.matmul %716, %721, %cst_601 {dimension_numbers = #tpu.dot_dimension_numbers<[1], [0], [0], [1], [0, 0, 1, 1], [], []>} : vector<8x4xf32>, vector<4x32xf32>, vector<8x32xf32> -> vector<8x32xf32>
    %c3_602 = arith.constant 3 : index
    %c0_603 = arith.constant 0 : index
    %c0_604 = arith.constant 0 : index
    %723 = vector.load %arg25[%c3_602, %c0_603, %c0_604] : memref<4x32x32xf32, #tpu.memory_space<vmem>>, vector<1x32x32xf32>
    %724 = vector.shape_cast %723 : vector<1x32x32xf32> to vector<32x32xf32>
    %cst_605 = arith.constant dense<0.000000e+00> : vector<8x32xf32>
    %725 = tpu.matmul %7, %724, %cst_605 {dimension_numbers = #tpu.dot_dimension_numbers<[1], [0], [0], [1], [0, 0, 1, 1], [], []>} : vector<8x32xf32>, vector<32x32xf32>, vector<8x32xf32> -> vector<8x32xf32>
    %726 = arith.addf %722, %725 : vector<8x32xf32>
    %c3_606 = arith.constant 3 : index
    %c0_607 = arith.constant 0 : index
    %c0_608 = arith.constant 0 : index
    %727 = vector.load %arg26[%c3_606, %c0_607, %c0_608] : memref<4x1x32xf32, #tpu.memory_space<vmem>>, vector<1x1x32xf32>
    %728 = vector.shape_cast %727 : vector<1x1x32xf32> to vector<1x32xf32>
    %729 = vector.broadcast %728 : vector<1x32xf32> to vector<8x32xf32>
    %730 = arith.addf %726, %729 : vector<8x32xf32>
    %cst_609 = arith.constant 0.000000e+00 : f32
    %731 = vector.broadcast %cst_609 : f32 to vector<8x32xf32>
    %732 = arith.cmpf oge, %730, %731 : vector<8x32xf32>
    %cst_610 = arith.constant 0.00999999977 : f32
    %733 = vector.broadcast %cst_610 : f32 to vector<8x32xf32>
    %734 = arith.mulf %733, %730 : vector<8x32xf32>
    %735 = arith.select %732, %730, %734 : vector<8x32xi1>, vector<8x32xf32>
    %c3_611 = arith.constant 3 : index
    %c0_612 = arith.constant 0 : index
    %c0_613 = arith.constant 0 : index
    %c0_614 = arith.constant 0 : index
    %736 = vector.load %arg27[%c3_611, %c0_612, %c0_613, %c0_614] : memref<4x1x32x32xf32, #tpu.memory_space<vmem>>, vector<1x1x32x32xf32>
    %737 = vector.shape_cast %736 : vector<1x1x32x32xf32> to vector<32x32xf32>
    %cst_615 = arith.constant dense<0.000000e+00> : vector<8x32xf32>
    %738 = tpu.matmul %735, %737, %cst_615 {dimension_numbers = #tpu.dot_dimension_numbers<[1], [0], [0], [1], [0, 0, 1, 1], [], []>} : vector<8x32xf32>, vector<32x32xf32>, vector<8x32xf32> -> vector<8x32xf32>
    %c3_616 = arith.constant 3 : index
    %c0_617 = arith.constant 0 : index
    %c0_618 = arith.constant 0 : index
    %c0_619 = arith.constant 0 : index
    %739 = vector.load %arg28[%c3_616, %c0_617, %c0_618, %c0_619] : memref<4x1x1x32xf32, #tpu.memory_space<vmem>>, vector<1x1x1x32xf32>
    %740 = vector.shape_cast %739 : vector<1x1x1x32xf32> to vector<1x32xf32>
    %741 = vector.broadcast %740 : vector<1x32xf32> to vector<8x32xf32>
    %742 = arith.addf %738, %741 : vector<8x32xf32>
    %cst_620 = arith.constant 0.000000e+00 : f32
    %743 = vector.broadcast %cst_620 : f32 to vector<8x32xf32>
    %744 = arith.cmpf oge, %742, %743 : vector<8x32xf32>
    %cst_621 = arith.constant 0.00999999977 : f32
    %745 = vector.broadcast %cst_621 : f32 to vector<8x32xf32>
    %746 = arith.mulf %745, %742 : vector<8x32xf32>
    %747 = arith.select %744, %742, %746 : vector<8x32xi1>, vector<8x32xf32>
    %c3_622 = arith.constant 3 : index
    %c0_623 = arith.constant 0 : index
    %c0_624 = arith.constant 0 : index
    %c0_625 = arith.constant 0 : index
    %748 = vector.load %arg29[%c3_622, %c0_623, %c0_624, %c0_625] : memref<4x2x32x4xf32, #tpu.memory_space<vmem>>, vector<1x1x32x4xf32>
    %749 = vector.shape_cast %748 : vector<1x1x32x4xf32> to vector<32x4xf32>
    %cst_626 = arith.constant dense<0.000000e+00> : vector<8x4xf32>
    %750 = tpu.matmul %747, %749, %cst_626 {dimension_numbers = #tpu.dot_dimension_numbers<[1], [0], [0], [1], [0, 0, 1, 1], [], []>} : vector<8x32xf32>, vector<32x4xf32>, vector<8x4xf32> -> vector<8x4xf32>
    %c3_627 = arith.constant 3 : index
    %c0_628 = arith.constant 0 : index
    %c0_629 = arith.constant 0 : index
    %c0_630 = arith.constant 0 : index
    %751 = vector.load %arg30[%c3_627, %c0_628, %c0_629, %c0_630] : memref<4x2x1x4xf32, #tpu.memory_space<vmem>>, vector<1x1x1x4xf32>
    %752 = vector.shape_cast %751 : vector<1x1x1x4xf32> to vector<1x4xf32>
    %753 = vector.broadcast %752 : vector<1x4xf32> to vector<8x4xf32>
    %754 = arith.addf %750, %753 : vector<8x4xf32>
    %755 = math.tanh %754 : vector<8x4xf32>
    %c3_631 = arith.constant 3 : index
    %c1_632 = arith.constant 1 : index
    %c0_633 = arith.constant 0 : index
    %c0_634 = arith.constant 0 : index
    %756 = vector.load %arg29[%c3_631, %c1_632, %c0_633, %c0_634] : memref<4x2x32x4xf32, #tpu.memory_space<vmem>>, vector<1x1x32x4xf32>
    %757 = vector.shape_cast %756 : vector<1x1x32x4xf32> to vector<32x4xf32>
    %cst_635 = arith.constant dense<0.000000e+00> : vector<8x4xf32>
    %758 = tpu.matmul %747, %757, %cst_635 {dimension_numbers = #tpu.dot_dimension_numbers<[1], [0], [0], [1], [0, 0, 1, 1], [], []>} : vector<8x32xf32>, vector<32x4xf32>, vector<8x4xf32> -> vector<8x4xf32>
    %c3_636 = arith.constant 3 : index
    %c1_637 = arith.constant 1 : index
    %c0_638 = arith.constant 0 : index
    %c0_639 = arith.constant 0 : index
    %759 = vector.load %arg30[%c3_636, %c1_637, %c0_638, %c0_639] : memref<4x2x1x4xf32, #tpu.memory_space<vmem>>, vector<1x1x1x4xf32>
    %760 = vector.shape_cast %759 : vector<1x1x1x4xf32> to vector<1x4xf32>
    %761 = vector.broadcast %760 : vector<1x4xf32> to vector<8x4xf32>
    %762 = arith.addf %758, %761 : vector<8x4xf32>
    %763 = math.exp %755 : vector<8x4xf32>
    %764 = arith.mulf %669, %763 : vector<8x4xf32>
    %765 = arith.addf %764, %762 : vector<8x4xf32>
    %cst_640 = arith.constant dense<0.000000e+00> : vector<8xf32>
    %766 = vector.multi_reduction <add>, %755, %cst_640 [1] : vector<8x4xf32> to vector<8xf32>
    %767 = vector.shape_cast %766 : vector<8xf32> to vector<8x1xf32>
    %768 = arith.addf %719, %767 : vector<8x1xf32>
    %c1_641 = arith.constant 1 : index
    %c0_642 = arith.constant 0 : index
    %c0_643 = arith.constant 0 : index
    %c0_644 = arith.constant 0 : index
    %769 = vector.load %arg23[%c1_641, %c0_642, %c0_643, %c0_644] : memref<2x2x4x8xf32, #tpu.memory_space<vmem>>, vector<1x1x4x8xf32>
    %770 = vector.shape_cast %769 : vector<1x1x4x8xf32> to vector<4x8xf32>
    %cst_645 = arith.constant dense<0.000000e+00> : vector<8x8xf32>
    %771 = tpu.matmul %716, %770, %cst_645 {dimension_numbers = #tpu.dot_dimension_numbers<[1], [0], [0], [1], [0, 0, 1, 1], [], []>} : vector<8x4xf32>, vector<4x8xf32>, vector<8x8xf32> -> vector<8x8xf32>
    %c1_646 = arith.constant 1 : index
    %c1_647 = arith.constant 1 : index
    %c0_648 = arith.constant 0 : index
    %c0_649 = arith.constant 0 : index
    %772 = vector.load %arg23[%c1_646, %c1_647, %c0_648, %c0_649] : memref<2x2x4x8xf32, #tpu.memory_space<vmem>>, vector<1x1x4x8xf32>
    %773 = vector.shape_cast %772 : vector<1x1x4x8xf32> to vector<4x8xf32>
    %cst_650 = arith.constant dense<0.000000e+00> : vector<8x8xf32>
    %774 = tpu.matmul %765, %773, %cst_650 {dimension_numbers = #tpu.dot_dimension_numbers<[1], [0], [0], [1], [0, 0, 1, 1], [], []>} : vector<8x4xf32>, vector<4x8xf32>, vector<8x8xf32> -> vector<8x8xf32>
    %775 = arith.addf %771, %774 : vector<8x8xf32>
    %776 = tpu.concatenate %264, %520, %775 in 1 : vector<8x8xf32>, vector<8x8xf32>, vector<8x8xf32> -> vector<8x24xf32>
    %c0_651 = arith.constant 0 : index
    %c0_652 = arith.constant 0 : index
    %777 = vector.load %arg31[%c0_651, %c0_652] : memref<8x24xf32, #tpu.memory_space<vmem>>, vector<8x24xf32>
    tpu.vector_store %arg31[%c0_651, %c0_652], %776 {strides = array<i32>} : memref<8x24xf32, #tpu.memory_space<vmem>>, vector<8x24xf32>,
    %c0_653 = arith.constant 0 : index
    %c0_654 = arith.constant 0 : index
    %778 = vector.load %arg32[%c0_653, %c0_654] : memref<8x1xf32, #tpu.memory_space<vmem>>, vector<8x1xf32>
    tpu.vector_store %arg32[%c0_653, %c0_654], %768 {strides = array<i32>} : memref<8x1xf32, #tpu.memory_space<vmem>>, vector<8x1xf32>,
    return
  }
  func.func @transform_0(%arg0: i32) -> (i32, i32) {
    %c0_i32 = arith.constant 0 : i32
    %c0_i32_0 = arith.constant 0 : i32
    return %arg0, %c0_i32 : i32, i32
  }
  func.func @transform_1(%arg0: i32) -> (i32, i32) {
    %c0_i32 = arith.constant 0 : i32
    %c0_i32_0 = arith.constant 0 : i32
    return %arg0, %c0_i32 : i32, i32
  }
  func.func @transform_2(%arg0: i32) -> (i32, i32) {
    %c0_i32 = arith.constant 0 : i32
    %c0_i32_0 = arith.constant 0 : i32
    %c0_i32_1 = arith.constant 0 : i32
    return %c0_i32, %c0_i32_0 : i32, i32
  }
  func.func @transform_3(%arg0: i32) -> (i32, i32, i32, i32) {
    %c0_i32 = arith.constant 0 : i32
    %c0_i32_0 = arith.constant 0 : i32
    %c0_i32_1 = arith.constant 0 : i32
    %c0_i32_2 = arith.constant 0 : i32
    %c0_i32_3 = arith.constant 0 : i32
    return %c0_i32, %c0_i32_0, %c0_i32_1, %c0_i32_2 : i32, i32, i32, i32
  }
  func.func @transform_4(%arg0: i32) -> (i32, i32, i32, i32) {
    %c0_i32 = arith.constant 0 : i32
    %c0_i32_0 = arith.constant 0 : i32
    %c0_i32_1 = arith.constant 0 : i32
    %c0_i32_2 = arith.constant 0 : i32
    %c0_i32_3 = arith.constant 0 : i32
    return %c0_i32, %c0_i32_0, %c0_i32_1, %c0_i32_2 : i32, i32, i32, i32
  }
  func.func @transform_5(%arg0: i32) -> (i32, i32, i32) {
    %c0_i32 = arith.constant 0 : i32
    %c0_i32_0 = arith.constant 0 : i32
    %c0_i32_1 = arith.constant 0 : i32
    %c0_i32_2 = arith.constant 0 : i32
    return %c0_i32, %c0_i32_0, %c0_i32_1 : i32, i32, i32
  }
  func.func @transform_6(%arg0: i32) -> (i32, i32, i32) {
    %c0_i32 = arith.constant 0 : i32
    %c0_i32_0 = arith.constant 0 : i32
    %c0_i32_1 = arith.constant 0 : i32
    %c0_i32_2 = arith.constant 0 : i32
    return %c0_i32, %c0_i32_0, %c0_i32_1 : i32, i32, i32
  }
  func.func @transform_7(%arg0: i32) -> (i32, i32, i32) {
    %c0_i32 = arith.constant 0 : i32
    %c0_i32_0 = arith.constant 0 : i32
    %c0_i32_1 = arith.constant 0 : i32
    %c0_i32_2 = arith.constant 0 : i32
    return %c0_i32, %c0_i32_0, %c0_i32_1 : i32, i32, i32
  }
  func.func @transform_8(%arg0: i32) -> (i32, i32, i32, i32) {
    %c0_i32 = arith.constant 0 : i32
    %c0_i32_0 = arith.constant 0 : i32
    %c0_i32_1 = arith.constant 0 : i32
    %c0_i32_2 = arith.constant 0 : i32
    %c0_i32_3 = arith.constant 0 : i32
    return %c0_i32, %c0_i32_0, %c0_i32_1, %c0_i32_2 : i32, i32, i32, i32
  }
  func.func @transform_9(%arg0: i32) -> (i32, i32, i32, i32) {
    %c0_i32 = arith.constant 0 : i32
    %c0_i32_0 = arith.constant 0 : i32
    %c0_i32_1 = arith.constant 0 : i32
    %c0_i32_2 = arith.constant 0 : i32
    %c0_i32_3 = arith.constant 0 : i32
    return %c0_i32, %c0_i32_0, %c0_i32_1, %c0_i32_2 : i32, i32, i32, i32
  }
  func.func @transform_10(%arg0: i32) -> (i32, i32, i32, i32) {
    %c0_i32 = arith.constant 0 : i32
    %c0_i32_0 = arith.constant 0 : i32
    %c0_i32_1 = arith.constant 0 : i32
    %c0_i32_2 = arith.constant 0 : i32
    %c0_i32_3 = arith.constant 0 : i32
    return %c0_i32, %c0_i32_0, %c0_i32_1, %c0_i32_2 : i32, i32, i32, i32
  }
  func.func @transform_11(%arg0: i32) -> (i32, i32, i32, i32) {
    %c0_i32 = arith.constant 0 : i32
    %c0_i32_0 = arith.constant 0 : i32
    %c0_i32_1 = arith.constant 0 : i32
    %c0_i32_2 = arith.constant 0 : i32
    %c0_i32_3 = arith.constant 0 : i32
    return %c0_i32, %c0_i32_0, %c0_i32_1, %c0_i32_2 : i32, i32, i32, i32
  }
  func.func @transform_12(%arg0: i32) -> (i32, i32, i32, i32) {
    %c0_i32 = arith.constant 0 : i32
    %c0_i32_0 = arith.constant 0 : i32
    %c0_i32_1 = arith.constant 0 : i32
    %c0_i32_2 = arith.constant 0 : i32
    %c0_i32_3 = arith.constant 0 : i32
    return %c0_i32, %c0_i32_0, %c0_i32_1, %c0_i32_2 : i32, i32, i32, i32
  }
  func.func @transform_13(%arg0: i32) -> (i32, i32, i32, i32) {
    %c0_i32 = arith.constant 0 : i32
    %c0_i32_0 = arith.constant 0 : i32
    %c0_i32_1 = arith.constant 0 : i32
    %c0_i32_2 = arith.constant 0 : i32
    %c0_i32_3 = arith.constant 0 : i32
    return %c0_i32, %c0_i32_0, %c0_i32_1, %c0_i32_2 : i32, i32, i32, i32
  }
  func.func @transform_14(%arg0: i32) -> (i32, i32, i32) {
    %c0_i32 = arith.constant 0 : i32
    %c0_i32_0 = arith.constant 0 : i32
    %c0_i32_1 = arith.constant 0 : i32
    %c0_i32_2 = arith.constant 0 : i32
    return %c0_i32, %c0_i32_0, %c0_i32_1 : i32, i32, i32
  }
  func.func @transform_15(%arg0: i32) -> (i32, i32, i32) {
    %c0_i32 = arith.constant 0 : i32
    %c0_i32_0 = arith.constant 0 : i32
    %c0_i32_1 = arith.constant 0 : i32
    %c0_i32_2 = arith.constant 0 : i32
    return %c0_i32, %c0_i32_0, %c0_i32_1 : i32, i32, i32
  }
  func.func @transform_16(%arg0: i32) -> (i32, i32, i32) {
    %c0_i32 = arith.constant 0 : i32
    %c0_i32_0 = arith.constant 0 : i32
    %c0_i32_1 = arith.constant 0 : i32
    %c0_i32_2 = arith.constant 0 : i32
    return %c0_i32, %c0_i32_0, %c0_i32_1 : i32, i32, i32
  }
  func.func @transform_17(%arg0: i32) -> (i32, i32, i32, i32) {
    %c0_i32 = arith.constant 0 : i32
    %c0_i32_0 = arith.constant 0 : i32
    %c0_i32_1 = arith.constant 0 : i32
    %c0_i32_2 = arith.constant 0 : i32
    %c0_i32_3 = arith.constant 0 : i32
    return %c0_i32, %c0_i32_0, %c0_i32_1, %c0_i32_2 : i32, i32, i32, i32
  }
  func.func @transform_18(%arg0: i32) -> (i32, i32, i32, i32) {
    %c0_i32 = arith.constant 0 : i32
    %c0_i32_0 = arith.constant 0 : i32
    %c0_i32_1 = arith.constant 0 : i32
    %c0_i32_2 = arith.constant 0 : i32
    %c0_i32_3 = arith.constant 0 : i32
    return %c0_i32, %c0_i32_0, %c0_i32_1, %c0_i32_2 : i32, i32, i32, i32
  }
  func.func @transform_19(%arg0: i32) -> (i32, i32, i32, i32) {
    %c0_i32 = arith.constant 0 : i32
    %c0_i32_0 = arith.constant 0 : i32
    %c0_i32_1 = arith.constant 0 : i32
    %c0_i32_2 = arith.constant 0 : i32
    %c0_i32_3 = arith.constant 0 : i32
    return %c0_i32, %c0_i32_0, %c0_i32_1, %c0_i32_2 : i32, i32, i32, i32
  }
  func.func @transform_20(%arg0: i32) -> (i32, i32, i32, i32) {
    %c0_i32 = arith.constant 0 : i32
    %c0_i32_0 = arith.constant 0 : i32
    %c0_i32_1 = arith.constant 0 : i32
    %c0_i32_2 = arith.constant 0 : i32
    %c0_i32_3 = arith.constant 0 : i32
    return %c0_i32, %c0_i32_0, %c0_i32_1, %c0_i32_2 : i32, i32, i32, i32
  }
  func.func @transform_21(%arg0: i32) -> (i32, i32, i32, i32) {
    %c0_i32 = arith.constant 0 : i32
    %c0_i32_0 = arith.constant 0 : i32
    %c0_i32_1 = arith.constant 0 : i32
    %c0_i32_2 = arith.constant 0 : i32
    %c0_i32_3 = arith.constant 0 : i32
    return %c0_i32, %c0_i32_0, %c0_i32_1, %c0_i32_2 : i32, i32, i32, i32
  }
  func.func @transform_22(%arg0: i32) -> (i32, i32, i32, i32) {
    %c0_i32 = arith.constant 0 : i32
    %c0_i32_0 = arith.constant 0 : i32
    %c0_i32_1 = arith.constant 0 : i32
    %c0_i32_2 = arith.constant 0 : i32
    %c0_i32_3 = arith.constant 0 : i32
    return %c0_i32, %c0_i32_0, %c0_i32_1, %c0_i32_2 : i32, i32, i32, i32
  }
  func.func @transform_23(%arg0: i32) -> (i32, i32, i32) {
    %c0_i32 = arith.constant 0 : i32
    %c0_i32_0 = arith.constant 0 : i32
    %c0_i32_1 = arith.constant 0 : i32
    %c0_i32_2 = arith.constant 0 : i32
    return %c0_i32, %c0_i32_0, %c0_i32_1 : i32, i32, i32
  }
  func.func @transform_24(%arg0: i32) -> (i32, i32, i32) {
    %c0_i32 = arith.constant 0 : i32
    %c0_i32_0 = arith.constant 0 : i32
    %c0_i32_1 = arith.constant 0 : i32
    %c0_i32_2 = arith.constant 0 : i32
    return %c0_i32, %c0_i32_0, %c0_i32_1 : i32, i32, i32
  }
  func.func @transform_25(%arg0: i32) -> (i32, i32, i32) {
    %c0_i32 = arith.constant 0 : i32
    %c0_i32_0 = arith.constant 0 : i32
    %c0_i32_1 = arith.constant 0 : i32
    %c0_i32_2 = arith.constant 0 : i32
    return %c0_i32, %c0_i32_0, %c0_i32_1 : i32, i32, i32
  }
  func.func @transform_26(%arg0: i32) -> (i32, i32, i32, i32) {
    %c0_i32 = arith.constant 0 : i32
    %c0_i32_0 = arith.constant 0 : i32
    %c0_i32_1 = arith.constant 0 : i32
    %c0_i32_2 = arith.constant 0 : i32
    %c0_i32_3 = arith.constant 0 : i32
    return %c0_i32, %c0_i32_0, %c0_i32_1, %c0_i32_2 : i32, i32, i32, i32
  }
  func.func @transform_27(%arg0: i32) -> (i32, i32, i32, i32) {
    %c0_i32 = arith.constant 0 : i32
    %c0_i32_0 = arith.constant 0 : i32
    %c0_i32_1 = arith.constant 0 : i32
    %c0_i32_2 = arith.constant 0 : i32
    %c0_i32_3 = arith.constant 0 : i32
    return %c0_i32, %c0_i32_0, %c0_i32_1, %c0_i32_2 : i32, i32, i32, i32
  }
  func.func @transform_28(%arg0: i32) -> (i32, i32, i32, i32) {
    %c0_i32 = arith.constant 0 : i32
    %c0_i32_0 = arith.constant 0 : i32
    %c0_i32_1 = arith.constant 0 : i32
    %c0_i32_2 = arith.constant 0 : i32
    %c0_i32_3 = arith.constant 0 : i32
    return %c0_i32, %c0_i32_0, %c0_i32_1, %c0_i32_2 : i32, i32, i32, i32
  }
  func.func @transform_29(%arg0: i32) -> (i32, i32, i32, i32) {
    %c0_i32 = arith.constant 0 : i32
    %c0_i32_0 = arith.constant 0 : i32
    %c0_i32_1 = arith.constant 0 : i32
    %c0_i32_2 = arith.constant 0 : i32
    %c0_i32_3 = arith.constant 0 : i32
    return %c0_i32, %c0_i32_0, %c0_i32_1, %c0_i32_2 : i32, i32, i32, i32
  }
  func.func @transform_30(%arg0: i32) -> (i32, i32) {
    %c0_i32 = arith.constant 0 : i32
    %c0_i32_0 = arith.constant 0 : i32
    return %arg0, %c0_i32 : i32, i32
  }
  func.func @transform_31(%arg0: i32) -> (i32, i32) {
    %c0_i32 = arith.constant 0 : i32
    %c0_i32_0 = arith.constant 0 : i32
    return %arg0, %c0_i32 : i32, i32
  }
}

</mosaic_0001>

<bundles_post_ra>
// kernel: _lambda_.1
= control target key start
LH: loop header
LB: loop body
LE: loop exit
PB: predicated region body
PF: predicated region fallthrough
CT: control target
= control target key end

     0   :  { %s9364_s6 = smov 1   ;;  %s9365_s10 = smov 2   ;;  %s10515_s0 = inlined_call_operand.smem [shape: u32[32], index: -1, kind: input, shape index: {}] }
   0x1   :  { %s9443_s5 = sld [smem:[%s10515_s0]]   ;;  %s9366_s14 = smov 3  }
   0x2   :  { %s9448_s9 = sld [smem:[%s10515_s0 + %s9364_s6]]   ;;  %s9367_s18 = smov 4  }
   0x3   :  { %s9453_s13 = sld [smem:[%s10515_s0 + %s9365_s10]]   ;;  %s9368_s22 = smov 5  }
   0x4   :  { %s9458_s17 = sld [smem:[%s10515_s0 + %s9366_s14]]   ;;  %s9369_s26 = smov 6  }
   0x5   :  { %s9463_s21 = sld [smem:[%s10515_s0 + %s9367_s18]]   ;;  %s9370_s30 = smov 7  }
   0x6   :  { %s9468_s25 = sld [smem:[%s10515_s0 + %s9368_s22]]   ;;  %s9371_s4 = smov 8  }
   0x7   :  { %10519 = sst [smem:[#allocation56_spill]] %s9443_s5  ;;  %s9372_s10 = smov 9  }
   0x8   :  { %s9473_s29 = sld [smem:[%s10515_s0 + %s9369_s26]]   ;;  %s9373_s15 = smov 10  }
   0x9   :  { %s9478_s3 = sld [smem:[%s10515_s0 + %s9370_s30]]   ;;  %s9374_s20 = smov 11  }
   0xa   :  { %s9483_s8 = sld [smem:[%s10515_s0 + %s9371_s4]]   ;;  %s9375_s26 = smov 12  }
   0xb   :  { %s9488_s14 = sld [smem:[%s10515_s0 + %s9372_s10]]   ;;  %s9376_s1 = smov 13  }
   0xc   :  { %10520 = sst [smem:[#allocation57_spill]] %s9468_s25  ;;  %s9377_s7 = smov 14  }
   0xd   :  { %s9493_s19 = sld [smem:[%s10515_s0 + %s9373_s15]]   ;;  %s9378_s15 = smov 15  }
   0xe   :  { %s9498_s24 = sld [smem:[%s10515_s0 + %s9374_s20]]   ;;  %s9379_s22 = smov 16  }
   0xf   :  { %10521 = sst [smem:[#allocation58_spill]] %s9478_s3  ;;  %s9380_s28 = smov 17  }
  0x10   :  { %s9503_s30 = sld [smem:[%s10515_s0 + %s9375_s26]]  }
  0x11   :  { %10522 = sst [smem:[#allocation59_spill]] %s9488_s14 }
  0x12   :  { %s9508_s6 = sld [smem:[%s10515_s0 + %s9376_s1]]  }
  0x13   :  { %s9513_s12 = sld [smem:[%s10515_s0 + %s9377_s7]]   ;;  %s9381_s7 = smov 18  }
  0x14   :  { %10523 = sst [smem:[#allocation60_spill]] %s9498_s24 }
  0x15   :  { %s9518_s20 = sld [smem:[%s10515_s0 + %s9378_s15]]   ;;  %s9382_s15 = smov 19  }
  0x16   :  { %s9523_s27 = sld [smem:[%s10515_s0 + %s9379_s22]]   ;;  %s9383_s22 = smov 20  }
  0x17   :  { %s9528_s4 = sld [smem:[%s10515_s0 + %s9380_s28]]   ;;  %s9384_s28 = smov 21  }
  0x18   :  { %10524 = sst [smem:[#allocation61_spill]] %s9508_s6 }
  0x19   :  { %10525 = sst [smem:[#allocation62_spill]] %s9513_s12 }
  0x1a   :  { %s9533_s12 = sld [smem:[%s10515_s0 + %s9381_s7]]   ;;  %s9385_s7 = smov 22  }
  0x1b   :  { %s9538_s5 = sld [smem:[%s10515_s0 + %s9382_s15]]   ;;  %s9386_s15 = smov 23  }
  0x1c   :  { %10526 = sst [smem:[#allocation63_spill]] %s9523_s27 }
  0x1d   :  { %s9543_s27 = sld [smem:[%s10515_s0 + %s9383_s22]]   ;;  %s9387_s22 = smov 24  }
  0x1e   :  { %s9548_s6 = sld [smem:[%s10515_s0 + %s9384_s28]]   ;;  %s9388_s28 = smov 25  }
  0x1f   :  { %s9558_s24 = sld [smem:[%s10515_s0 + %s9386_s15]]   ;;  %s9390_s15 = smov 27  }
  0x20   :  { %10527 = sst [smem:[#allocation64_spill]] %s9533_s12 }
  0x21   :  { %s9553_s12 = sld [smem:[%s10515_s0 + %s9385_s7]]   ;;  %s9389_s7 = smov 26  }
  0x22   :  { %s9568_s14 = sld [smem:[%s10515_s0 + %s9388_s28]]   ;;  %s9392_s28 = smov 29  }
  0x23   :  { %10528 = sst [smem:[#allocation65_spill]] %s9543_s27 }
  0x24   :  { %s9563_s27 = sld [smem:[%s10515_s0 + %s9387_s22]]   ;;  %s9391_s22 = smov 28  }
  0x25   :  { %10530 = sst [smem:[#allocation67_spill]] %s9558_s24 }
  0x26   :  { %s9578_s24 = sld [smem:[%s10515_s0 + %s9390_s15]]   ;;  %s9394_s15 = smov 31  }
  0x27   :  { %10529 = sst [smem:[#allocation66_spill]] %s9553_s12 }
  0x28   :  { %10531 = sst [smem:[#allocation68_spill]] %s9568_s14 }
  0x29   :  { %s9573_s12 = sld [smem:[%s10515_s0 + %s9389_s7]]   ;;  %s9393_s7 = smov 30  }
  0x2a   :  { %s9583_s3 = sld [smem:[%s10515_s0 + %s9391_s22]]  }
  0x2b   :  { %s9588_s14 = sld [smem:[%s10515_s0 + %s9392_s28]]  }
  0x2c   :  { %10532 = sst [smem:[#allocation69_spill]] %s9578_s24 }
  0x2d   :  { %s9593_s25 = sld [smem:[%s10515_s0 + %s9393_s7]]  }
  0x2e   :  { %s9598_s24 = sld [smem:[%s10515_s0 + %s9394_s15]]  }
  0x2f   :  { %69 = vsyncpa [#allocation3], 0 }
  0x30   :  { %70 = vsyncpa [#allocation6], 0 }
  0x31   :  { %71 = vsyncpa [#allocation9], 0 }
  0x32   :  { %72 = vsyncpa [#allocation12], 0 }
  0x33   :  { %73 = vsyncpa [#allocation15], 0 }
  0x34   :  { %74 = vsyncpa [#allocation18], 0 }
  0x35   :  { %75 = vsyncpa [#allocation21], 0 }
  0x36   :  { %76 = vsyncpa [#allocation24], 0 }
  0x37   :  { %77 = vsyncpa [#allocation27], 0 }
  0x38   :  { %78 = vsyncpa [#allocation30], 0 }
  0x39   :  { %79 = vsyncpa [#allocation33], 0 }
  0x3a   :  { %80 = vsyncpa [#allocation36], 0 }
  0x3b   :  { %81 = vsyncpa [#allocation39], 0 }
  0x3c   :  { %82 = vsyncpa [#allocation4], 0  ;;  %s9395_s22 = smov [#allocation5]  }
  0x3d   :  { %s100_s23 = sshll.u32 %s9395_s22, 4  ;;  %s101_s23 = int_to_ptr.vmem [resolvable:$true] %s100_s23 }
  0x3e   :  { %s8824_s26 = scalar_lea.vmem %s101_s23, 256  ;;  %p8829_p1 = scmp.lt.s32.totalorder %s101_s23, %s101_s23 }
  0x3f   :  { %p8825_p0 = scmp.ne.s32.totalorder %s101_s23, %s8824_s26  ;;  %p8830_p2 = scmp.lt.s32.totalorder %s8824_s26, %s8824_s26 }
  0x41   :  { %p8831_p3 = por %p8830_p2, %p8829_p1 }
  0x43   :  { %p8832_p4 = pnand %p8831_p3, %p8825_p0 }
  0x45   :  { %8835 = shalt.err (!%p8832_p4)
}
  0x46   :  { %s9396_s0 = smov 128   ;;  %s9397_s28 = smov 8  }
  0x47   :  { %106 = dma.hbm_to_vmem [thread:$0]  %s9453_s13, 256, %s101_s23, [#allocation6], %s9396_s0, %s9396_s0, %s9397_s28  }
  0x48   :  { %s9398_s1 = smov [#allocation8]   ;;  %s9399_s7 = smov [#allocation11]  }
  0x49   :  { %s124_s2 = sshll.u32 %s9398_s1, 4  ;;  %s148_s10 = sshll.u32 %s9399_s7, 4  ;;  %s125_s2 = int_to_ptr.vmem [resolvable:$true] %s124_s2  ;;  %s149_s10 = int_to_ptr.vmem [resolvable:$true] %s148_s10 }
  0x4a   :  { %s8844_s11 = scalar_lea.vmem %s125_s2, 1024  ;;  %p8849_p6 = scmp.lt.s32.totalorder %s125_s2, %s125_s2 }
  0x4b   :  { %p8845_p5 = scmp.ne.s32.totalorder %s125_s2, %s8844_s11  ;;  %p8850_p7 = scmp.lt.s32.totalorder %s8844_s11, %s8844_s11 }
  0x4d   :  { %p8851_p8 = por %p8850_p7, %p8849_p6 }
  0x4f   :  { %p8852_p9 = pnand %p8851_p8, %p8845_p5 }
  0x51   :  { %8855 = shalt.err (!%p8852_p9)
}
  0x52   :  { %130 = dma.hbm_to_vmem [thread:$0]  %s9463_s21, 1024, %s125_s2, [#allocation9], %s9396_s0, %s9396_s0, %s9397_s28  }
  0x53   :  { %s8864_s15 = scalar_lea.vmem %s149_s10, 2048  ;;  %p8869_p11 = scmp.lt.s32.totalorder %s149_s10, %s149_s10 }
  0x54   :  { %p8865_p10 = scmp.ne.s32.totalorder %s149_s10, %s8864_s15  ;;  %p8870_p12 = scmp.lt.s32.totalorder %s8864_s15, %s8864_s15 }
  0x56   :  { %p8871_p13 = por %p8870_p12, %p8869_p11 }
  0x58   :  { %p8872_p0 = pnand %p8871_p13, %p8865_p10 }
  0x5a   :  { %8875 = shalt.err (!%p8872_p0)
}
  0x5b   :  { %154 = dma.hbm_to_vmem [thread:$0]  %s9473_s29, 2048, %s149_s10, [#allocation12], %s9396_s0, %s9396_s0, %s9397_s28  }
  0x5c   :  { %s9400_s13 = smov [#allocation14]   ;;  %s9401_s18 = smov [#allocation17]  }
  0x5d   :  { %s172_s16 = sshll.u32 %s9400_s13, 4  ;;  %s196_s22 = sshll.u32 %s9401_s18, 4  ;;  %s173_s16 = int_to_ptr.vmem [resolvable:$true] %s172_s16  ;;  %s197_s22 = int_to_ptr.vmem [resolvable:$true] %s196_s22 }
  0x5e   :  { %s8884_s23 = scalar_lea.vmem %s173_s16, 6144  ;;  %p8889_p2 = scmp.lt.s32.totalorder %s173_s16, %s173_s16 }
  0x5f   :  { %p8885_p1 = scmp.ne.s32.totalorder %s173_s16, %s8884_s23  ;;  %p8890_p3 = scmp.lt.s32.totalorder %s8884_s23, %s8884_s23 }
  0x61   :  { %p8891_p4 = por %p8890_p3, %p8889_p2 }
  0x63   :  { %p8892_p5 = pnand %p8891_p4, %p8885_p1 }
  0x65   :  { %8895 = shalt.err (!%p8892_p5)
}
  0x66   :  { %178 = dma.hbm_to_vmem [thread:$0]  %s9483_s8, 6144, %s173_s16, [#allocation15], %s9396_s0, %s9396_s0, %s9397_s28  }
  0x67   :  { %s8904_s21 = scalar_lea.vmem %s197_s22, 12288  ;;  %p8909_p7 = scmp.lt.s32.totalorder %s197_s22, %s197_s22 }
  0x68   :  { %p8905_p6 = scmp.ne.s32.totalorder %s197_s22, %s8904_s21  ;;  %p8910_p8 = scmp.lt.s32.totalorder %s8904_s21, %s8904_s21 }
  0x6a   :  { %p8911_p9 = por %p8910_p8, %p8909_p7 }
  0x6c   :  { %p8912_p10 = pnand %p8911_p9, %p8905_p6 }
  0x6e   :  { %8915 = shalt.err (!%p8912_p10)
}
  0x6f   :  { %202 = dma.hbm_to_vmem [thread:$0]  %s9493_s19, 12288, %s197_s22, [#allocation18], %s9396_s0, %s9396_s0, %s9397_s28  }
  0x70   :  { %s9402_s29 = smov [#allocation20]   ;;  %s9403_s1 = smov [#allocation23]  }
  0x71   :  { %s220_s26 = sshll.u32 %s9402_s29, 4  ;;  %s246_s2 = sshll.u32 %s9403_s1, 4  ;;  %s221_s26 = int_to_ptr.vmem [resolvable:$true] %s220_s26  ;;  %s247_s2 = int_to_ptr.vmem [resolvable:$true] %s246_s2 }
  0x72   :  { %s8924_s7 = scalar_lea.vmem %s221_s26, 64  ;;  %p8929_p12 = scmp.lt.s32.totalorder %s221_s26, %s221_s26 }
  0x73   :  { %p8925_p11 = scmp.ne.s32.totalorder %s221_s26, %s8924_s7  ;;  %p8930_p13 = scmp.lt.s32.totalorder %s8924_s7, %s8924_s7 }
  0x75   :  { %p8931_p0 = por %p8930_p13, %p8929_p12 }
  0x77   :  { %p8932_p1 = pnand %p8931_p0, %p8925_p11 }
  0x79   :  { %8935 = shalt.err (!%p8932_p1)
}
  0x7a   :  { %s9404_s8 = smov 16   ;;  %s9405_s10 = smov 1  }
  0x7b   :  { %226 = dma.hbm_to_vmem [thread:$0]  %s9503_s30, 64, %s221_s26, [#allocation21], %s9404_s8, %s9404_s8, %s9405_s10  }
  0x7c   :  { %s8944_s19 = scalar_lea.vmem %s247_s2, 2048  ;;  %p8949_p3 = scmp.lt.s32.totalorder %s247_s2, %s247_s2 }
  0x7d   :  { %p8945_p2 = scmp.ne.s32.totalorder %s247_s2, %s8944_s19  ;;  %p8950_p4 = scmp.lt.s32.totalorder %s8944_s19, %s8944_s19 }
  0x7f   :  { %p8951_p5 = por %p8950_p4, %p8949_p3 }
  0x81   :  { %p8952_p6 = pnand %p8951_p5, %p8945_p2 }
  0x83   :  { %8955 = shalt.err (!%p8952_p6)
}
  0x84   :  { %252 = dma.hbm_to_vmem [thread:$0]  %s9518_s20, 2048, %s247_s2, [#allocation24], %s9396_s0, %s9396_s0, %s9397_s28  }
  0x85   :  { %s9406_s11 = smov [#allocation26]   ;;  %s9407_s13 = smov [#allocation29]  }
  0x86   :  { %s270_s15 = sshll.u32 %s9406_s11, 4  ;;  %s294_s16 = sshll.u32 %s9407_s13, 4  ;;  %s271_s15 = int_to_ptr.vmem [resolvable:$true] %s270_s15  ;;  %s295_s16 = int_to_ptr.vmem [resolvable:$true] %s294_s16 }
  0x87   :  { %s8964_s18 = scalar_lea.vmem %s271_s15, 4096  ;;  %p8969_p8 = scmp.lt.s32.totalorder %s271_s15, %s271_s15 }
  0x88   :  { %p8965_p7 = scmp.ne.s32.totalorder %s271_s15, %s8964_s18  ;;  %p8970_p9 = scmp.lt.s32.totalorder %s8964_s18, %s8964_s18 }
  0x8a   :  { %p8971_p10 = por %p8970_p9, %p8969_p8 }
  0x8c   :  { %p8972_p11 = pnand %p8971_p10, %p8965_p7 }
  0x8e   :  { %8975 = shalt.err (!%p8972_p11)
}
  0x8f   :  { %276 = dma.hbm_to_vmem [thread:$0]  %s9528_s4, 4096, %s271_s15, [#allocation27], %s9396_s0, %s9396_s0, %s9397_s28  }
  0x90   :  { %s8984_s30 = scalar_lea.vmem %s295_s16, 8192  ;;  %p8989_p13 = scmp.lt.s32.totalorder %s295_s16, %s295_s16 }
  0x91   :  { %p8985_p12 = scmp.ne.s32.totalorder %s295_s16, %s8984_s30  ;;  %p8990_p0 = scmp.lt.s32.totalorder %s8984_s30, %s8984_s30 }
  0x93   :  { %p8991_p1 = por %p8990_p0, %p8989_p13 }
  0x95   :  { %p8992_p2 = pnand %p8991_p1, %p8985_p12 }
  0x97   :  { %8995 = shalt.err (!%p8992_p2)
}
  0x98   :  { %300 = dma.hbm_to_vmem [thread:$0]  %s9538_s5, 8192, %s295_s16, [#allocation30], %s9396_s0, %s9396_s0, %s9397_s28  }
  0x99   :  { %s9408_s20 = smov [#allocation32]   ;;  %s9409_s23 = smov [#allocation35]  }
  0x9a   :  { %s318_s22 = sshll.u32 %s9408_s20, 4  ;;  %s344_s21 = sshll.u32 %s9409_s23, 4  ;;  %s319_s22 = int_to_ptr.vmem [resolvable:$true] %s318_s22  ;;  %s345_s21 = int_to_ptr.vmem [resolvable:$true] %s344_s21 }
  0x9b   :  { %s9004_s29 = scalar_lea.vmem %s319_s22, 64  ;;  %p9009_p4 = scmp.lt.s32.totalorder %s319_s22, %s319_s22 }
  0x9c   :  { %p9005_p3 = scmp.ne.s32.totalorder %s319_s22, %s9004_s29  ;;  %p9010_p5 = scmp.lt.s32.totalorder %s9004_s29, %s9004_s29 }
  0x9e   :  { %p9011_p6 = por %p9010_p5, %p9009_p4 }
  0xa0   :  { %p9012_p7 = pnand %p9011_p6, %p9005_p3 }
  0xa2   :  { %9015 = shalt.err (!%p9012_p7)
}
  0xa3   :  { %324 = dma.hbm_to_vmem [thread:$0]  %s9548_s6, 64, %s319_s22, [#allocation33], %s9404_s8, %s9404_s8, %s9405_s10  }
  0xa4   :  { %s9024_s4 = scalar_lea.vmem %s345_s21, 2048  ;;  %p9029_p9 = scmp.lt.s32.totalorder %s345_s21, %s345_s21 }
  0xa5   :  { %p9025_p8 = scmp.ne.s32.totalorder %s345_s21, %s9024_s4  ;;  %p9030_p10 = scmp.lt.s32.totalorder %s9024_s4, %s9024_s4 }
  0xa7   :  { %p9031_p11 = por %p9030_p10, %p9029_p9 }
  0xa9   :  { %p9032_p12 = pnand %p9031_p11, %p9025_p8 }
  0xab   :  { %9035 = shalt.err (!%p9032_p12)
}
  0xac   :  { %350 = dma.hbm_to_vmem [thread:$0]  %s9563_s27, 2048, %s345_s21, [#allocation36], %s9396_s0, %s9396_s0, %s9397_s28  }
  0xad   :  { %s9410_s5 = smov [#allocation38]   ;;  %s9411_s1 = smov [#allocation2]  }
  0xae   :  { %s368_s26 = sshll.u32 %s9410_s5, 4  ;;  %s91_s2 = sshll.u32 %s9411_s1, 4  ;;  %s369_s26 = int_to_ptr.vmem [resolvable:$true] %s368_s26  ;;  %s92_s2 = int_to_ptr.vmem [resolvable:$true] %s91_s2 }
  0xaf   :  { %s9044_s7 = scalar_lea.vmem %s369_s26, 2048  ;;  %p9049_p0 = scmp.lt.s32.totalorder %s369_s26, %s369_s26 }
  0xb0   :  { %p9045_p13 = scmp.ne.s32.totalorder %s369_s26, %s9044_s7  ;;  %p9050_p1 = scmp.lt.s32.totalorder %s9044_s7, %s9044_s7 }
  0xb2   :  { %p9051_p2 = por %p9050_p1, %p9049_p0 }
  0xb4   :  { %p9052_p3 = pnand %p9051_p2, %p9045_p13 }
  0xb6   :  { %9055 = shalt.err (!%p9052_p3)
}
  0xb7   :  { %374 = dma.hbm_to_vmem [thread:$0]  %s9573_s12, 2048, %s369_s26, [#allocation39], %s9396_s0, %s9396_s0, %s9397_s28  }
  0xb8   :  { %s9064_s6 = scalar_lea.vmem %s92_s2, 128  ;;  %p9069_p5 = scmp.lt.s32.totalorder %s92_s2, %s92_s2 }
  0xb9   :  { %p9065_p4 = scmp.ne.s32.totalorder %s92_s2, %s9064_s6  ;;  %p9070_p6 = scmp.lt.s32.totalorder %s9064_s6, %s9064_s6 }
  0xbb   :  { %p9071_p7 = por %p9070_p6, %p9069_p5 }
  0xbd   :  { %p9072_p8 = pnand %p9071_p7, %p9065_p4 }
  0xbf   :  { %9075 = shalt.err (!%p9072_p8)
}
  0xc0   :  { %94 = dma.hbm_to_vmem [thread:$0]  %s9448_s9, 128, %s92_s2, [#allocation3]  }
  0xc1   :  { %s9412_s27 = smov [#allocation7]   ;;  %s9413_s11 = smov [#allocation10]  }
  0xc2   :  { %s112_s19 = sshll.u32 %s9412_s27, 4  ;;  %s136_s15 = sshll.u32 %s9413_s11, 4  ;;  %s113_s19 = int_to_ptr.vmem [resolvable:$true] %s112_s19  ;;  %s137_s15 = int_to_ptr.vmem [resolvable:$true] %s136_s15 }
  0xc3   :  { %s9084_s13 = scalar_lea.vmem %s113_s19, 64  ;;  %p9089_p10 = scmp.lt.s32.totalorder %s113_s19, %s113_s19 }
  0xc4   :  { %p9085_p9 = scmp.ne.s32.totalorder %s113_s19, %s9084_s13  ;;  %p9090_p11 = scmp.lt.s32.totalorder %s9084_s13, %s9084_s13 }
  0xc6   :  { %p9091_p12 = por %p9090_p11, %p9089_p10 }
  0xc8   :  { %p9092_p13 = pnand %p9091_p12, %p9085_p9 }
  0xca   :  { %9095 = shalt.err (!%p9092_p13)
}
  0xcb   :  { %118 = dma.hbm_to_vmem [thread:$0]  %s9458_s17, 64, %s113_s19, [#allocation6], %s9404_s8, %s9404_s8, %s9405_s10  }
  0xcc   :  { %s9104_s12 = scalar_lea.vmem %s137_s15, 1024  ;;  %p9109_p1 = scmp.lt.s32.totalorder %s137_s15, %s137_s15 }
  0xcd   :  { %p9105_p0 = scmp.ne.s32.totalorder %s137_s15, %s9104_s12  ;;  %p9110_p2 = scmp.lt.s32.totalorder %s9104_s12, %s9104_s12 }
  0xcf   :  { %p9111_p3 = por %p9110_p2, %p9109_p1 }
  0xd1   :  { %p9112_p4 = pnand %p9111_p3, %p9105_p0 }
  0xd3   :  { %9115 = shalt.err (!%p9112_p4)
}
  0xd4   :  { %s10533_s9 = sld [smem:[#allocation57_spill]]  ;;  %s9414_s16 = smov [#allocation13]  }
  0xd5   :  { %s160_s18 = sshll.u32 %s9414_s16, 4  ;;  %s9415_s30 = smov [#allocation16]   ;;  %s161_s18 = int_to_ptr.vmem [resolvable:$true] %s160_s18 }
  0xd6   :  { %s184_s20 = sshll.u32 %s9415_s30, 4  ;;  %s9124_s22 = scalar_lea.vmem %s161_s18, 64  ;;  %s185_s20 = int_to_ptr.vmem [resolvable:$true] %s184_s20 }
  0xd7   :  { %p9125_p5 = scmp.ne.s32.totalorder %s161_s18, %s9124_s22  ;;  %p9129_p6 = scmp.lt.s32.totalorder %s161_s18, %s161_s18 }
  0xd8   :  { %p9130_p7 = scmp.lt.s32.totalorder %s9124_s22, %s9124_s22 }
  0xda   :  { %142 = dma.hbm_to_vmem [thread:$0]  %s10533_s9, 1024, %s137_s15, [#allocation9], %s9396_s0, %s9396_s0, %s9397_s28  }
  0xdb   :  { %p9131_p8 = por %p9130_p7, %p9129_p6 }
  0xdd   :  { %p9132_p9 = pnand %p9131_p8, %p9125_p5 }
  0xdf   :  { %9135 = shalt.err (!%p9132_p9)
}
  0xe0   :  { %s10534_s17 = sld [smem:[#allocation58_spill]]  ;;  %s9144_s23 = scalar_lea.vmem %s185_s20, 64 }
  0xe1   :  { %p9145_p10 = scmp.ne.s32.totalorder %s185_s20, %s9144_s23  ;;  %p9149_p11 = scmp.lt.s32.totalorder %s185_s20, %s185_s20 }
  0xe2   :  { %p9150_p12 = scmp.lt.s32.totalorder %s9144_s23, %s9144_s23 }
  0xe4   :  { %p9151_p13 = por %p9150_p12, %p9149_p11 }
  0xe6   :  { %166 = dma.hbm_to_vmem [thread:$0]  %s10534_s17, 64, %s161_s18, [#allocation12], %s9404_s8, %s9404_s8, %s9405_s10  }
  0xe7   :  { %p9152_p0 = pnand %p9151_p13, %p9145_p10 }
  0xe9   :  { %9155 = shalt.err (!%p9152_p0)
}
  0xea   :  { %s10535_s21 = sld [smem:[#allocation59_spill]]  ;;  %s9416_s29 = smov [#allocation19]  }
  0xeb   :  { %s208_s4 = sshll.u32 %s9416_s29, 4  ;;  %s9417_s5 = smov [#allocation22]   ;;  %s209_s4 = int_to_ptr.vmem [resolvable:$true] %s208_s4 }
  0xec   :  { %s232_s26 = sshll.u32 %s9417_s5, 4  ;;  %s9164_s1 = scalar_lea.vmem %s209_s4, 128  ;;  %s233_s26 = int_to_ptr.vmem [resolvable:$true] %s232_s26 }
  0xed   :  { %p9165_p1 = scmp.ne.s32.totalorder %s209_s4, %s9164_s1  ;;  %p9169_p2 = scmp.lt.s32.totalorder %s209_s4, %s209_s4 }
  0xee   :  { %p9170_p3 = scmp.lt.s32.totalorder %s9164_s1, %s9164_s1 }
  0xf0   :  { %190 = dma.hbm_to_vmem [thread:$0]  %s10535_s21, 64, %s185_s20, [#allocation15], %s9404_s8, %s9404_s8, %s9405_s10  }
  0xf1   :  { %p9171_p4 = por %p9170_p3, %p9169_p2 }
  0xf3   :  { %p9172_p5 = pnand %p9171_p4, %p9165_p1 }
  0xf5   :  { %9175 = shalt.err (!%p9172_p5)
}
  0xf6   :  { %s10536_s2 = sld [smem:[#allocation60_spill]]  ;;  %s9184_s7 = scalar_lea.vmem %s233_s26, 512 }
  0xf7   :  { %p9185_p6 = scmp.ne.s32.totalorder %s233_s26, %s9184_s7  ;;  %p9189_p7 = scmp.lt.s32.totalorder %s233_s26, %s233_s26 }
  0xf8   :  { %p9190_p8 = scmp.lt.s32.totalorder %s9184_s7, %s9184_s7 }
  0xfa   :  { %p9191_p9 = por %p9190_p8, %p9189_p7 }
  0xfc   :  { %214 = dma.hbm_to_vmem [thread:$0]  %s10536_s2, 128, %s209_s4, [#allocation18], %s9404_s8, %s9404_s8, %s9405_s10  }
  0xfd   :  { %p9192_p10 = pnand %p9191_p9, %p9185_p6 }
  0xff   :  { %9195 = shalt.err (!%p9192_p10)
}
 0x100   :  { %s10537_s6 = sld [smem:[#allocation61_spill]]  ;;  %s9418_s27 = smov [#allocation25]  }
 0x101   :  { %s258_s19 = sshll.u32 %s9418_s27, 4  ;;  %s9419_s11 = smov [#allocation28]   ;;  %s259_s19 = int_to_ptr.vmem [resolvable:$true] %s258_s19 }
 0x102   :  { %s282_s15 = sshll.u32 %s9419_s11, 4  ;;  %s9204_s13 = scalar_lea.vmem %s259_s19, 64  ;;  %s283_s15 = int_to_ptr.vmem [resolvable:$true] %s282_s15 }
 0x103   :  { %p9205_p11 = scmp.ne.s32.totalorder %s259_s19, %s9204_s13  ;;  %p9209_p12 = scmp.lt.s32.totalorder %s259_s19, %s259_s19 }
 0x104   :  { %p9210_p13 = scmp.lt.s32.totalorder %s9204_s13, %s9204_s13 }
 0x106   :  { %238 = dma.hbm_to_vmem [thread:$0]  %s10537_s6, 512, %s233_s26, [#allocation21], %s9396_s0, %s9396_s0, %s9397_s28  }
 0x107   :  { %p9211_p0 = por %p9210_p13, %p9209_p12 }
 0x109   :  { %p9212_p1 = pnand %p9211_p0, %p9205_p11 }
 0x10b   :  { %9215 = shalt.err (!%p9212_p1)
}
 0x10c   :  { %s10538_s12 = sld [smem:[#allocation63_spill]]  ;;  %s9224_s9 = scalar_lea.vmem %s283_s15, 64 }
 0x10d   :  { %p9225_p2 = scmp.ne.s32.totalorder %s283_s15, %s9224_s9  ;;  %p9229_p3 = scmp.lt.s32.totalorder %s283_s15, %s283_s15 }
 0x10e   :  { %p9230_p4 = scmp.lt.s32.totalorder %s9224_s9, %s9224_s9 }
 0x110   :  { %p9231_p5 = por %p9230_p4, %p9229_p3 }
 0x112   :  { %264 = dma.hbm_to_vmem [thread:$0]  %s10538_s12, 64, %s259_s19, [#allocation24], %s9404_s8, %s9404_s8, %s9405_s10  }
 0x113   :  { %p9232_p6 = pnand %p9231_p5, %p9225_p2 }
 0x115   :  { %9235 = shalt.err (!%p9232_p6)
}
 0x116   :  { %s10539_s16 = sld [smem:[#allocation64_spill]]  ;;  %s9420_s18 = smov [#allocation31]  }
 0x117   :  { %s306_s30 = sshll.u32 %s9420_s18, 4  ;;  %s9421_s20 = smov [#allocation34]   ;;  %s307_s30 = int_to_ptr.vmem [resolvable:$true] %s306_s30 }
 0x118   :  { %s330_s22 = sshll.u32 %s9421_s20, 4  ;;  %s9244_s17 = scalar_lea.vmem %s307_s30, 128  ;;  %s331_s22 = int_to_ptr.vmem [resolvable:$true] %s330_s22 }
 0x119   :  { %p9245_p7 = scmp.ne.s32.totalorder %s307_s30, %s9244_s17  ;;  %p9249_p8 = scmp.lt.s32.totalorder %s307_s30, %s307_s30 }
 0x11a   :  { %p9250_p9 = scmp.lt.s32.totalorder %s9244_s17, %s9244_s17 }
 0x11c   :  { %288 = dma.hbm_to_vmem [thread:$0]  %s10539_s16, 64, %s283_s15, [#allocation27], %s9404_s8, %s9404_s8, %s9405_s10  }
 0x11d   :  { %p9251_p10 = por %p9250_p9, %p9249_p8 }
 0x11f   :  { %p9252_p11 = pnand %p9251_p10, %p9245_p7 }
 0x121   :  { %9255 = shalt.err (!%p9252_p11)
}
 0x122   :  { %s10540_s23 = sld [smem:[#allocation65_spill]]  ;;  %s9264_s21 = scalar_lea.vmem %s331_s22, 256 }
 0x123   :  { %p9265_p12 = scmp.ne.s32.totalorder %s331_s22, %s9264_s21  ;;  %p9269_p13 = scmp.lt.s32.totalorder %s331_s22, %s331_s22 }
 0x124   :  { %p9270_p0 = scmp.lt.s32.totalorder %s9264_s21, %s9264_s21 }
 0x126   :  { %p9271_p1 = por %p9270_p0, %p9269_p13 }
 0x128   :  { %312 = dma.hbm_to_vmem [thread:$0]  %s10540_s23, 128, %s307_s30, [#allocation30], %s9404_s8, %s9404_s8, %s9405_s10  }
 0x129   :  { %p9272_p2 = pnand %p9271_p1, %p9265_p12 }
 0x12b   :  { %9275 = shalt.err (!%p9272_p2)
}
 0x12c   :  { %s9422_s29 = smov 64   ;;  %s10541_s4 = sld [smem:[#allocation66_spill]] }
 0x12d   :  { %s9423_s5 = smov 4   ;;  %s9424_s26 = smov [#allocation37]  }
 0x12e   :  { %s356_s1 = sshll.u32 %s9424_s26, 4  ;;  %s9425_s2 = smov [#allocation40]   ;;  %s357_s1 = int_to_ptr.vmem [resolvable:$true] %s356_s1 }
 0x12f   :  { %s382_s7 = sshll.u32 %s9425_s2, 4  ;;  %s9284_s6 = scalar_lea.vmem %s357_s1, 64  ;;  %s383_s7 = int_to_ptr.vmem [resolvable:$true] %s382_s7 }
 0x130   :  { %p9285_p3 = scmp.ne.s32.totalorder %s357_s1, %s9284_s6  ;;  %p9289_p4 = scmp.lt.s32.totalorder %s357_s1, %s357_s1 }
 0x131   :  { %p9290_p5 = scmp.lt.s32.totalorder %s9284_s6, %s9284_s6 }
 0x132   :  { %336 = dma.hbm_to_vmem [thread:$0]  %s10541_s4, 256, %s331_s22, [#allocation33], %s9422_s29, %s9422_s29, %s9423_s5  }
 0x133   :  { %p9291_p6 = por %p9290_p5, %p9289_p4 }
 0x135   :  { %p9292_p7 = pnand %p9291_p6, %p9285_p3 }
 0x137   :  { %9295 = shalt.err (!%p9292_p7)
}
 0x138   :  { %s10542_s27 = sld [smem:[#allocation68_spill]]  ;;  %s9304_s19 = scalar_lea.vmem %s383_s7, 4096 }
 0x139   :  { %p9305_p8 = scmp.ne.s32.totalorder %s383_s7, %s9304_s19  ;;  %p9309_p9 = scmp.lt.s32.totalorder %s383_s7, %s383_s7 }
 0x13a   :  { %p9310_p10 = scmp.lt.s32.totalorder %s9304_s19, %s9304_s19 }
 0x13c   :  { %p9311_p11 = por %p9310_p10, %p9309_p9 }
 0x13e   :  { %362 = dma.hbm_to_vmem [thread:$0]  %s10542_s27, 64, %s357_s1, [#allocation36], %s9404_s8, %s9404_s8, %s9405_s10  }
 0x13f   :  { %p9312_p12 = pnand %p9311_p11, %p9305_p8 }
 0x141   :  { %9315 = shalt.err (!%p9312_p12)
}
 0x142   :  { %388 = dma.hbm_to_vmem [thread:$0]  %s9583_s3, 4096, %s383_s7, [#allocation39], %s9396_s0, %s9396_s0, %s9397_s28  }
 0x143   :  { %9336 = dma.done.wait [#allocation3], 128  }
 0x144   :  { %9337 = vsyncadd [#allocation3], 4294967168 }
 0x145   :  { %9338 = dma.done.wait [#allocation6], 320  }
 0x146   :  { %9339 = vsyncadd [#allocation6], 4294966976 }
 0x147   :  { %9340 = dma.done.wait [#allocation9], 2048  }
 0x148   :  { %9341 = vsyncadd [#allocation9], 4294965248 }
 0x149   :  { %9342 = dma.done.wait [#allocation12], 2112  }
 0x14a   :  { %9343 = vsyncadd [#allocation12], 4294965184 }
 0x14b   :  { %9344 = dma.done.wait [#allocation15], 6208  }
 0x14c   :  { %9345 = vsyncadd [#allocation15], 4294961088 }
 0x14d   :  { %9346 = dma.done.wait [#allocation18], 12416  }
 0x14e   :  { %9347 = vsyncadd [#allocation18], 4294954880 }
 0x14f   :  { %9348 = dma.done.wait [#allocation21], 576  }
 0x150   :  { %9349 = vsyncadd [#allocation21], 4294966720 }
 0x151   :  { %9350 = dma.done.wait [#allocation24], 2112  }
 0x152   :  { %9351 = vsyncadd [#allocation24], 4294965184 }
 0x153   :  { %9352 = dma.done.wait [#allocation27], 4160  }
 0x154   :  { %9353 = vsyncadd [#allocation27], 4294963136 }
 0x155   :  { %9354 = dma.done.wait [#allocation30], 8320  }
 0x156   :  { %9355 = vsyncadd [#allocation30], 4294958976 }
 0x157   :  { %9356 = dma.done.wait [#allocation33], 320  }
 0x158   :  { %9357 = vsyncadd [#allocation33], 4294966976 }
 0x159   :  { %9358 = dma.done.wait [#allocation36], 2112  }
 0x15a   :  { %9359 = vsyncadd [#allocation36], 4294965184 }
 0x15b   :  { %9360 = dma.done.wait [#allocation39], 6144  }
 0x15c   :  { %9361 = vsyncadd [#allocation39], 4294961152  ;;  %s10543_s3 = sld [smem:[#allocation56_spill]]  ;;  %v9426_v0 = vmov 0   ;;  %v9427_v1 = vmov 0.0   ;;  %vm481_vm0 = vcmask 1041408   ;;  %v466_v8 = vlaneseq }
 0x15d   :  { %8747 = vset.pattern.permute.xlu0 %v9426_v0  ;;  %7717 = vmatprep.subr.mxu0 %v9427_v1  ;;  %vm9428_vm1 = vmmov 0   ;;  %v476_v3 = vld [vmem:[#allocation5 + $0x8] sm:$0x3]  ;;  %v475_v4 = vld [vmem:[#allocation5] sm:$0xff]  ;;  %v593_v5 = vld [vmem:[#allocation11 + $0x18] sm:$0xff]  ;;  %vm477_vm3 = vcmask 80896  }
 0x15e   :  { %7724 = vmatprep.subr.mxu1 %v9427_v1  ;;  %7721 = vmatprep.mubr.msk.f32.mxu0 %vm9428_vm1, %v9427_v1  ;;  %v592_v6 = vld [vmem:[#allocation11 + $0x10] sm:$0xff]  ;;  %v591_v7 = vld [vmem:[#allocation11 + $0x8] sm:$0xff]  ;;  %v568_v9 = vshrl.u32 %v466_v8, 7  ;;  %v7116_v12 = vld [vmem:[#allocation7] ss:$0 sm:$0xff]  ;;  %v467_v16 = vand.u32 127, %v466_v8 }
 0x15f   :  { %7732 = vmatprep.mubr.msk.f32.mxu1 %vm9428_vm1, %v9427_v1  ;;  %7718 = vmatpush3.msk.msra.mxu0 %vm481_vm0, %v476_v3  ;;  %v555_v11 = vld [vmem:[#allocation2] sm:$0xff]  ;;  %v8812_v13 = vld [vmem:[#allocation7 + $0x1] ss:$0 sm:$0xff]  ;;  %v9429_v18 = vmov 0.9   ;;  %vm672_vm5 = vcmask 1043456  }
 0x160   :  { %7719 = vmatprep.subr.mxu0 %v9427_v1  ;;  %7725 = vmatpush3.msra.mxu1 %v593_v5  ;;  %v9707_v10 = vsub.s32 0, %v568_v9  ;;  %v565_v14 = vadd.f32 %v7116_v12, %v555_v11  ;;  %v589_v20 = vld [vmem:[#allocation10 + $0x8] sm:$0xf]  ;;  %v588_v22 = vld [vmem:[#allocation10] sm:$0xff]  ;;  %vm668_vm6 = vcmask 97280   ;;  %v767_v26 = vld [vmem:[#allocation14 + $0x50] sm:$0xff] }
 0x161   :  { %7720 = vmatpush3.msra.mxu0 %v475_v4  ;;  %7726 = vmatprep.subr.mxu1 %v9427_v1  ;;  %v590_v24 = vld [vmem:[#allocation11] sm:$0xff]  ;;  %v766_v27 = vld [vmem:[#allocation14 + $0x48] sm:$0xff]  ;;  %v763_v30 = vld [vmem:[#allocation14 + $0x30] sm:$0xff]  ;;  %vm594_vm7 = vcmask 261120   ;;  %vm776_vm9 = vcmask 785408   ;;  %s9430_s0 = smov 12  }
 0x162   :  { %v468_v2 = vld [vmem:[%s10543_s3] sm:$0xff]  ;;  %7735 = vmatprep.subr.mxu0 %v9427_v1  ;;  %7727 = vmatpush3.msra.mxu1 %v592_v6  ;;  %v572_v15 = vmul.f32 %v8812_v13, %v565_v14  ;;  %v768_v25 = vld [vmem:[#allocation14 + $0x58] sm:$0xff]  ;;  %v762_v31 = vld [vmem:[#allocation14 + $0x28] sm:$0xff]  ;;  %s9431_s10 = smov 116   ;;  %s10544_s11 = sld [smem:[#allocation62_spill]] }
 0x163   :  { %470 = vperm.xlu0 %8747, %v468_v2   ;;  %7728 = vmatprep.subr.mxu1 %v9427_v1  ;;  %v765_v28 = vld [vmem:[#allocation14 + $0x40] sm:$0xff]  ;;  %v764_v29 = vld [vmem:[#allocation14 + $0x38] sm:$0xff]  ;;  %v759_v38 = vld [vmem:[#allocation14 + $0x10] sm:$0xff]  ;;  %s9432_s15 = smov 120   ;;  %s10545_s13 = sld [smem:[#allocation67_spill]] }
 0x164   :  { %7729 = vmatpush3.msra.mxu1 %v591_v7  ;;  %vm585_vm2 = vcmp.ge.f32.partialorder %v572_v15, 0.0  ;;  %v761_v32 = vld [vmem:[#allocation14 + $0x20] sm:$0xff]  ;;  %v760_v37 = vld [vmem:[#allocation14 + $0x18] sm:$0xff]  ;;  %v758_v39 = vld [vmem:[#allocation14 + $0x8] sm:$0xff]  ;;  %s10546_s12 = sld [smem:[#allocation69_spill]]  ;;  %s9433_s9 = smov 124  }
 0x165   :  { %7730 = vmatprep.subr.mxu1 %v9427_v1  ;;  %v586_v19 = vsel %vm585_vm2, 1.0, %v9429_v18  ;;  %v757_v40 = vld [vmem:[#allocation14] sm:$0xff]  ;;  %v863_v42 = vld [vmem:[#allocation17 + $0x50] sm:$0xff]  ;;  %v862_v43 = vld [vmem:[#allocation17 + $0x48] sm:$0xff] }
 0x166   :  { %v9711_v23 = vmul.f32 %v586_v19, %v572_v15  ;;  %7731 = vmatpush3.msra.mxu1 %v590_v24  ;;  %v864_v41 = vld [vmem:[#allocation17 + $0x58] sm:$0xff]  ;;  %v861_v44 = vld [vmem:[#allocation17 + $0x40] sm:$0xff]  ;;  %v859_v46 = vld [vmem:[#allocation17 + $0x30] sm:$0xff] }
 0x167   :  { %7769 = vmatprep.subr.mxu1 %v9427_v1  ;;  %v860_v45 = vld [vmem:[#allocation17 + $0x38] sm:$0xff]  ;;  %v858_v47 = vld [vmem:[#allocation17 + $0x28] sm:$0xff]  ;;  %v857_v48 = vld [vmem:[#allocation17 + $0x20] sm:$0xff] }
 0x168   :  { %v856_v49 = vld [vmem:[#allocation17 + $0x18] sm:$0xff]  ;;  %v957_v58 = vld [vmem:[#allocation17 + $0xb0] sm:$0xff]  ;;  %v956_v59 = vld [vmem:[#allocation17 + $0xa8] sm:$0xff] }
 0x169   :  { %v7120_v51 = vld [vmem:[#allocation13] ss:$0 sm:$0xff]  ;;  %v955_v60 = vld [vmem:[#allocation17 + $0xa0] sm:$0xff]  ;;  %v953_v62 = vld [vmem:[#allocation17 + $0x90] sm:$0xff] }
 0x16a   :  { %v958_v56 = vld [vmem:[#allocation17 + $0xb8] sm:$0xff]  ;;  %v952_v63 = vld [vmem:[#allocation17 + $0x88] sm:$0xff]  ;;  %v951_v0 = vld [vmem:[#allocation17 + $0x80] sm:$0xff] }
 0x16b   :  { %v954_v61 = vld [vmem:[#allocation17 + $0x98] sm:$0xff]  ;;  %v855_v3 = vld [vmem:[#allocation17 + $0x10] sm:$0xff]  ;;  %v854_v5 = vld [vmem:[#allocation17 + $0x8] sm:$0xff] }
 0x16c   :  { %v950_v2 = vld [vmem:[#allocation17 + $0x78] sm:$0xff]  ;;  %v949_v4 = vld [vmem:[#allocation17 + $0x70] sm:$0xff]  ;;  %v948_v6 = vld [vmem:[#allocation17 + $0x68] sm:$0xff] }
 0x16d   :  { %v853_v7 = vld [vmem:[#allocation17] sm:$0xff]  ;;  %v7121_v9 = vld [vmem:[#allocation16] ss:$0 sm:$0xff]  ;;  %v1060_v15 = vld [vmem:[#allocation11 + $0x38] sm:$0xff] }
 0x16e   :  { %v947_v8 = vld [vmem:[#allocation17 + $0x60] sm:$0xff] }
 0x16f   :  { %v1058_v19 = vld [vmem:[#allocation11 + $0x28] sm:$0xff] }
 0x1de   :  { %v471_v17 = vpop.permute.xlu0 %470 }
 0x1df   :  { %vm472_vm4 = vcmp.eq.s32.totalorder %v467_v16, %v471_v17  ;;  %v1059_v17 = vld [vmem:[#allocation11 + $0x30] sm:$0xff] }
 0x1e0   :  { %v7113_v21 = vsel %vm472_vm4, 1.0, %v9427_v1  ;;  %vm2890_vm4 = vcmask 64512  }
 0x1e1   :  { %7722 = vmatmul.mubr.msk.f32.vlgmr.msra.gmra.mxu0 %vm477_vm3, %v7113_v21  ;;  %v7123_v21 = vld [vmem:[#allocation19] ss:$0 sm:$0xff] }
 0x1e2   :  { %7736 = vmatpush3.msk.msra.mxu0 %vm672_vm5, %v589_v20  ;;  %7739 = vmatprep.mubr.msk.f32.mxu0 %vm9428_vm1, %v9427_v1  ;;  %v1057_v20 = vld [vmem:[#allocation11 + $0x20] sm:$0xff] }
 0x1e3   :  { %7737 = vmatprep.subr.mxu0 %v9427_v1 }
 0x1e4   :  { %7738 = vmatpush3.msra.mxu0 %v588_v22  ;;  %v7125_v22 = vld [vmem:[#allocation19 + $0x1] ss:$0 sm:$0xff] }
 0x1e5   :  { %7740 = vmatmul.mubr.msk.f32.vlgmr.msra.gmra.mxu0 %vm668_vm6, %v9711_v23  ;;  %7742 = vmatprep.subr.mxu0 %v9427_v1 }
 0x1e6   :  { %7766 = vmatprep.mubr.msk.f32.mxu0 %vm9428_vm1, %v9427_v1  ;;  %7743 = vmatpush3.msra.mxu0 %v768_v25 }
 0x1e7   :  { %7744 = vmatprep.subr.mxu0 %v9427_v1 }
 0x1e8   :  { %7745 = vmatpush3.msra.mxu0 %v767_v26 }
 0x1e9   :  { %7746 = vmatprep.subr.mxu0 %v9427_v1 }
 0x1ea   :  { %7747 = vmatpush3.msra.mxu0 %v766_v27 }
 0x1eb   :  { %7748 = vmatprep.subr.mxu0 %v9427_v1 }
 0x1ec   :  { %7749 = vmatpush3.msra.mxu0 %v765_v28 }
 0x1ed   :  { %7750 = vmatprep.subr.mxu0 %v9427_v1 }
 0x1ee   :  { %7751 = vmatpush3.msra.mxu0 %v764_v29 }
 0x1ef   :  { %7752 = vmatprep.subr.mxu0 %v9427_v1 }
 0x1f0   :  { %7753 = vmatpush3.msra.mxu0 %v763_v30 }
 0x1f1   :  { %7754 = vmatprep.subr.mxu0 %v9427_v1 }
 0x1f2   :  { %7755 = vmatpush3.msra.mxu0 %v762_v31 }
 0x1f3   :  { %7756 = vmatprep.subr.mxu0 %v9427_v1 }
 0x1f4   :  { %7757 = vmatpush3.msra.mxu0 %v761_v32 }
 0x1f5   :  { %7758 = vmatprep.subr.mxu0 %v9427_v1 }
 0x1f6   :  { %7759 = vmatpush3.msra.mxu0 %v760_v37 }
 0x1f7   :  { %7760 = vmatprep.subr.mxu0 %v9427_v1 }
 0x1f8   :  { %7761 = vmatpush3.msra.mxu0 %v759_v38 }
 0x1f9   :  { %7762 = vmatprep.subr.mxu0 %v9427_v1 }
 0x1fa   :  { %7763 = vmatpush3.msra.mxu0 %v758_v39 }
 0x1fb   :  { %7764 = vmatprep.subr.mxu0 %v9427_v1 }
 0x1fc   :  { %7765 = vmatpush3.msra.mxu0 %v757_v40 }
 0x1fd   :  { %7796 = vmatprep.subr.mxu0 %v9427_v1 }
 0x2a1   :  { %v9731_v33 = vpop.f32.mrf.mxu0 }
 0x2a2   :  { %7733 = vmatmul.mubr.msk.f32.vlgmr.msra.gmra.mxu1 %vm594_vm7, %v9731_v33 }
 0x2a3   :  { %v7723_v34 = vpop.f32.mrf.mxu0  ;;  %7793 = vmatprep.mubr.msk.f32.mxu1 %vm9428_vm1, %v9427_v1  ;;  %7770 = vmatpush3.msra.mxu1 %v864_v41 }
 0x2a4   :  { %7771 = vmatprep.subr.mxu1 %v9427_v1 }
 0x2a5   :  { %v742_v35 = vpop.f32.mrf.mxu0  ;;  %7772 = vmatpush3.msra.mxu1 %v863_v42  ;;  %v1233_v42 = vld [vmem:[#allocation14 + $0xb8] sm:$0xff] }
 0x2a6   :  { %7773 = vmatprep.subr.mxu1 %v9427_v1 }
 0x2a7   :  { %v7741_v36 = vpop.f32.mrf.mxu0  ;;  %7774 = vmatpush3.msra.mxu1 %v862_v43 }
 0x2a8   :  { %7775 = vmatprep.subr.mxu1 %v9427_v1  ;;  %v1054_v36 = vld [vmem:[#allocation10 + $0x10] sm:$0xff] }
 0x2a9   :  { %7776 = vmatpush3.msra.mxu1 %v861_v44  ;;  %v1232_v44 = vld [vmem:[#allocation14 + $0xb0] sm:$0xff] }
 0x2aa   :  { %7777 = vmatprep.subr.mxu1 %v9427_v1 }
 0x2ab   :  { %7778 = vmatpush3.msra.mxu1 %v860_v45  ;;  %v1231_v45 = vld [vmem:[#allocation14 + $0xa8] sm:$0xff] }
 0x2ac   :  { %7779 = vmatprep.subr.mxu1 %v9427_v1 }
 0x2ad   :  { %7780 = vmatpush3.msra.mxu1 %v859_v46  ;;  %v1230_v46 = vld [vmem:[#allocation14 + $0xa0] sm:$0xff] }
 0x2ae   :  { %7781 = vmatprep.subr.mxu1 %v9427_v1 }
 0x2af   :  { %7782 = vmatpush3.msra.mxu1 %v858_v47  ;;  %v1229_v47 = vld [vmem:[#allocation14 + $0x98] sm:$0xff] }
 0x2b0   :  { %7783 = vmatprep.subr.mxu1 %v9427_v1 }
 0x2b1   :  { %7784 = vmatpush3.msra.mxu1 %v857_v48  ;;  %v1228_v48 = vld [vmem:[#allocation14 + $0x90] sm:$0xff] }
 0x2b2   :  { %7785 = vmatprep.subr.mxu1 %v9427_v1 }
 0x2b3   :  { %7786 = vmatpush3.msra.mxu1 %v856_v49  ;;  %v1227_v49 = vld [vmem:[#allocation14 + $0x88] sm:$0xff] }
 0x2b4   :  { %7787 = vmatprep.subr.mxu1 %v9427_v1 }
 0x2b5   :  { %7788 = vmatpush3.msra.mxu1 %v855_v3 }
 0x2b6   :  { %7789 = vmatprep.subr.mxu1 %v9427_v1 }
 0x2b7   :  { %7790 = vmatpush3.msra.mxu1 %v854_v5 }
 0x2b8   :  { %7791 = vmatprep.subr.mxu1 %v9427_v1 }
 0x2b9   :  { %7792 = vmatpush3.msra.mxu1 %v853_v7  ;;  %v1425_v7 = vld [vmem:[#allocation17 + $0x178] sm:$0xff] }
 0x2ba   :  { %7823 = vmatprep.subr.mxu1 %v9427_v1 }
 0x362   :  { %v664_v50 = vpop.f32.mrf.mxu1 }
 0x363   :  { %v743_v52 = vadd.f32 %v742_v35, %v664_v50  ;;  %v1055_v35 = vld [vmem:[#allocation10 + $0x18] sm:$0xf]  ;;  %v1226_v50 = vld [vmem:[#allocation14 + $0x80] sm:$0xff] }
 0x364   :  { %v7734_v53 = vpop.f32.mrf.mxu1 }
 0x365   :  { %v753_v54 = vadd.f32 %v7120_v51, %v743_v52  ;;  %v1225_v51 = vld [vmem:[#allocation14 + $0x78] sm:$0xff]  ;;  %v1224_v52 = vld [vmem:[#allocation14 + $0x70] sm:$0xff]  ;;  %v1223_v53 = vld [vmem:[#allocation14 + $0x68] sm:$0xff] }
 0x367   :  { %vm754_vm8 = vcmp.ge.f32.partialorder %v753_v54, 0.0  ;;  %v755_v55 = vmul.f32 0.01, %v753_v54 }
 0x369   :  { %v756_v57 = vsel %vm754_vm8, %v753_v54, %v755_v55  ;;  %v1222_v54 = vld [vmem:[#allocation14 + $0x60] sm:$0xff] }
 0x36a   :  { %7767 = vmatmul.mubr.msk.f32.vlgmr.msra.gmra.mxu0 %vm776_vm9, %v756_v57  ;;  %v1330_v55 = vld [vmem:[#allocation17 + $0x118] sm:$0xff]  ;;  %v1328_v57 = vld [vmem:[#allocation17 + $0x108] sm:$0xff] }
 0x36b   :  { %7797 = vmatpush3.msra.mxu0 %v958_v56  ;;  %7820 = vmatprep.mubr.msk.f32.mxu0 %vm9428_vm1, %v9427_v1  ;;  %v1329_v56 = vld [vmem:[#allocation17 + $0x110] sm:$0xff] }
 0x36c   :  { %7798 = vmatprep.subr.mxu0 %v9427_v1 }
 0x36d   :  { %7799 = vmatpush3.msra.mxu0 %v957_v58  ;;  %v1327_v58 = vld [vmem:[#allocation17 + $0x100] sm:$0xff] }
 0x36e   :  { %7800 = vmatprep.subr.mxu0 %v9427_v1 }
 0x36f   :  { %7801 = vmatpush3.msra.mxu0 %v956_v59  ;;  %v1326_v59 = vld [vmem:[#allocation17 + $0xf8] sm:$0xff] }
 0x370   :  { %7802 = vmatprep.subr.mxu0 %v9427_v1 }
 0x371   :  { %7803 = vmatpush3.msra.mxu0 %v955_v60  ;;  %v1325_v60 = vld [vmem:[#allocation17 + $0xf0] sm:$0xff] }
 0x372   :  { %7804 = vmatprep.subr.mxu0 %v9427_v1 }
 0x373   :  { %7805 = vmatpush3.msra.mxu0 %v954_v61  ;;  %v1324_v61 = vld [vmem:[#allocation17 + $0xe8] sm:$0xff] }
 0x374   :  { %7806 = vmatprep.subr.mxu0 %v9427_v1 }
 0x375   :  { %7807 = vmatpush3.msra.mxu0 %v953_v62  ;;  %v1323_v62 = vld [vmem:[#allocation17 + $0xe0] sm:$0xff] }
 0x376   :  { %7808 = vmatprep.subr.mxu0 %v9427_v1 }
 0x377   :  { %7809 = vmatpush3.msra.mxu0 %v952_v63  ;;  %v1322_v63 = vld [vmem:[#allocation17 + $0xd8] sm:$0xff] }
 0x378   :  { %7810 = vmatprep.subr.mxu0 %v9427_v1 }
 0x379   :  { %7811 = vmatpush3.msra.mxu0 %v951_v0 }
 0x37a   :  { %7812 = vmatprep.subr.mxu0 %v9427_v1 }
 0x37b   :  { %7813 = vmatpush3.msra.mxu0 %v950_v2  ;;  %v7130_v2 = vld [vmem:[#allocation13 + $0x1] ss:$0 sm:$0xff] }
 0x37c   :  { %7814 = vmatprep.subr.mxu0 %v9427_v1 }
 0x37d   :  { %7815 = vmatpush3.msra.mxu0 %v949_v4 }
 0x37e   :  { %7816 = vmatprep.subr.mxu0 %v9427_v1 }
 0x37f   :  { %7817 = vmatpush3.msra.mxu0 %v948_v6 }
 0x380   :  { %7818 = vmatprep.subr.mxu0 %v9427_v1 }
 0x381   :  { %7819 = vmatpush3.msra.mxu0 %v947_v8 }
 0x382   :  { %7868 = vmatprep.subr.mxu0 %v9427_v1 }
 0x42a   :  { %v846_v11 = vpop.f32.mrf.mxu0 }
 0x42b   :  { %v847_v12 = vadd.f32 %v7121_v9, %v846_v11  ;;  %v1424_v9 = vld [vmem:[#allocation17 + $0x170] sm:$0xff]  ;;  %v1423_v11 = vld [vmem:[#allocation17 + $0x168] sm:$0xff] }
 0x42c   :  { %v7768_v13 = vpop.f32.mrf.mxu0 }
 0x42d   :  { %vm850_vm10 = vcmp.ge.f32.partialorder %v847_v12, 0.0  ;;  %v851_v14 = vmul.f32 0.01, %v847_v12  ;;  %v1421_v13 = vld [vmem:[#allocation17 + $0x158] sm:$0xff] }
 0x42f   :  { %v852_v16 = vsel %vm850_vm10, %v847_v12, %v851_v14  ;;  %v1422_v12 = vld [vmem:[#allocation17 + $0x160] sm:$0xff]  ;;  %v1420_v14 = vld [vmem:[#allocation17 + $0x150] sm:$0xff] }
 0x430   :  { %7794 = vmatmul.mubr.msk.f32.vlgmr.msra.gmra.mxu1 %vm776_vm9, %v852_v16  ;;  %7821 = vmatmul.mubr.msk.f32.vlgmr.msra.gmra.mxu0 %vm776_vm9, %v852_v16  ;;  %v1418_v16 = vld [vmem:[#allocation17 + $0x140] sm:$0xff] }
 0x431   :  { %7824 = vmatpush3.msra.mxu1 %v1060_v15  ;;  %7831 = vmatprep.mubr.msk.f32.mxu1 %vm9428_vm1, %v9427_v1  ;;  %v1419_v15 = vld [vmem:[#allocation17 + $0x148] sm:$0xff] }
 0x432   :  { %7825 = vmatprep.subr.mxu1 %v9427_v1  ;;  %7892 = vmatprep.mubr.msk.f32.mxu0 %vm9428_vm1, %v9427_v1 }
 0x433   :  { %7826 = vmatpush3.msra.mxu1 %v1059_v17  ;;  %7869 = vmatpush3.msra.mxu0 %v1330_v55  ;;  %v1417_v17 = vld [vmem:[#allocation17 + $0x138] sm:$0xff] }
 0x434   :  { %7827 = vmatprep.subr.mxu1 %v9427_v1  ;;  %7870 = vmatprep.subr.mxu0 %v9427_v1  ;;  %v1699_v55 = vld [vmem:[#allocation10 + $0x20] sm:$0xff] }
 0x435   :  { %7828 = vmatpush3.msra.mxu1 %v1058_v19  ;;  %7871 = vmatpush3.msra.mxu0 %v1329_v56  ;;  %v1321_v19 = vld [vmem:[#allocation17 + $0xd0] sm:$0xff] }
 0x436   :  { %7829 = vmatprep.subr.mxu1 %v9427_v1  ;;  %7872 = vmatprep.subr.mxu0 %v9427_v1  ;;  %v1876_v56 = vld [vmem:[#allocation14 + $0x118] sm:$0xff] }
 0x437   :  { %7830 = vmatpush3.msra.mxu1 %v1057_v20  ;;  %7873 = vmatpush3.msra.mxu0 %v1328_v57  ;;  %v1416_v20 = vld [vmem:[#allocation17 + $0x130] sm:$0xff] }
 0x438   :  { %7832 = vmatmul.mubr.msk.f32.vlgmr.msra.gmra.mxu1 %vm594_vm7, %v9731_v33  ;;  %7834 = vmatprep.subr.mxu1 %v9427_v1  ;;  %v1875_v57 = vld [vmem:[#allocation14 + $0x110] sm:$0xff] }
 0x439   :  { %7838 = vmatprep.mubr.msk.f32.mxu1 %vm9428_vm1, %v9427_v1  ;;  %7835 = vmatpush3.msk.msra.mxu1 %vm672_vm5, %v1055_v35  ;;  %v1515_v35 = vld [vmem:[#allocation8 + $0x10] sm:$0xff] }
 0x43a   :  { %7836 = vmatprep.subr.mxu1 %v9427_v1  ;;  %7874 = vmatprep.subr.mxu0 %v9427_v1 }
 0x43b   :  { %7837 = vmatpush3.msra.mxu1 %v1054_v36  ;;  %7875 = vmatpush3.msra.mxu0 %v1327_v58  ;;  %v7133_v36 = vld [vmem:[#allocation19 + $0x2] ss:$0 sm:$0xff]  ;;  %v1874_v58 = vld [vmem:[#allocation14 + $0x108] sm:$0xff] }
 0x43c   :  { %7841 = vmatprep.subr.mxu1 %v9427_v1  ;;  %7876 = vmatprep.subr.mxu0 %v9427_v1 }
 0x43d   :  { %7877 = vmatpush3.msra.mxu0 %v1326_v59  ;;  %v1873_v59 = vld [vmem:[#allocation14 + $0x100] sm:$0xff] }
 0x43e   :  { %7878 = vmatprep.subr.mxu0 %v9427_v1 }
 0x43f   :  { %7879 = vmatpush3.msra.mxu0 %v1325_v60  ;;  %v1872_v60 = vld [vmem:[#allocation14 + $0xf8] sm:$0xff] }
 0x440   :  { %7880 = vmatprep.subr.mxu0 %v9427_v1 }
 0x441   :  { %7881 = vmatpush3.msra.mxu0 %v1324_v61  ;;  %v1871_v61 = vld [vmem:[#allocation14 + $0xf0] sm:$0xff] }
 0x442   :  { %7882 = vmatprep.subr.mxu0 %v9427_v1 }
 0x443   :  { %7883 = vmatpush3.msra.mxu0 %v1323_v62  ;;  %v1870_v62 = vld [vmem:[#allocation14 + $0xe8] sm:$0xff] }
 0x444   :  { %7884 = vmatprep.subr.mxu0 %v9427_v1 }
 0x445   :  { %7885 = vmatpush3.msra.mxu0 %v1322_v63  ;;  %v1869_v63 = vld [vmem:[#allocation14 + $0xe0] sm:$0xff] }
 0x446   :  { %7886 = vmatprep.subr.mxu0 %v9427_v1 }
 0x447   :  { %7887 = vmatpush3.msra.mxu0 %v1321_v19  ;;  %v1865_v19 = vld [vmem:[#allocation14 + $0xc0] sm:$0xff] }
 0x448   :  { %7888 = vmatprep.subr.mxu0 %v9427_v1 }
 0x4f0   :  { %v941_v24 = vpop.f32.mrf.mxu1  ;;  %v1033_v25 = vpop.f32.mrf.mxu0 }
 0x4f1   :  { %v942_v26 = vadd.f32 %v7123_v21, %v941_v24  ;;  %v1034_v27 = vadd.f32 %v7125_v22, %v1033_v25  ;;  %v1320_v21 = vld [vmem:[#allocation17 + $0xc8] sm:$0xff]  ;;  %v1319_v24 = vld [vmem:[#allocation17 + $0xc0] sm:$0xff] }
 0x4f2   :  { %v7795_v28 = vpop.f32.mrf.mxu1  ;;  %v7822_v29 = vpop.f32.mrf.mxu0  ;;  %v1415_v22 = vld [vmem:[#allocation17 + $0x128] sm:$0xff]  ;;  %7889 = vmatpush3.msra.mxu0 %v1320_v21  ;;  %v1414_v25 = vld [vmem:[#allocation17 + $0x120] sm:$0xff]  ;;  %v1972_v21 = vld [vmem:[#allocation17 + $0x1d0] sm:$0xff] }
 0x4f3   :  { %8748 = vtanh.f32 %v942_v26  ;;  %1045 = vrot.lane.b32.xlu1 %v1034_v27, %s9430_s0  ;;  %7890 = vmatprep.subr.mxu0 %v9427_v1  ;;  %v7131_v26 = vld [vmem:[#allocation16 + $0x1] ss:$0 sm:$0xff] }
 0x4f4   :  { %7891 = vmatpush3.msra.mxu0 %v1319_v24  ;;  %v1970_v24 = vld [vmem:[#allocation17 + $0x1c0] sm:$0xff] }
 0x4f5   :  { %7922 = vmatprep.subr.mxu0 %v9427_v1 }
 0x4f8   :  { %v9783_v30 = vpop.f32.mrf.mxu1 }
 0x4fa   :  { %v7833_v31 = vpop.f32.mrf.mxu1 }
 0x500   :  { %v9785_v32 = vpop.eup %8748 }
 0x501   :  { %v1037_v34 = vmul.f32 1.442695, %v9785_v32 }
 0x503   :  { %8750 = vpow2.f32 %v1037_v34  ;;  %v1516_v34 = vld [vmem:[#allocation8 + $0x18] sm:$0xf] }
 0x510   :  { %v8751_v37 = vpop.eup %8750 }
 0x511   :  { %1040 = vrot.lane.b32.xlu0 %v8751_v37, %s9430_s0 }
 0x565   :  { %v1046_v40 = vpop.permute.xlu1 %1045 }
 0x583   :  { %v1041_v38 = vpop.permute.xlu0 %1040 }
 0x584   :  { %v1043_v39 = vmul.f32 %v1041_v38, %v9711_v23 }
 0x586   :  { %v1048_v41 = vadd.f32 %v1046_v40, %v1043_v39 }
 0x588   :  { %1132 = vrot.lane.b32.xlu1 %v1048_v41, %s9431_s10 }
 0x5fa   :  { %v9794_v43 = vpop.permute.xlu1 %1132 }
 0x5fb   :  { %7839 = vmatmul.mubr.msk.f32.vlgmr.msra.gmra.mxu1 %vm668_vm6, %v9794_v43 }
 0x5fc   :  { %7842 = vmatpush3.msra.mxu1 %v1233_v42  ;;  %7865 = vmatprep.mubr.msk.f32.mxu1 %vm9428_vm1, %v9427_v1 }
 0x5fd   :  { %7843 = vmatprep.subr.mxu1 %v9427_v1 }
 0x5fe   :  { %7844 = vmatpush3.msra.mxu1 %v1232_v44 }
 0x5ff   :  { %7845 = vmatprep.subr.mxu1 %v9427_v1 }
 0x600   :  { %7846 = vmatpush3.msra.mxu1 %v1231_v45  ;;  %v7135_v45 = vld [vmem:[#allocation19 + $0x3] ss:$0 sm:$0xff] }
 0x601   :  { %7847 = vmatprep.subr.mxu1 %v9427_v1 }
 0x602   :  { %7848 = vmatpush3.msra.mxu1 %v1230_v46 }
 0x603   :  { %7849 = vmatprep.subr.mxu1 %v9427_v1 }
 0x604   :  { %7850 = vmatpush3.msra.mxu1 %v1229_v47 }
 0x605   :  { %7851 = vmatprep.subr.mxu1 %v9427_v1 }
 0x606   :  { %7852 = vmatpush3.msra.mxu1 %v1228_v48 }
 0x607   :  { %7853 = vmatprep.subr.mxu1 %v9427_v1 }
 0x608   :  { %7854 = vmatpush3.msra.mxu1 %v1227_v49 }
 0x609   :  { %7855 = vmatprep.subr.mxu1 %v9427_v1 }
 0x60a   :  { %7856 = vmatpush3.msra.mxu1 %v1226_v50  ;;  %v1513_v50 = vld [vmem:[#allocation8 + $0x8] sm:$0xf] }
 0x60b   :  { %7857 = vmatprep.subr.mxu1 %v9427_v1 }
 0x60c   :  { %7858 = vmatpush3.msra.mxu1 %v1225_v51  ;;  %v1512_v51 = vld [vmem:[#allocation8] sm:$0xff] }
 0x60d   :  { %7859 = vmatprep.subr.mxu1 %v9427_v1 }
 0x60e   :  { %7860 = vmatpush3.msra.mxu1 %v1224_v52  ;;  %v1705_v52 = vld [vmem:[#allocation11 + $0x58] sm:$0xff] }
 0x60f   :  { %7861 = vmatprep.subr.mxu1 %v9427_v1 }
 0x610   :  { %7862 = vmatpush3.msra.mxu1 %v1223_v53  ;;  %v1703_v53 = vld [vmem:[#allocation11 + $0x48] sm:$0xff] }
 0x611   :  { %7863 = vmatprep.subr.mxu1 %v9427_v1 }
 0x612   :  { %7864 = vmatpush3.msra.mxu1 %v1222_v54  ;;  %v1702_v54 = vld [vmem:[#allocation11 + $0x40] sm:$0xff] }
 0x613   :  { %7895 = vmatprep.subr.mxu1 %v9427_v1 }
 0x6bb   :  { %v1205_v0 = vpop.f32.mrf.mxu1 }
 0x6bc   :  { %v1206_v3 = vadd.f32 %v1205_v0, %v9783_v30 }
 0x6bd   :  { %v7840_v4 = vpop.f32.mrf.mxu1 }
 0x6be   :  { %v1217_v5 = vadd.f32 %v7130_v2, %v1206_v3  ;;  %v8813_v3 = vld [vmem:[#allocation7 + $0x3] ss:$0 sm:$0xff] }
 0x6c0   :  { %vm1218_vm11 = vcmp.ge.f32.partialorder %v1217_v5, 0.0  ;;  %v1219_v6 = vmul.f32 0.01, %v1217_v5 }
 0x6c2   :  { %v1220_v8 = vsel %vm1218_vm11, %v1217_v5, %v1219_v6  ;;  %v7141_v5 = vld [vmem:[#allocation7 + $0x2] ss:$0 sm:$0xff] }
 0x6c3   :  { %7866 = vmatmul.mubr.msk.f32.vlgmr.msra.gmra.mxu1 %vm776_vm9, %v1220_v8 }
 0x6c4   :  { %7896 = vmatpush3.msra.mxu1 %v1425_v7  ;;  %7919 = vmatprep.mubr.msk.f32.mxu1 %vm9428_vm1, %v9427_v1 }
 0x6c5   :  { %7897 = vmatprep.subr.mxu1 %v9427_v1 }
 0x6c6   :  { %7898 = vmatpush3.msra.mxu1 %v1424_v9 }
 0x6c7   :  { %7899 = vmatprep.subr.mxu1 %v9427_v1 }
 0x6c8   :  { %7900 = vmatpush3.msra.mxu1 %v1423_v11 }
 0x6c9   :  { %7901 = vmatprep.subr.mxu1 %v9427_v1 }
 0x6ca   :  { %7902 = vmatpush3.msra.mxu1 %v1422_v12 }
 0x6cb   :  { %7903 = vmatprep.subr.mxu1 %v9427_v1 }
 0x6cc   :  { %7904 = vmatpush3.msra.mxu1 %v1421_v13 }
 0x6cd   :  { %7905 = vmatprep.subr.mxu1 %v9427_v1 }
 0x6ce   :  { %7906 = vmatpush3.msra.mxu1 %v1420_v14 }
 0x6cf   :  { %7907 = vmatprep.subr.mxu1 %v9427_v1 }
 0x6d0   :  { %7908 = vmatpush3.msra.mxu1 %v1419_v15  ;;  %v1868_v15 = vld [vmem:[#allocation14 + $0xd8] sm:$0xff] }
 0x6d1   :  { %7909 = vmatprep.subr.mxu1 %v9427_v1 }
 0x6d2   :  { %7910 = vmatpush3.msra.mxu1 %v1418_v16  ;;  %v1867_v16 = vld [vmem:[#allocation14 + $0xd0] sm:$0xff] }
 0x6d3   :  { %7911 = vmatprep.subr.mxu1 %v9427_v1 }
 0x6d4   :  { %7912 = vmatpush3.msra.mxu1 %v1417_v17  ;;  %v1866_v17 = vld [vmem:[#allocation14 + $0xc8] sm:$0xff] }
 0x6d5   :  { %7913 = vmatprep.subr.mxu1 %v9427_v1 }
 0x6d6   :  { %7914 = vmatpush3.msra.mxu1 %v1416_v20  ;;  %v1973_v20 = vld [vmem:[#allocation17 + $0x1d8] sm:$0xff] }
 0x6d7   :  { %7915 = vmatprep.subr.mxu1 %v9427_v1 }
 0x6d8   :  { %7916 = vmatpush3.msra.mxu1 %v1415_v22  ;;  %v1971_v22 = vld [vmem:[#allocation17 + $0x1c8] sm:$0xff] }
 0x6d9   :  { %7917 = vmatprep.subr.mxu1 %v9427_v1 }
 0x6da   :  { %7918 = vmatpush3.msra.mxu1 %v1414_v25  ;;  %v1969_v25 = vld [vmem:[#allocation17 + $0x1b8] sm:$0xff] }
 0x6db   :  { %7947 = vmatprep.subr.mxu1 %v9427_v1 }
 0x783   :  { %v1311_v27 = vpop.f32.mrf.mxu1 }
 0x784   :  { %v1312_v28 = vadd.f32 %v7131_v26, %v1311_v27  ;;  %v1968_v26 = vld [vmem:[#allocation17 + $0x1b0] sm:$0xff]  ;;  %v1967_v27 = vld [vmem:[#allocation17 + $0x1a8] sm:$0xff] }
 0x785   :  { %v7867_v29 = vpop.f32.mrf.mxu1 }
 0x786   :  { %vm1315_vm12 = vcmp.ge.f32.partialorder %v1312_v28, 0.0  ;;  %v1316_v30 = vmul.f32 0.01, %v1312_v28  ;;  %v1965_v29 = vld [vmem:[#allocation17 + $0x198] sm:$0xff] }
 0x788   :  { %v1317_v31 = vsel %vm1315_vm12, %v1312_v28, %v1316_v30  ;;  %v1966_v28 = vld [vmem:[#allocation17 + $0x1a0] sm:$0xff] }
 0x789   :  { %7893 = vmatmul.mubr.msk.f32.vlgmr.msra.gmra.mxu0 %vm776_vm9, %v1317_v31  ;;  %7920 = vmatmul.mubr.msk.f32.vlgmr.msra.gmra.mxu1 %vm776_vm9, %v1317_v31  ;;  %v7145_v31 = vld [vmem:[#allocation13 + $0x2] ss:$0 sm:$0xff] }
 0x78a   :  { %7926 = vmatprep.mubr.msk.f32.mxu0 %vm9428_vm1, %v9427_v1  ;;  %7951 = vmatprep.mubr.msk.f32.mxu1 %vm9428_vm1, %v9427_v1 }
 0x78b   :  { %7923 = vmatpush3.msk.msra.mxu0 %vm672_vm5, %v1516_v34 }
 0x78c   :  { %7924 = vmatprep.subr.mxu0 %v9427_v1 }
 0x78d   :  { %7925 = vmatpush3.msra.mxu0 %v1515_v35 }
 0x78e   :  { %7929 = vmatprep.subr.mxu0 %v9427_v1 }
 0x849   :  { %v1408_v37 = vpop.f32.mrf.mxu0  ;;  %v1500_v38 = vpop.f32.mrf.mxu1 }
 0x84a   :  { %v1409_v39 = vadd.f32 %v7133_v36, %v1408_v37  ;;  %v1501_v47 = vadd.f32 %v7135_v45, %v1500_v38  ;;  %v2068_v38 = vld [vmem:[#allocation17 + $0x238] sm:$0xff] }
 0x84b   :  { %v7894_v40 = vpop.f32.mrf.mxu0  ;;  %v7921_v41 = vpop.f32.mrf.mxu1  ;;  %v2064_v45 = vld [vmem:[#allocation17 + $0x218] sm:$0xff] }
 0x84c   :  { %8752 = vtanh.f32 %v1409_v39  ;;  %v2067_v40 = vld [vmem:[#allocation17 + $0x230] sm:$0xff]  ;;  %v2066_v41 = vld [vmem:[#allocation17 + $0x228] sm:$0xff] }
 0x859   :  { %v9849_v42 = vpop.eup %8752 }
 0x85a   :  { %v1504_v44 = vmul.f32 1.442695, %v9849_v42 }
 0x85c   :  { %8754 = vpow2.f32 %v1504_v44  ;;  %v2065_v44 = vld [vmem:[#allocation17 + $0x220] sm:$0xff] }
 0x869   :  { %v8755_v46 = vpop.eup %8754 }
 0x86a   :  { %v1506_v48 = vmul.f32 %v8755_v46, %v9711_v23  ;;  %v1704_v23 = vld [vmem:[#allocation11 + $0x50] sm:$0xff]  ;;  %v2063_v46 = vld [vmem:[#allocation17 + $0x210] sm:$0xff] }
 0x86c   :  { %v1507_v49 = vadd.f32 %v1506_v48, %v1501_v47  ;;  %v2062_v47 = vld [vmem:[#allocation17 + $0x208] sm:$0xff]  ;;  %v2061_v48 = vld [vmem:[#allocation17 + $0x200] sm:$0xff] }
 0x86e   :  { %7927 = vmatmul.mubr.msk.f32.vlgmr.msra.gmra.mxu0 %vm668_vm6, %v1507_v49  ;;  %v2060_v49 = vld [vmem:[#allocation17 + $0x1f8] sm:$0xff] }
 0x86f   :  { %7930 = vmatpush3.msk.msra.mxu0 %vm672_vm5, %v1513_v50  ;;  %7933 = vmatprep.mubr.msk.f32.mxu0 %vm9428_vm1, %v9427_v1  ;;  %v1964_v50 = vld [vmem:[#allocation17 + $0x190] sm:$0xff] }
 0x870   :  { %7931 = vmatprep.subr.mxu0 %v9427_v1 }
 0x871   :  { %7932 = vmatpush3.msra.mxu0 %v1512_v51  ;;  %v2059_v51 = vld [vmem:[#allocation17 + $0x1f0] sm:$0xff] }
 0x872   :  { %7936 = vmatprep.subr.mxu0 %v9427_v1  ;;  %7934 = vmatmul.mubr.msk.f32.vlgmr.msra.gmra.mxu0 %vm668_vm6, %v9794_v43  ;;  %v1700_v43 = vld [vmem:[#allocation10 + $0x28] sm:$0xf] }
 0x873   :  { %7937 = vmatpush3.msra.mxu0 %v1705_v52  ;;  %7944 = vmatprep.mubr.msk.f32.mxu0 %vm9428_vm1, %v9427_v1  ;;  %v1963_v52 = vld [vmem:[#allocation17 + $0x188] sm:$0xff] }
 0x874   :  { %7938 = vmatprep.subr.mxu0 %v9427_v1  ;;  %7948 = vmatpush3.msk.msra.mxu1 %vm672_vm5, %v1700_v43  ;;  %v7146_v43 = vld [vmem:[#allocation16 + $0x2] ss:$0 sm:$0xff] }
 0x875   :  { %7939 = vmatpush3.msra.mxu0 %v1704_v23  ;;  %7949 = vmatprep.subr.mxu1 %v9427_v1  ;;  %v2058_v23 = vld [vmem:[#allocation17 + $0x1e8] sm:$0xff] }
 0x876   :  { %7940 = vmatprep.subr.mxu0 %v9427_v1  ;;  %7950 = vmatpush3.msra.mxu1 %v1699_v55 }
 0x877   :  { %7941 = vmatpush3.msra.mxu0 %v1703_v53  ;;  %7981 = vmatprep.subr.mxu1 %v9427_v1  ;;  %v1962_v53 = vld [vmem:[#allocation17 + $0x180] sm:$0xff] }
 0x878   :  { %7942 = vmatprep.subr.mxu0 %v9427_v1 }
 0x879   :  { %7943 = vmatpush3.msra.mxu0 %v1702_v54  ;;  %v2057_v54 = vld [vmem:[#allocation17 + $0x1e0] sm:$0xff] }
 0x87a   :  { %7945 = vmatmul.mubr.msk.f32.vlgmr.msra.gmra.mxu0 %vm594_vm7, %v9731_v33  ;;  %7954 = vmatprep.subr.mxu0 %v9427_v1 }
 0x87b   :  { %7978 = vmatprep.mubr.msk.f32.mxu0 %vm9428_vm1, %v9427_v1  ;;  %7955 = vmatpush3.msra.mxu0 %v1876_v56 }
 0x87c   :  { %7956 = vmatprep.subr.mxu0 %v9427_v1 }
 0x87d   :  { %7957 = vmatpush3.msra.mxu0 %v1875_v57 }
 0x87e   :  { %7958 = vmatprep.subr.mxu0 %v9427_v1 }
 0x87f   :  { %7959 = vmatpush3.msra.mxu0 %v1874_v58 }
 0x880   :  { %7960 = vmatprep.subr.mxu0 %v9427_v1 }
 0x881   :  { %7961 = vmatpush3.msra.mxu0 %v1873_v59  ;;  %v2170_v59 = vld [vmem:[#allocation11 + $0x78] sm:$0xff] }
 0x882   :  { %7962 = vmatprep.subr.mxu0 %v9427_v1 }
 0x883   :  { %7963 = vmatpush3.msra.mxu0 %v1872_v60 }
 0x884   :  { %7964 = vmatprep.subr.mxu0 %v9427_v1 }
 0x885   :  { %7965 = vmatpush3.msra.mxu0 %v1871_v61  ;;  %v2169_v61 = vld [vmem:[#allocation11 + $0x70] sm:$0xff] }
 0x886   :  { %7966 = vmatprep.subr.mxu0 %v9427_v1 }
 0x887   :  { %7967 = vmatpush3.msra.mxu0 %v1870_v62  ;;  %v2168_v62 = vld [vmem:[#allocation11 + $0x68] sm:$0xff] }
 0x888   :  { %7968 = vmatprep.subr.mxu0 %v9427_v1 }
 0x889   :  { %7969 = vmatpush3.msra.mxu0 %v1869_v63  ;;  %v2167_v63 = vld [vmem:[#allocation11 + $0x60] sm:$0xff] }
 0x88a   :  { %7970 = vmatprep.subr.mxu0 %v9427_v1 }
 0x88b   :  { %7971 = vmatpush3.msra.mxu0 %v1868_v15  ;;  %v2165_v15 = vld [vmem:[#allocation10 + $0x38] sm:$0xf] }
 0x88c   :  { %7972 = vmatprep.subr.mxu0 %v9427_v1 }
 0x88d   :  { %7973 = vmatpush3.msra.mxu0 %v1867_v16  ;;  %v2164_v16 = vld [vmem:[#allocation10 + $0x30] sm:$0xff] }
 0x88e   :  { %7974 = vmatprep.subr.mxu0 %v9427_v1 }
 0x88f   :  { %7975 = vmatpush3.msra.mxu0 %v1866_v17 }
 0x890   :  { %7976 = vmatprep.subr.mxu0 %v9427_v1 }
 0x891   :  { %7977 = vmatpush3.msra.mxu0 %v1865_v19 }
 0x892   :  { %8008 = vmatprep.subr.mxu0 %v9427_v1 }
 0x92e   :  { %v1589_v0 = vpop.f32.mrf.mxu0 }
 0x930   :  { %v7928_v2 = vpop.f32.mrf.mxu0 }
 0x931   :  { %v7150_v2 = vld [vmem:[#allocation19 + $0x5] ss:$0 sm:$0xff] }
 0x932   :  { %v1662_v4 = vpop.f32.mrf.mxu0 }
 0x933   :  { %v1663_v6 = vadd.f32 %v1662_v4, %v1589_v0  ;;  %v7148_v0 = vld [vmem:[#allocation19 + $0x4] ss:$0 sm:$0xff] }
 0x934   :  { %v7935_v7 = vpop.f32.mrf.mxu0 }
 0x935   :  { %v1676_v8 = vadd.f32 %v7141_v5, %v1663_v6 }
 0x937   :  { %v1683_v9 = vmul.f32 %v8813_v3, %v1676_v8 }
 0x939   :  { %vm1695_vm13 = vcmp.ge.f32.partialorder %v1683_v9, 0.0 }
 0x93a   :  { %v1696_v11 = vsel %vm1695_vm13, 1.0, %v9429_v18  ;;  %v1772_v12 = vpop.f32.mrf.mxu0 }
 0x93b   :  { %v9883_v13 = vmul.f32 %v1696_v11, %v1683_v9 }
 0x93c   :  { %v7946_v14 = vpop.f32.mrf.mxu0 }
 0x93d   :  { %7952 = vmatmul.mubr.msk.f32.vlgmr.msra.gmra.mxu1 %vm668_vm6, %v9883_v13 }
 0x93e   :  { %8005 = vmatprep.mubr.msk.f32.mxu1 %vm9428_vm1, %v9427_v1  ;;  %7982 = vmatpush3.msra.mxu1 %v1973_v20 }
 0x93f   :  { %7983 = vmatprep.subr.mxu1 %v9427_v1 }
 0x940   :  { %7984 = vmatpush3.msra.mxu1 %v1972_v21 }
 0x941   :  { %7985 = vmatprep.subr.mxu1 %v9427_v1 }
 0x942   :  { %7986 = vmatpush3.msra.mxu1 %v1971_v22 }
 0x943   :  { %7987 = vmatprep.subr.mxu1 %v9427_v1 }
 0x944   :  { %7988 = vmatpush3.msra.mxu1 %v1970_v24  ;;  %v2343_v24 = vld [vmem:[#allocation14 + $0x178] sm:$0xff] }
 0x945   :  { %7989 = vmatprep.subr.mxu1 %v9427_v1 }
 0x946   :  { %7990 = vmatpush3.msra.mxu1 %v1969_v25 }
 0x947   :  { %7991 = vmatprep.subr.mxu1 %v9427_v1 }
 0x948   :  { %7992 = vmatpush3.msra.mxu1 %v1968_v26  ;;  %v2342_v26 = vld [vmem:[#allocation14 + $0x170] sm:$0xff] }
 0x949   :  { %7993 = vmatprep.subr.mxu1 %v9427_v1 }
 0x94a   :  { %7994 = vmatpush3.msra.mxu1 %v1967_v27  ;;  %v2341_v27 = vld [vmem:[#allocation14 + $0x168] sm:$0xff] }
 0x94b   :  { %7995 = vmatprep.subr.mxu1 %v9427_v1 }
 0x94c   :  { %7996 = vmatpush3.msra.mxu1 %v1966_v28  ;;  %v2340_v28 = vld [vmem:[#allocation14 + $0x160] sm:$0xff] }
 0x94d   :  { %7997 = vmatprep.subr.mxu1 %v9427_v1 }
 0x94e   :  { %7998 = vmatpush3.msra.mxu1 %v1965_v29  ;;  %v2339_v29 = vld [vmem:[#allocation14 + $0x158] sm:$0xff] }
 0x94f   :  { %7999 = vmatprep.subr.mxu1 %v9427_v1 }
 0x950   :  { %8000 = vmatpush3.msra.mxu1 %v1964_v50 }
 0x951   :  { %8001 = vmatprep.subr.mxu1 %v9427_v1 }
 0x952   :  { %8002 = vmatpush3.msra.mxu1 %v1963_v52 }
 0x953   :  { %8003 = vmatprep.subr.mxu1 %v9427_v1 }
 0x954   :  { %8004 = vmatpush3.msra.mxu1 %v1962_v53 }
 0x955   :  { %8035 = vmatprep.subr.mxu1 %v9427_v1 }
 0x9fd   :  { %v1848_v30 = vpop.f32.mrf.mxu1 }
 0x9fe   :  { %v1849_v34 = vadd.f32 %v1848_v30, %v1772_v12  ;;  %v2338_v30 = vld [vmem:[#allocation14 + $0x150] sm:$0xff] }
 0x9ff   :  { %v7953_v35 = vpop.f32.mrf.mxu1 }
 0xa00   :  { %v1860_v36 = vadd.f32 %v7145_v31, %v1849_v34  ;;  %v2337_v31 = vld [vmem:[#allocation14 + $0x148] sm:$0xff]  ;;  %v2336_v34 = vld [vmem:[#allocation14 + $0x140] sm:$0xff]  ;;  %v2335_v35 = vld [vmem:[#allocation14 + $0x138] sm:$0xff] }
 0xa02   :  { %vm1861_vm14 = vcmp.ge.f32.partialorder %v1860_v36, 0.0  ;;  %v1862_v37 = vmul.f32 0.01, %v1860_v36 }
 0xa04   :  { %v1863_v39 = vsel %vm1861_vm14, %v1860_v36, %v1862_v37  ;;  %v2334_v36 = vld [vmem:[#allocation14 + $0x130] sm:$0xff]  ;;  %v2333_v37 = vld [vmem:[#allocation14 + $0x128] sm:$0xff] }
 0xa05   :  { %7979 = vmatmul.mubr.msk.f32.vlgmr.msra.gmra.mxu0 %vm776_vm9, %v1863_v39  ;;  %v2440_v39 = vld [vmem:[#allocation17 + $0x298] sm:$0xff] }
 0xa06   :  { %8009 = vmatpush3.msra.mxu0 %v2068_v38  ;;  %8032 = vmatprep.mubr.msk.f32.mxu0 %vm9428_vm1, %v9427_v1  ;;  %v2332_v38 = vld [vmem:[#allocation14 + $0x120] sm:$0xff] }
 0xa07   :  { %8010 = vmatprep.subr.mxu0 %v9427_v1 }
 0xa08   :  { %8011 = vmatpush3.msra.mxu0 %v2067_v40  ;;  %v2439_v40 = vld [vmem:[#allocation17 + $0x290] sm:$0xff] }
 0xa09   :  { %8012 = vmatprep.subr.mxu0 %v9427_v1 }
 0xa0a   :  { %8013 = vmatpush3.msra.mxu0 %v2066_v41  ;;  %v2438_v41 = vld [vmem:[#allocation17 + $0x288] sm:$0xff] }
 0xa0b   :  { %8014 = vmatprep.subr.mxu0 %v9427_v1 }
 0xa0c   :  { %8015 = vmatpush3.msra.mxu0 %v2065_v44  ;;  %v2437_v44 = vld [vmem:[#allocation17 + $0x280] sm:$0xff] }
 0xa0d   :  { %8016 = vmatprep.subr.mxu0 %v9427_v1 }
 0xa0e   :  { %8017 = vmatpush3.msra.mxu0 %v2064_v45  ;;  %v2436_v45 = vld [vmem:[#allocation17 + $0x278] sm:$0xff] }
 0xa0f   :  { %8018 = vmatprep.subr.mxu0 %v9427_v1 }
 0xa10   :  { %8019 = vmatpush3.msra.mxu0 %v2063_v46  ;;  %v2435_v46 = vld [vmem:[#allocation17 + $0x270] sm:$0xff] }
 0xa11   :  { %8020 = vmatprep.subr.mxu0 %v9427_v1 }
 0xa12   :  { %8021 = vmatpush3.msra.mxu0 %v2062_v47  ;;  %v2434_v47 = vld [vmem:[#allocation17 + $0x268] sm:$0xff] }
 0xa13   :  { %8022 = vmatprep.subr.mxu0 %v9427_v1 }
 0xa14   :  { %8023 = vmatpush3.msra.mxu0 %v2061_v48  ;;  %v2433_v48 = vld [vmem:[#allocation17 + $0x260] sm:$0xff] }
 0xa15   :  { %8024 = vmatprep.subr.mxu0 %v9427_v1 }
 0xa16   :  { %8025 = vmatpush3.msra.mxu0 %v2060_v49  ;;  %v2432_v49 = vld [vmem:[#allocation17 + $0x258] sm:$0xff] }
 0xa17   :  { %8026 = vmatprep.subr.mxu0 %v9427_v1 }
 0xa18   :  { %8027 = vmatpush3.msra.mxu0 %v2059_v51  ;;  %v7155_v51 = vld [vmem:[#allocation13 + $0x3] ss:$0 sm:$0xff] }
 0xa19   :  { %8028 = vmatprep.subr.mxu0 %v9427_v1 }
 0xa1a   :  { %8029 = vmatpush3.msra.mxu0 %v2058_v23 }
 0xa1b   :  { %8030 = vmatprep.subr.mxu0 %v9427_v1 }
 0xa1c   :  { %8031 = vmatpush3.msra.mxu0 %v2057_v54 }
 0xa1d   :  { %8080 = vmatprep.subr.mxu0 %v9427_v1 }
 0xac5   :  { %v1954_v55 = vpop.f32.mrf.mxu0 }
 0xac6   :  { %v1955_v56 = vadd.f32 %v7146_v43, %v1954_v55  ;;  %v2535_v43 = vld [vmem:[#allocation17 + $0x2f8] sm:$0xff] }
 0xac7   :  { %v7980_v57 = vpop.f32.mrf.mxu0 }
 0xac8   :  { %vm1958_vm15 = vcmp.ge.f32.partialorder %v1955_v56, 0.0  ;;  %v1959_v58 = vmul.f32 0.01, %v1955_v56  ;;  %v2533_v57 = vld [vmem:[#allocation17 + $0x2e8] sm:$0xff] }
 0xaca   :  { %v1960_v60 = vsel %vm1958_vm15, %v1955_v56, %v1959_v58  ;;  %v2534_v56 = vld [vmem:[#allocation17 + $0x2f0] sm:$0xff]  ;;  %v2532_v58 = vld [vmem:[#allocation17 + $0x2e0] sm:$0xff] }
 0xacb   :  { %8006 = vmatmul.mubr.msk.f32.vlgmr.msra.gmra.mxu1 %vm776_vm9, %v1960_v60  ;;  %8033 = vmatmul.mubr.msk.f32.vlgmr.msra.gmra.mxu0 %vm776_vm9, %v1960_v60  ;;  %v2530_v60 = vld [vmem:[#allocation17 + $0x2d0] sm:$0xff] }
 0xacc   :  { %8036 = vmatpush3.msra.mxu1 %v2170_v59  ;;  %8043 = vmatprep.mubr.msk.f32.mxu1 %vm9428_vm1, %v9427_v1  ;;  %v2531_v59 = vld [vmem:[#allocation17 + $0x2d8] sm:$0xff] }
 0xacd   :  { %8037 = vmatprep.subr.mxu1 %v9427_v1  ;;  %8104 = vmatprep.mubr.msk.f32.mxu0 %vm9428_vm1, %v9427_v1 }
 0xace   :  { %8038 = vmatpush3.msra.mxu1 %v2169_v61  ;;  %8081 = vmatpush3.msra.mxu0 %v2440_v39  ;;  %v2529_v61 = vld [vmem:[#allocation17 + $0x2c8] sm:$0xff] }
 0xacf   :  { %8039 = vmatprep.subr.mxu1 %v9427_v1  ;;  %8082 = vmatprep.subr.mxu0 %v9427_v1  ;;  %v2819_v39 = vld [vmem:[#allocation23 + $0x18] sm:$0xff] }
 0xad0   :  { %8040 = vmatpush3.msra.mxu1 %v2168_v62  ;;  %8083 = vmatpush3.msra.mxu0 %v2439_v40  ;;  %v2528_v62 = vld [vmem:[#allocation17 + $0x2c0] sm:$0xff]  ;;  %v2817_v40 = vld [vmem:[#allocation23 + $0x8] sm:$0xff] }
 0xad1   :  { %8041 = vmatprep.subr.mxu1 %v9427_v1  ;;  %8084 = vmatprep.subr.mxu0 %v9427_v1 }
 0xad2   :  { %8042 = vmatpush3.msra.mxu1 %v2167_v63  ;;  %8085 = vmatpush3.msra.mxu0 %v2438_v41  ;;  %v2527_v63 = vld [vmem:[#allocation17 + $0x2b8] sm:$0xff]  ;;  %v2816_v41 = vld [vmem:[#allocation23] sm:$0xff] }
 0xad3   :  { %8044 = vmatmul.mubr.msk.f32.vlgmr.msra.gmra.mxu1 %vm594_vm7, %v9731_v33  ;;  %8046 = vmatprep.subr.mxu1 %v9427_v1 }
 0xad4   :  { %8050 = vmatprep.mubr.msk.f32.mxu1 %vm9428_vm1, %v9427_v1  ;;  %8047 = vmatpush3.msk.msra.mxu1 %vm672_vm5, %v2165_v15 }
 0xad5   :  { %8048 = vmatprep.subr.mxu1 %v9427_v1  ;;  %8086 = vmatprep.subr.mxu0 %v9427_v1 }
 0xad6   :  { %8049 = vmatpush3.msra.mxu1 %v2164_v16  ;;  %8087 = vmatpush3.msra.mxu0 %v2437_v44  ;;  %v2627_v16 = vld [vmem:[#allocation8 + $0x38] sm:$0xf]  ;;  %v2815_v44 = vld [vmem:[%s10544_s11] sm:$0xff] }
 0xad7   :  { %8053 = vmatprep.subr.mxu1 %v9427_v1  ;;  %8088 = vmatprep.subr.mxu0 %v9427_v1 }
 0xad8   :  { %8089 = vmatpush3.msra.mxu0 %v2436_v45 }
 0xad9   :  { %8090 = vmatprep.subr.mxu0 %v9427_v1 }
 0xada   :  { %8091 = vmatpush3.msra.mxu0 %v2435_v46  ;;  %v2982_v46 = vld [vmem:[#allocation26 + $0x38] sm:$0xff] }
 0xadb   :  { %8092 = vmatprep.subr.mxu0 %v9427_v1 }
 0xadc   :  { %8093 = vmatpush3.msra.mxu0 %v2434_v47  ;;  %v2981_v47 = vld [vmem:[#allocation26 + $0x30] sm:$0xff] }
 0xadd   :  { %8094 = vmatprep.subr.mxu0 %v9427_v1 }
 0xade   :  { %8095 = vmatpush3.msra.mxu0 %v2433_v48 }
 0xadf   :  { %8096 = vmatprep.subr.mxu0 %v9427_v1 }
 0xae0   :  { %8097 = vmatpush3.msra.mxu0 %v2432_v49 }
 0xae1   :  { %8098 = vmatprep.subr.mxu0 %v9427_v1 }
 0xb8b   :  { %v2051_v3 = vpop.f32.mrf.mxu1  ;;  %v2143_v4 = vpop.f32.mrf.mxu0 }
 0xb8c   :  { %v2052_v5 = vadd.f32 %v7148_v0, %v2051_v3  ;;  %v2144_v6 = vadd.f32 %v7150_v2, %v2143_v4  ;;  %v2431_v0 = vld [vmem:[#allocation17 + $0x250] sm:$0xff]  ;;  %v2430_v3 = vld [vmem:[#allocation17 + $0x248] sm:$0xff] }
 0xb8d   :  { %v8007_v7 = vpop.f32.mrf.mxu1  ;;  %v8034_v8 = vpop.f32.mrf.mxu0  ;;  %v2526_v2 = vld [vmem:[#allocation17 + $0x2b0] sm:$0xff]  ;;  %8099 = vmatpush3.msra.mxu0 %v2431_v0  ;;  %v2525_v4 = vld [vmem:[#allocation17 + $0x2a8] sm:$0xff] }
 0xb8e   :  { %8756 = vtanh.f32 %v2052_v5  ;;  %2155 = vrot.lane.b32.xlu1 %v2144_v6, %s9430_s0  ;;  %8100 = vmatprep.subr.mxu0 %v9427_v1  ;;  %v2429_v5 = vld [vmem:[#allocation17 + $0x240] sm:$0xff]  ;;  %v7156_v7 = vld [vmem:[#allocation16 + $0x3] ss:$0 sm:$0xff]  ;;  %v3074_v0 = vld [vmem:[#allocation29 + $0x38] sm:$0xff] }
 0xb8f   :  { %8101 = vmatpush3.msra.mxu0 %v2430_v3  ;;  %v2524_v6 = vld [vmem:[#allocation17 + $0x2a0] sm:$0xff] }
 0xb90   :  { %8102 = vmatprep.subr.mxu0 %v9427_v1  ;;  %v3072_v3 = vld [vmem:[#allocation29 + $0x28] sm:$0xff] }
 0xb91   :  { %8103 = vmatpush3.msra.mxu0 %v2429_v5  ;;  %v3070_v5 = vld [vmem:[#allocation29 + $0x18] sm:$0xff] }
 0xb92   :  { %8134 = vmatprep.subr.mxu0 %v9427_v1 }
 0xb93   :  { %v9935_v9 = vpop.f32.mrf.mxu1 }
 0xb95   :  { %v8045_v11 = vpop.f32.mrf.mxu1 }
 0xb9b   :  { %v9937_v12 = vpop.eup %8756 }
 0xb9c   :  { %v2147_v14 = vmul.f32 1.442695, %v9937_v12 }
 0xb9e   :  { %8758 = vpow2.f32 %v2147_v14 }
 0xbab   :  { %v8759_v17 = vpop.eup %8758 }
 0xbac   :  { %2150 = vrot.lane.b32.xlu0 %v8759_v17, %s9430_s0  ;;  %v2626_v17 = vld [vmem:[#allocation8 + $0x30] sm:$0xff] }
 0xc00   :  { %v2156_v21 = vpop.permute.xlu1 %2155 }
 0xc1e   :  { %v2151_v19 = vpop.permute.xlu0 %2150 }
 0xc1f   :  { %v2153_v20 = vmul.f32 %v2151_v19, %v9883_v13  ;;  %v7166_v19 = vld [vmem:[#allocation20] ss:$0 sm:$0xff] }
 0xc20   :  { %2785 = vrot.lane.b32.xlu1 %v7166_v19, %s9397_s28  ;;  %v3162_v19 = vld [vmem:[#allocation29 + $0x68] sm:$0xff] }
 0xc21   :  { %v2158_v22 = vadd.f32 %v2156_v21, %v2153_v20  ;;  %v7158_v20 = vld [vmem:[#allocation19 + $0x6] ss:$0 sm:$0xff] }
 0xc23   :  { %2242 = vrot.lane.b32.xlu0 %v2158_v22, %s9431_s10 }
 0xc92   :  { %v2786_v49 = vpop.permute.xlu1 %2785 }
 0xc95   :  { %v9946_v25 = vpop.permute.xlu0 %2242 }
 0xc96   :  { %8051 = vmatmul.mubr.msk.f32.vlgmr.msra.gmra.mxu1 %vm668_vm6, %v9946_v25 }
 0xc97   :  { %8054 = vmatpush3.msra.mxu1 %v2343_v24  ;;  %8077 = vmatprep.mubr.msk.f32.mxu1 %vm9428_vm1, %v9427_v1 }
 0xc98   :  { %8055 = vmatprep.subr.mxu1 %v9427_v1 }
 0xc99   :  { %8056 = vmatpush3.msra.mxu1 %v2342_v26 }
 0xc9a   :  { %8057 = vmatprep.subr.mxu1 %v9427_v1 }
 0xc9b   :  { %8058 = vmatpush3.msra.mxu1 %v2341_v27 }
 0xc9c   :  { %8059 = vmatprep.subr.mxu1 %v9427_v1 }
 0xc9d   :  { %8060 = vmatpush3.msra.mxu1 %v2340_v28 }
 0xc9e   :  { %8061 = vmatprep.subr.mxu1 %v9427_v1 }
 0xc9f   :  { %8062 = vmatpush3.msra.mxu1 %v2339_v29 }
 0xca0   :  { %8063 = vmatprep.subr.mxu1 %v9427_v1 }
 0xca1   :  { %8064 = vmatpush3.msra.mxu1 %v2338_v30  ;;  %v7160_v30 = vld [vmem:[#allocation19 + $0x7] ss:$0 sm:$0xff] }
 0xca2   :  { %8065 = vmatprep.subr.mxu1 %v9427_v1 }
 0xca3   :  { %8066 = vmatpush3.msra.mxu1 %v2337_v31 }
 0xca4   :  { %8067 = vmatprep.subr.mxu1 %v9427_v1 }
 0xca5   :  { %8068 = vmatpush3.msra.mxu1 %v2336_v34 }
 0xca6   :  { %8069 = vmatprep.subr.mxu1 %v9427_v1 }
 0xca7   :  { %8070 = vmatpush3.msra.mxu1 %v2335_v35 }
 0xca8   :  { %8071 = vmatprep.subr.mxu1 %v9427_v1 }
 0xca9   :  { %8072 = vmatpush3.msra.mxu1 %v2334_v36 }
 0xcaa   :  { %8073 = vmatprep.subr.mxu1 %v9427_v1 }
 0xcab   :  { %8074 = vmatpush3.msra.mxu1 %v2333_v37  ;;  %v2624_v37 = vld [vmem:[#allocation8 + $0x28] sm:$0xf] }
 0xcac   :  { %8075 = vmatprep.subr.mxu1 %v9427_v1 }
 0xcad   :  { %8076 = vmatpush3.msra.mxu1 %v2332_v38  ;;  %v2623_v38 = vld [vmem:[#allocation8 + $0x20] sm:$0xff] }
 0xcae   :  { %8107 = vmatprep.subr.mxu1 %v9427_v1 }
 0xd56   :  { %v2315_v50 = vpop.f32.mrf.mxu1 }
 0xd57   :  { %v2316_v52 = vadd.f32 %v2315_v50, %v9935_v9  ;;  %v2980_v50 = vld [vmem:[#allocation26 + $0x28] sm:$0xff] }
 0xd58   :  { %v8052_v23 = vpop.f32.mrf.mxu1 }
 0xd59   :  { %v2327_v53 = vadd.f32 %v7155_v51, %v2316_v52  ;;  %v2979_v23 = vld [vmem:[#allocation26 + $0x20] sm:$0xff] }
 0xd5b   :  { %vm2328_vm0 = vcmp.ge.f32.partialorder %v2327_v53, 0.0  ;;  %v2329_v54 = vmul.f32 0.01, %v2327_v53 }
 0xd5d   :  { %v2330_v55 = vsel %vm2328_vm0, %v2327_v53, %v2329_v54 }
 0xd5e   :  { %8078 = vmatmul.mubr.msk.f32.vlgmr.msra.gmra.mxu1 %vm776_vm9, %v2330_v55  ;;  %v8814_v55 = vld [vmem:[#allocation20 + $0x1] ss:$0 sm:$0xff] }
 0xd5f   :  { %8108 = vmatpush3.msra.mxu1 %v2535_v43  ;;  %8131 = vmatprep.mubr.msk.f32.mxu1 %vm9428_vm1, %v9427_v1 }
 0xd60   :  { %8109 = vmatprep.subr.mxu1 %v9427_v1 }
 0xd61   :  { %8110 = vmatpush3.msra.mxu1 %v2534_v56 }
 0xd62   :  { %8111 = vmatprep.subr.mxu1 %v9427_v1 }
 0xd63   :  { %8112 = vmatpush3.msra.mxu1 %v2533_v57 }
 0xd64   :  { %8113 = vmatprep.subr.mxu1 %v9427_v1 }
 0xd65   :  { %8114 = vmatpush3.msra.mxu1 %v2532_v58 }
 0xd66   :  { %8115 = vmatprep.subr.mxu1 %v9427_v1 }
 0xd67   :  { %8116 = vmatpush3.msra.mxu1 %v2531_v59 }
 0xd68   :  { %8117 = vmatprep.subr.mxu1 %v9427_v1 }
 0xd69   :  { %8118 = vmatpush3.msra.mxu1 %v2530_v60  ;;  %v2978_v60 = vld [vmem:[#allocation26 + $0x18] sm:$0xff] }
 0xd6a   :  { %8119 = vmatprep.subr.mxu1 %v9427_v1 }
 0xd6b   :  { %8120 = vmatpush3.msra.mxu1 %v2529_v61  ;;  %v2977_v61 = vld [vmem:[#allocation26 + $0x10] sm:$0xff] }
 0xd6c   :  { %8121 = vmatprep.subr.mxu1 %v9427_v1 }
 0xd6d   :  { %8122 = vmatpush3.msra.mxu1 %v2528_v62  ;;  %v2976_v62 = vld [vmem:[#allocation26 + $0x8] sm:$0xff] }
 0xd6e   :  { %8123 = vmatprep.subr.mxu1 %v9427_v1 }
 0xd6f   :  { %8124 = vmatpush3.msra.mxu1 %v2527_v63  ;;  %v2975_v63 = vld [vmem:[#allocation26] sm:$0xff] }
 0xd70   :  { %8125 = vmatprep.subr.mxu1 %v9427_v1 }
 0xd71   :  { %8126 = vmatpush3.msra.mxu1 %v2526_v2  ;;  %v3073_v2 = vld [vmem:[#allocation29 + $0x30] sm:$0xff] }
 0xd72   :  { %8127 = vmatprep.subr.mxu1 %v9427_v1 }
 0xd73   :  { %8128 = vmatpush3.msra.mxu1 %v2525_v4  ;;  %v3071_v4 = vld [vmem:[#allocation29 + $0x20] sm:$0xff] }
 0xd74   :  { %8129 = vmatprep.subr.mxu1 %v9427_v1 }
 0xd75   :  { %8130 = vmatpush3.msra.mxu1 %v2524_v6 }
 0xd76   :  { %8159 = vmatprep.subr.mxu1 %v9427_v1 }
 0xe1e   :  { %v2421_v8 = vpop.f32.mrf.mxu1 }
 0xe1f   :  { %v2422_v9 = vadd.f32 %v7156_v7, %v2421_v8  ;;  %v7169_v7 = vld [vmem:[#allocation25] ss:$0 sm:$0xff] }
 0xe20   :  { %v8079_v11 = vpop.f32.mrf.mxu1 }
 0xe21   :  { %vm2425_vm2 = vcmp.ge.f32.partialorder %v2422_v9, 0.0  ;;  %v2426_v14 = vmul.f32 0.01, %v2422_v9 }
 0xe23   :  { %v2427_v15 = vsel %vm2425_vm2, %v2422_v9, %v2426_v14 }
 0xe24   :  { %8105 = vmatmul.mubr.msk.f32.vlgmr.msra.gmra.mxu0 %vm776_vm9, %v2427_v15  ;;  %8132 = vmatmul.mubr.msk.f32.vlgmr.msra.gmra.mxu1 %vm776_vm9, %v2427_v15  ;;  %vm2990_vm9 = vcmask 523264   ;;  %v3164_v15 = vld [vmem:[#allocation29 + $0x78] sm:$0xff] }
 0xe25   :  { %8138 = vmatprep.mubr.msk.f32.mxu0 %vm9428_vm1, %v9427_v1  ;;  %8161 = vmatprep.mubr.msk.f32.mxu1 %vm9428_vm1, %v9427_v1 }
 0xe26   :  { %8135 = vmatpush3.msk.msra.mxu0 %vm672_vm5, %v2627_v16  ;;  %8160 = vmatpush3.msra.mxu1 %v2815_v44  ;;  %v7174_v44 = vld [vmem:[#allocation31 + $0x1] ss:$0 sm:$0xff] }
 0xe27   :  { %8136 = vmatprep.subr.mxu0 %v9427_v1  ;;  %8183 = vmatprep.subr.mxu1 %v9427_v1 }
 0xe28   :  { %8137 = vmatpush3.msra.mxu0 %v2626_v17  ;;  %v3163_v17 = vld [vmem:[#allocation29 + $0x70] sm:$0xff] }
 0xe29   :  { %8141 = vmatprep.subr.mxu0 %v9427_v1 }
 0xee4   :  { %v2518_v21 = vpop.f32.mrf.mxu0  ;;  %v2610_v22 = vpop.f32.mrf.mxu1 }
 0xee5   :  { %v2519_v24 = vadd.f32 %v7158_v20, %v2518_v21  ;;  %v2611_v34 = vadd.f32 %v7160_v30, %v2610_v22  ;;  %v3161_v20 = vld [vmem:[#allocation29 + $0x60] sm:$0xff]  ;;  %v3160_v21 = vld [vmem:[#allocation29 + $0x58] sm:$0xff]  ;;  %v3069_v22 = vld [vmem:[#allocation29 + $0x10] sm:$0xff] }
 0xee6   :  { %v8106_v26 = vpop.f32.mrf.mxu0  ;;  %v8133_v27 = vpop.f32.mrf.mxu1  ;;  %v3157_v30 = vld [vmem:[#allocation29 + $0x40] sm:$0xff] }
 0xee7   :  { %8760 = vtanh.f32 %v2519_v24  ;;  %v3159_v24 = vld [vmem:[#allocation29 + $0x50] sm:$0xff]  ;;  %v3068_v26 = vld [vmem:[#allocation29 + $0x8] sm:$0xff] }
 0xee8   :  { %v3158_v27 = vld [vmem:[#allocation29 + $0x48] sm:$0xff] }
 0xef4   :  { %v10002_v28 = vpop.eup %8760 }
 0xef5   :  { %v2614_v29 = vmul.f32 1.442695, %v10002_v28 }
 0xef7   :  { %8762 = vpow2.f32 %v2614_v29  ;;  %v3067_v29 = vld [vmem:[#allocation29] sm:$0xff] }
 0xf04   :  { %v8763_v31 = vpop.eup %8762 }
 0xf05   :  { %v2616_v35 = vmul.f32 %v8763_v31, %v9883_v13  ;;  %v2818_v13 = vld [vmem:[#allocation23 + $0x10] sm:$0xff]  ;;  %v7170_v31 = vld [vmem:[#allocation28] ss:$0 sm:$0xff] }
 0xf07   :  { %v2617_v36 = vadd.f32 %v2616_v35, %v2611_v34 }
 0xf09   :  { %8139 = vmatmul.mubr.msk.f32.vlgmr.msra.gmra.mxu0 %vm668_vm6, %v2617_v36 }
 0xf0a   :  { %8142 = vmatpush3.msk.msra.mxu0 %vm672_vm5, %v2624_v37  ;;  %8145 = vmatprep.mubr.msk.f32.mxu0 %vm9428_vm1, %v9427_v1 }
 0xf0b   :  { %8143 = vmatprep.subr.mxu0 %v9427_v1 }
 0xf0c   :  { %8144 = vmatpush3.msra.mxu0 %v2623_v38  ;;  %v3265_v38 = vld [vmem:[#allocation23 + $0x38] sm:$0xff] }
 0xf0d   :  { %8148 = vmatprep.subr.mxu0 %v9427_v1  ;;  %8146 = vmatmul.mubr.msk.f32.vlgmr.msra.gmra.mxu0 %vm668_vm6, %v9946_v25 }
 0xf0e   :  { %8149 = vmatpush3.msra.mxu0 %v2819_v39  ;;  %8156 = vmatprep.mubr.msk.f32.mxu0 %vm9428_vm1, %v9427_v1 }
 0xf0f   :  { %8150 = vmatprep.subr.mxu0 %v9427_v1 }
 0xf10   :  { %8151 = vmatpush3.msra.mxu0 %v2818_v13  ;;  %v3264_v13 = vld [vmem:[#allocation23 + $0x30] sm:$0xff] }
 0xf11   :  { %8152 = vmatprep.subr.mxu0 %v9427_v1 }
 0xf12   :  { %8153 = vmatpush3.msra.mxu0 %v2817_v40  ;;  %v3263_v40 = vld [vmem:[#allocation23 + $0x28] sm:$0xff] }
 0xf13   :  { %8154 = vmatprep.subr.mxu0 %v9427_v1 }
 0xf14   :  { %8155 = vmatpush3.msra.mxu0 %v2816_v41  ;;  %v3262_v41 = vld [vmem:[#allocation23 + $0x20] sm:$0xff] }
 0xf15   :  { %8157 = vmatmul.mubr.msk.f32.vlgmr.msra.gmra.mxu0 %vm594_vm7, %v9731_v33  ;;  %8164 = vmatprep.subr.mxu0 %v9427_v1 }
 0xf16   :  { %8180 = vmatprep.mubr.msk.f32.mxu0 %vm9428_vm1, %v9427_v1  ;;  %8165 = vmatpush3.msra.mxu0 %v2982_v46 }
 0xf17   :  { %8166 = vmatprep.subr.mxu0 %v9427_v1 }
 0xf18   :  { %8167 = vmatpush3.msra.mxu0 %v2981_v47 }
 0xf19   :  { %8168 = vmatprep.subr.mxu0 %v9427_v1 }
 0xf1a   :  { %8169 = vmatpush3.msra.mxu0 %v2980_v50 }
 0xf1b   :  { %8170 = vmatprep.subr.mxu0 %v9427_v1 }
 0xf1c   :  { %8171 = vmatpush3.msra.mxu0 %v2979_v23 }
 0xf1d   :  { %8172 = vmatprep.subr.mxu0 %v9427_v1 }
 0xf1e   :  { %8173 = vmatpush3.msra.mxu0 %v2978_v60 }
 0xf1f   :  { %8174 = vmatprep.subr.mxu0 %v9427_v1 }
 0xf20   :  { %8175 = vmatpush3.msra.mxu0 %v2977_v61  ;;  %v3431_v61 = vld [vmem:[#allocation26 + $0x78] sm:$0xff] }
 0xf21   :  { %8176 = vmatprep.subr.mxu0 %v9427_v1 }
 0xf22   :  { %8177 = vmatpush3.msra.mxu0 %v2976_v62 }
 0xf23   :  { %8178 = vmatprep.subr.mxu0 %v9427_v1 }
 0xf24   :  { %8179 = vmatpush3.msra.mxu0 %v2975_v63  ;;  %v3430_v63 = vld [vmem:[#allocation26 + $0x70] sm:$0xff] }
 0xf25   :  { %8202 = vmatprep.subr.mxu0 %v9427_v1 }
 0xfc9   :  { %v2700_v25 = vpop.f32.mrf.mxu0 }
 0xfcb   :  { %v8140_v45 = vpop.f32.mrf.mxu0 }
 0xfcd   :  { %v2773_v48 = vpop.f32.mrf.mxu0 }
 0xfce   :  { %v10027_v51 = vadd.f32 %v2773_v48, %v2700_v25  ;;  %v7172_v25 = vld [vmem:[#allocation31] ss:$0 sm:$0xff] }
 0xfcf   :  { %v8147_v52 = vpop.f32.mrf.mxu0 }
 0xfd0   :  { %v2788_v53 = vadd.f32 %v2786_v49, %v10027_v51 }
 0xfd2   :  { %2796 = vrot.lane.b32.xlu0 %v2788_v53, %s9432_s15 }
 0xfd5   :  { %v2886_v54 = vpop.f32.mrf.mxu0 }
 0xfd7   :  { %v8158_v43 = vpop.f32.mrf.mxu0 }
 0xfd8   :  { %v7176_v43 = vld [vmem:[%s10544_s11 + $0x8] sm:$0xff] }
0x1044   :  { %v2797_v56 = vpop.permute.xlu0 %2796 }
0x1045   :  { %v2799_v57 = vmul.f32 %v8814_v55, %v2797_v56 }
0x1047   :  { %vm2812_vm3 = vcmp.ge.f32.partialorder %v2799_v57, 0.0 }
0x1048   :  { %v2813_v58 = vsel %vm2812_vm3, 1.0, %v9429_v18 }
0x1049   :  { %v10035_v59 = vmul.f32 %v2813_v58, %v2799_v57 }
0x104b   :  { %8162 = vmatmul.mubr.msk.f32.vlgmr.msra.gmra.mxu1 %vm2890_vm4, %v10035_v59 }
0x104c   :  { %8199 = vmatprep.mubr.msk.f32.mxu1 %vm9428_vm1, %v9427_v1  ;;  %8184 = vmatpush3.msra.mxu1 %v3074_v0  ;;  %v3429_v0 = vld [vmem:[#allocation26 + $0x68] sm:$0xff] }
0x104d   :  { %8185 = vmatprep.subr.mxu1 %v9427_v1 }
0x104e   :  { %8186 = vmatpush3.msra.mxu1 %v3073_v2  ;;  %v3428_v2 = vld [vmem:[#allocation26 + $0x60] sm:$0xff] }
0x104f   :  { %8187 = vmatprep.subr.mxu1 %v9427_v1 }
0x1050   :  { %8188 = vmatpush3.msra.mxu1 %v3072_v3  ;;  %v3427_v3 = vld [vmem:[#allocation26 + $0x58] sm:$0xff] }
0x1051   :  { %8189 = vmatprep.subr.mxu1 %v9427_v1 }
0x1052   :  { %8190 = vmatpush3.msra.mxu1 %v3071_v4  ;;  %v3426_v4 = vld [vmem:[#allocation26 + $0x50] sm:$0xff] }
0x1053   :  { %8191 = vmatprep.subr.mxu1 %v9427_v1 }
0x1054   :  { %8192 = vmatpush3.msra.mxu1 %v3070_v5  ;;  %v3425_v5 = vld [vmem:[#allocation26 + $0x48] sm:$0xff] }
0x1055   :  { %8193 = vmatprep.subr.mxu1 %v9427_v1 }
0x1056   :  { %8194 = vmatpush3.msra.mxu1 %v3069_v22  ;;  %v3615_v22 = vld [vmem:[#allocation29 + $0xf8] sm:$0xff] }
0x1057   :  { %8195 = vmatprep.subr.mxu1 %v9427_v1 }
0x1058   :  { %8196 = vmatpush3.msra.mxu1 %v3068_v26  ;;  %v3614_v26 = vld [vmem:[#allocation29 + $0xf0] sm:$0xff] }
0x1059   :  { %8197 = vmatprep.subr.mxu1 %v9427_v1 }
0x105a   :  { %8198 = vmatpush3.msra.mxu1 %v3067_v29  ;;  %v3612_v29 = vld [vmem:[#allocation29 + $0xe0] sm:$0xff] }
0x105b   :  { %8221 = vmatprep.subr.mxu1 %v9427_v1 }
0x110b   :  { %v2960_v6 = vpop.f32.mrf.mxu1 }
0x110c   :  { %v2961_v8 = vadd.f32 %v2960_v6, %v2886_v54  ;;  %v3424_v6 = vld [vmem:[#allocation26 + $0x40] sm:$0xff] }
0x110d   :  { %v8163_v9 = vpop.f32.mrf.mxu1 }
0x110e   :  { %v2971_v11 = vadd.f32 %v7169_v7, %v2961_v8  ;;  %v3524_v7 = vld [vmem:[#allocation29 + $0xb8] sm:$0xff]  ;;  %v3523_v8 = vld [vmem:[#allocation29 + $0xb0] sm:$0xff]  ;;  %v3522_v9 = vld [vmem:[#allocation29 + $0xa8] sm:$0xff] }
0x1110   :  { %vm2972_vm8 = vcmp.ge.f32.partialorder %v2971_v11, 0.0  ;;  %v2973_v14 = vmul.f32 0.01, %v2971_v11 }
0x1112   :  { %v2974_v16 = vsel %vm2972_vm8, %v2971_v11, %v2973_v14  ;;  %v3521_v11 = vld [vmem:[#allocation29 + $0xa0] sm:$0xff]  ;;  %v3520_v14 = vld [vmem:[#allocation29 + $0x98] sm:$0xff]  ;;  %vm5032_vm8 = vcmask 31744  }
0x1113   :  { %8181 = vmatmul.mubr.msk.f32.vlgmr.msra.gmra.mxu0 %vm2990_vm9, %v2974_v16  ;;  %v7179_v16 = vld [vmem:[#allocation25 + $0x1] ss:$0 sm:$0xff] }
0x1114   :  { %8203 = vmatpush3.msra.mxu0 %v3164_v15  ;;  %8218 = vmatprep.mubr.msk.f32.mxu0 %vm9428_vm1, %v9427_v1 }
0x1115   :  { %8204 = vmatprep.subr.mxu0 %v9427_v1 }
0x1116   :  { %8205 = vmatpush3.msra.mxu0 %v3163_v17 }
0x1117   :  { %8206 = vmatprep.subr.mxu0 %v9427_v1 }
0x1118   :  { %8207 = vmatpush3.msra.mxu0 %v3162_v19 }
0x1119   :  { %8208 = vmatprep.subr.mxu0 %v9427_v1 }
0x111a   :  { %8209 = vmatpush3.msra.mxu0 %v3161_v20 }
0x111b   :  { %8210 = vmatprep.subr.mxu0 %v9427_v1 }
0x111c   :  { %8211 = vmatpush3.msra.mxu0 %v3160_v21 }
0x111d   :  { %8212 = vmatprep.subr.mxu0 %v9427_v1 }
0x111e   :  { %8213 = vmatpush3.msra.mxu0 %v3159_v24 }
0x111f   :  { %8214 = vmatprep.subr.mxu0 %v9427_v1 }
0x1120   :  { %8215 = vmatpush3.msra.mxu0 %v3158_v27  ;;  %v3613_v27 = vld [vmem:[#allocation29 + $0xe8] sm:$0xff] }
0x1121   :  { %8216 = vmatprep.subr.mxu0 %v9427_v1 }
0x1122   :  { %8217 = vmatpush3.msra.mxu0 %v3157_v30  ;;  %v3611_v30 = vld [vmem:[#allocation29 + $0xd8] sm:$0xff] }
0x1123   :  { %8256 = vmatprep.subr.mxu0 %v9427_v1 }
0x11d3   :  { %v3060_v34 = vpop.f32.mrf.mxu0 }
0x11d4   :  { %v3061_v35 = vadd.f32 %v7170_v31, %v3060_v34  ;;  %v3519_v31 = vld [vmem:[#allocation29 + $0x90] sm:$0xff] }
0x11d5   :  { %v8182_v36 = vpop.f32.mrf.mxu0  ;;  %v3610_v34 = vld [vmem:[#allocation29 + $0xd0] sm:$0xff] }
0x11d6   :  { %vm3064_vm10 = vcmp.ge.f32.partialorder %v3061_v35, 0.0  ;;  %v3065_v37 = vmul.f32 0.01, %v3061_v35  ;;  %v3609_v36 = vld [vmem:[#allocation29 + $0xc8] sm:$0xff] }
0x11d8   :  { %v3066_v39 = vsel %vm3064_vm10, %v3061_v35, %v3065_v37  ;;  %v3518_v35 = vld [vmem:[#allocation29 + $0x88] sm:$0xff]  ;;  %v3517_v37 = vld [vmem:[#allocation29 + $0x80] sm:$0xff] }
0x11d9   :  { %8200 = vmatmul.mubr.msk.f32.vlgmr.msra.gmra.mxu1 %vm2990_vm9, %v3066_v39  ;;  %8219 = vmatmul.mubr.msk.f32.vlgmr.msra.gmra.mxu0 %vm2990_vm9, %v3066_v39  ;;  %v7180_v39 = vld [vmem:[#allocation28 + $0x1] ss:$0 sm:$0xff] }
0x11da   :  { %8222 = vmatpush3.msra.mxu1 %v3265_v38  ;;  %8229 = vmatprep.mubr.msk.f32.mxu1 %vm9428_vm1, %v9427_v1  ;;  %v3608_v38 = vld [vmem:[#allocation29 + $0xc0] sm:$0xff] }
0x11db   :  { %8223 = vmatprep.subr.mxu1 %v9427_v1  ;;  %8272 = vmatprep.mubr.msk.f32.mxu0 %vm9428_vm1, %v9427_v1 }
0x11dc   :  { %8224 = vmatpush3.msra.mxu1 %v3264_v13  ;;  %8257 = vmatpush3.msra.mxu0 %v3524_v7 }
0x11dd   :  { %8225 = vmatprep.subr.mxu1 %v9427_v1  ;;  %8258 = vmatprep.subr.mxu0 %v9427_v1 }
0x11de   :  { %8226 = vmatpush3.msra.mxu1 %v3263_v40  ;;  %8259 = vmatpush3.msra.mxu0 %v3523_v8  ;;  %v8815_v8 = vld [vmem:[#allocation20 + $0x3] ss:$0 sm:$0xff] }
0x11df   :  { %8227 = vmatprep.subr.mxu1 %v9427_v1  ;;  %8260 = vmatprep.subr.mxu0 %v9427_v1 }
0x11e0   :  { %8228 = vmatpush3.msra.mxu1 %v3262_v41  ;;  %8261 = vmatpush3.msra.mxu0 %v3522_v9 }
0x11e1   :  { %8230 = vmatmul.mubr.msk.f32.vlgmr.msra.gmra.mxu1 %vm594_vm7, %v9731_v33  ;;  %8232 = vmatprep.subr.mxu1 %v9427_v1 }
0x11e2   :  { %8234 = vmatprep.mubr.msk.f32.mxu1 %vm9428_vm1, %v9427_v1  ;;  %8233 = vmatpush3.msra.mxu1 %v7176_v43  ;;  %v7184_v43 = vld [vmem:[#allocation31 + $0x3] ss:$0 sm:$0xff] }
0x11e3   :  { %8237 = vmatprep.subr.mxu1 %v9427_v1  ;;  %8262 = vmatprep.subr.mxu0 %v9427_v1 }
0x11e4   :  { %8263 = vmatpush3.msra.mxu0 %v3521_v11  ;;  %v7188_v11 = vld [vmem:[#allocation20 + $0x2] ss:$0 sm:$0xff] }
0x11e5   :  { %8264 = vmatprep.subr.mxu0 %v9427_v1 }
0x11e6   :  { %8265 = vmatpush3.msra.mxu0 %v3520_v14 }
0x11e7   :  { %8266 = vmatprep.subr.mxu0 %v9427_v1 }
0x11e8   :  { %8267 = vmatpush3.msra.mxu0 %v3519_v31  ;;  %v4142_v31 = vld [vmem:[#allocation29 + $0x130] sm:$0xff] }
0x11e9   :  { %8268 = vmatprep.subr.mxu0 %v9427_v1 }
0x11ea   :  { %8269 = vmatpush3.msra.mxu0 %v3518_v35  ;;  %v4140_v35 = vld [vmem:[#allocation29 + $0x120] sm:$0xff] }
0x11eb   :  { %8270 = vmatprep.subr.mxu0 %v9427_v1 }
0x11ec   :  { %8271 = vmatpush3.msra.mxu0 %v3517_v37 }
0x11ed   :  { %8294 = vmatprep.subr.mxu0 %v9427_v1 }
0x1299   :  { %v3151_v45 = vpop.f32.mrf.mxu1  ;;  %v3239_v46 = vpop.f32.mrf.mxu0 }
0x129a   :  { %v3152_v47 = vadd.f32 %v7172_v25, %v3151_v45  ;;  %v3240_v48 = vadd.f32 %v7174_v44, %v3239_v46  ;;  %v3704_v45 = vld [vmem:[#allocation22 + $0x8] sm:$0xff] }
0x129b   :  { %v8201_v49 = vpop.f32.mrf.mxu1  ;;  %v8220_v50 = vpop.f32.mrf.mxu0  ;;  %v7182_v46 = vld [vmem:[#allocation31 + $0x2] ss:$0 sm:$0xff] }
0x129c   :  { %8764 = vtanh.f32 %v3152_v47  ;;  %3251 = vrot.lane.b32.xlu0 %v3240_v48, %s9397_s28 }
0x12a1   :  { %v3332_v52 = vpop.f32.mrf.mxu1 }
0x12a3   :  { %v8231_v23 = vpop.f32.mrf.mxu1 }
0x12a9   :  { %v10079_v53 = vpop.eup %8764 }
0x12aa   :  { %v3243_v54 = vmul.f32 1.442695, %v10079_v53 }
0x12ac   :  { %8766 = vpow2.f32 %v3243_v54 }
0x12b9   :  { %v8767_v55 = vpop.eup %8766 }
0x12ba   :  { %3246 = vrot.lane.b32.xlu1 %v8767_v55, %s9397_s28 }
0x130e   :  { %v3252_v58 = vpop.permute.xlu0 %3251 }
0x132c   :  { %v3247_v56 = vpop.permute.xlu1 %3246 }
0x132d   :  { %v3249_v57 = vmul.f32 %v3247_v56, %v10035_v59 }
0x132f   :  { %v3254_v60 = vadd.f32 %v3252_v58, %v3249_v57 }
0x1331   :  { %3337 = vrot.lane.b32.xlu1 %v3254_v60, %s9432_s15  ;;  %v3702_v60 = vld [vmem:[#allocation22] sm:$0xff] }
0x13a3   :  { %v10087_v62 = vpop.permute.xlu1 %3337 }
0x13a4   :  { %8235 = vmatmul.mubr.msk.f32.vlgmr.msra.gmra.mxu1 %vm2890_vm4, %v10087_v62 }
0x13a5   :  { %8238 = vmatpush3.msra.mxu1 %v3431_v61  ;;  %8253 = vmatprep.mubr.msk.f32.mxu1 %vm9428_vm1, %v9427_v1  ;;  %v3886_v61 = vld [vmem:[#allocation23 + $0x58] sm:$0xff] }
0x13a6   :  { %8239 = vmatprep.subr.mxu1 %v9427_v1 }
0x13a7   :  { %8240 = vmatpush3.msra.mxu1 %v3430_v63  ;;  %v3885_v63 = vld [vmem:[#allocation23 + $0x50] sm:$0xff] }
0x13a8   :  { %8241 = vmatprep.subr.mxu1 %v9427_v1 }
0x13a9   :  { %8242 = vmatpush3.msra.mxu1 %v3429_v0  ;;  %v3883_v0 = vld [vmem:[#allocation23 + $0x40] sm:$0xff] }
0x13aa   :  { %8243 = vmatprep.subr.mxu1 %v9427_v1 }
0x13ab   :  { %8244 = vmatpush3.msra.mxu1 %v3428_v2  ;;  %v4050_v2 = vld [vmem:[#allocation26 + $0xb8] sm:$0xff] }
0x13ac   :  { %8245 = vmatprep.subr.mxu1 %v9427_v1 }
0x13ad   :  { %8246 = vmatpush3.msra.mxu1 %v3427_v3  ;;  %v4049_v3 = vld [vmem:[#allocation26 + $0xb0] sm:$0xff] }
0x13ae   :  { %8247 = vmatprep.subr.mxu1 %v9427_v1 }
0x13af   :  { %8248 = vmatpush3.msra.mxu1 %v3426_v4  ;;  %v4048_v4 = vld [vmem:[#allocation26 + $0xa8] sm:$0xff] }
0x13b0   :  { %8249 = vmatprep.subr.mxu1 %v9427_v1 }
0x13b1   :  { %8250 = vmatpush3.msra.mxu1 %v3425_v5  ;;  %v4047_v5 = vld [vmem:[#allocation26 + $0xa0] sm:$0xff] }
0x13b2   :  { %8251 = vmatprep.subr.mxu1 %v9427_v1 }
0x13b3   :  { %8252 = vmatpush3.msra.mxu1 %v3424_v6 }
0x13b4   :  { %8275 = vmatprep.subr.mxu1 %v9427_v1 }
0x1464   :  { %v3407_v15 = vpop.f32.mrf.mxu1 }
0x1465   :  { %v3408_v17 = vadd.f32 %v3407_v15, %v3332_v52 }
0x1466   :  { %v8236_v19 = vpop.f32.mrf.mxu1 }
0x1467   :  { %v3419_v20 = vadd.f32 %v7179_v16, %v3408_v17 }
0x1469   :  { %vm3420_vm11 = vcmp.ge.f32.partialorder %v3419_v20, 0.0  ;;  %v3421_v21 = vmul.f32 0.01, %v3419_v20 }
0x146b   :  { %v3422_v24 = vsel %vm3420_vm11, %v3419_v20, %v3421_v21 }
0x146c   :  { %8254 = vmatmul.mubr.msk.f32.vlgmr.msra.gmra.mxu1 %vm2990_vm9, %v3422_v24  ;;  %v4046_v24 = vld [vmem:[#allocation26 + $0x98] sm:$0xff] }
0x146d   :  { %8276 = vmatpush3.msra.mxu1 %v3615_v22  ;;  %8291 = vmatprep.mubr.msk.f32.mxu1 %vm9428_vm1, %v9427_v1 }
0x146e   :  { %8277 = vmatprep.subr.mxu1 %v9427_v1 }
0x146f   :  { %8278 = vmatpush3.msra.mxu1 %v3614_v26  ;;  %v4045_v26 = vld [vmem:[#allocation26 + $0x90] sm:$0xff] }
0x1470   :  { %8279 = vmatprep.subr.mxu1 %v9427_v1 }
0x1471   :  { %8280 = vmatpush3.msra.mxu1 %v3613_v27  ;;  %v4044_v27 = vld [vmem:[#allocation26 + $0x88] sm:$0xff] }
0x1472   :  { %8281 = vmatprep.subr.mxu1 %v9427_v1 }
0x1473   :  { %8282 = vmatpush3.msra.mxu1 %v3612_v29  ;;  %v4043_v29 = vld [vmem:[#allocation26 + $0x80] sm:$0xff] }
0x1474   :  { %8283 = vmatprep.subr.mxu1 %v9427_v1 }
0x1475   :  { %8284 = vmatpush3.msra.mxu1 %v3611_v30  ;;  %v4143_v30 = vld [vmem:[#allocation29 + $0x138] sm:$0xff] }
0x1476   :  { %8285 = vmatprep.subr.mxu1 %v9427_v1 }
0x1477   :  { %8286 = vmatpush3.msra.mxu1 %v3610_v34  ;;  %v4141_v34 = vld [vmem:[#allocation29 + $0x128] sm:$0xff] }
0x1478   :  { %8287 = vmatprep.subr.mxu1 %v9427_v1 }
0x1479   :  { %8288 = vmatpush3.msra.mxu1 %v3609_v36  ;;  %v4139_v36 = vld [vmem:[#allocation29 + $0x118] sm:$0xff] }
0x147a   :  { %8289 = vmatprep.subr.mxu1 %v9427_v1 }
0x147b   :  { %8290 = vmatpush3.msra.mxu1 %v3608_v38  ;;  %v7192_v38 = vld [vmem:[#allocation25 + $0x2] ss:$0 sm:$0xff] }
0x147c   :  { %8315 = vmatprep.subr.mxu1 %v9427_v1 }
0x152c   :  { %v3509_v13 = vpop.f32.mrf.mxu1 }
0x152d   :  { %v3510_v40 = vadd.f32 %v7180_v39, %v3509_v13 }
0x152e   :  { %v8255_v41 = vpop.f32.mrf.mxu1 }
0x152f   :  { %vm3513_vm12 = vcmp.ge.f32.partialorder %v3510_v40, 0.0  ;;  %v3514_v25 = vmul.f32 0.01, %v3510_v40 }
0x1531   :  { %v3515_v44 = vsel %vm3513_vm12, %v3510_v40, %v3514_v25  ;;  %v4234_v25 = vld [vmem:[#allocation29 + $0x178] sm:$0xff] }
0x1532   :  { %8273 = vmatmul.mubr.msk.f32.vlgmr.msra.gmra.mxu0 %vm2990_vm9, %v3515_v44  ;;  %8292 = vmatmul.mubr.msk.f32.vlgmr.msra.gmra.mxu1 %vm2990_vm9, %v3515_v44 }
0x1533   :  { %8296 = vmatprep.mubr.msk.f32.mxu0 %vm9428_vm1, %v9427_v1  ;;  %8317 = vmatprep.mubr.msk.f32.mxu1 %vm9428_vm1, %v9427_v1 }
0x1534   :  { %8295 = vmatpush3.msra.mxu0 %v3704_v45  ;;  %v4233_v45 = vld [vmem:[#allocation29 + $0x170] sm:$0xff] }
0x1535   :  { %8299 = vmatprep.subr.mxu0 %v9427_v1 }
0x15f2   :  { %v3602_v47 = vpop.f32.mrf.mxu0  ;;  %v3690_v48 = vpop.f32.mrf.mxu1 }
0x15f3   :  { %v3603_v49 = vadd.f32 %v7182_v46, %v3602_v47  ;;  %v3691_v56 = vadd.f32 %v7184_v43, %v3690_v48  ;;  %v4232_v46 = vld [vmem:[#allocation29 + $0x168] sm:$0xff]  ;;  %v4231_v47 = vld [vmem:[#allocation29 + $0x160] sm:$0xff]  ;;  %v4230_v48 = vld [vmem:[#allocation29 + $0x158] sm:$0xff] }
0x15f4   :  { %v8274_v50 = vpop.f32.mrf.mxu0  ;;  %v8293_v52 = vpop.f32.mrf.mxu1  ;;  %v4136_v43 = vld [vmem:[#allocation29 + $0x100] sm:$0xff] }
0x15f5   :  { %8768 = vtanh.f32 %v3603_v49  ;;  %v4138_v49 = vld [vmem:[#allocation29 + $0x110] sm:$0xff]  ;;  %v4137_v52 = vld [vmem:[#allocation29 + $0x108] sm:$0xff] }
0x15f6   :  { %v4229_v50 = vld [vmem:[#allocation29 + $0x150] sm:$0xff] }
0x1602   :  { %v10127_v23 = vpop.eup %8768 }
0x1603   :  { %v3694_v54 = vmul.f32 1.442695, %v10127_v23 }
0x1605   :  { %8770 = vpow2.f32 %v3694_v54  ;;  %v4228_v54 = vld [vmem:[#allocation29 + $0x148] sm:$0xff] }
0x1612   :  { %v8771_v55 = vpop.eup %8770 }
0x1613   :  { %v3696_v57 = vmul.f32 %v8771_v55, %v10035_v59  ;;  %v3884_v59 = vld [vmem:[#allocation23 + $0x48] sm:$0xff] }
0x1614   :  { %v4227_v55 = vld [vmem:[#allocation29 + $0x140] sm:$0xff] }
0x1615   :  { %v3697_v58 = vadd.f32 %v3696_v57, %v3691_v56  ;;  %v7193_v56 = vld [vmem:[#allocation28 + $0x2] ss:$0 sm:$0xff] }
0x1617   :  { %8297 = vmatmul.mubr.msk.f32.vlgmr.msra.gmra.mxu0 %vm2890_vm4, %v3697_v58 }
0x1618   :  { %8300 = vmatpush3.msra.mxu0 %v3702_v60  ;;  %8301 = vmatprep.mubr.msk.f32.mxu0 %vm9428_vm1, %v9427_v1 }
0x1619   :  { %8304 = vmatprep.subr.mxu0 %v9427_v1 }
0x161b   :  { %8302 = vmatmul.mubr.msk.f32.vlgmr.msra.gmra.mxu0 %vm2890_vm4, %v10087_v62  ;;  %v7189_v62 = vld [vmem:[%s10544_s11 + $0x10] sm:$0xff] }
0x161c   :  { %8305 = vmatpush3.msra.mxu0 %v3886_v61  ;;  %8312 = vmatprep.mubr.msk.f32.mxu0 %vm9428_vm1, %v9427_v1 }
0x161d   :  { %8306 = vmatprep.subr.mxu0 %v9427_v1  ;;  %8316 = vmatpush3.msra.mxu1 %v7189_v62  ;;  %v4333_v62 = vld [vmem:[#allocation23 + $0x68] sm:$0xff] }
0x161e   :  { %8307 = vmatpush3.msra.mxu0 %v3885_v63  ;;  %8339 = vmatprep.subr.mxu1 %v9427_v1  ;;  %v4335_v63 = vld [vmem:[#allocation23 + $0x78] sm:$0xff] }
0x161f   :  { %8308 = vmatprep.subr.mxu0 %v9427_v1 }
0x1620   :  { %8309 = vmatpush3.msra.mxu0 %v3884_v59 }
0x1621   :  { %8310 = vmatprep.subr.mxu0 %v9427_v1 }
0x1622   :  { %8311 = vmatpush3.msra.mxu0 %v3883_v0  ;;  %v4334_v0 = vld [vmem:[#allocation23 + $0x70] sm:$0xff] }
0x1623   :  { %8313 = vmatmul.mubr.msk.f32.vlgmr.msra.gmra.mxu0 %vm594_vm7, %v9731_v33  ;;  %8320 = vmatprep.subr.mxu0 %v9427_v1 }
0x1624   :  { %8336 = vmatprep.mubr.msk.f32.mxu0 %vm9428_vm1, %v9427_v1  ;;  %8321 = vmatpush3.msra.mxu0 %v4050_v2  ;;  %v4332_v2 = vld [vmem:[#allocation23 + $0x60] sm:$0xff] }
0x1625   :  { %8322 = vmatprep.subr.mxu0 %v9427_v1 }
0x1626   :  { %8323 = vmatpush3.msra.mxu0 %v4049_v3  ;;  %v7195_v3 = vld [vmem:[#allocation31 + $0x4] ss:$0 sm:$0xff] }
0x1627   :  { %8324 = vmatprep.subr.mxu0 %v9427_v1 }
0x1628   :  { %8325 = vmatpush3.msra.mxu0 %v4048_v4  ;;  %v7197_v4 = vld [vmem:[#allocation31 + $0x5] ss:$0 sm:$0xff] }
0x1629   :  { %8326 = vmatprep.subr.mxu0 %v9427_v1 }
0x162a   :  { %8327 = vmatpush3.msra.mxu0 %v4047_v5 }
0x162b   :  { %8328 = vmatprep.subr.mxu0 %v9427_v1 }
0x162c   :  { %8329 = vmatpush3.msra.mxu0 %v4046_v24 }
0x162d   :  { %8330 = vmatprep.subr.mxu0 %v9427_v1 }
0x162e   :  { %8331 = vmatpush3.msra.mxu0 %v4045_v26 }
0x162f   :  { %8332 = vmatprep.subr.mxu0 %v9427_v1 }
0x1630   :  { %8333 = vmatpush3.msra.mxu0 %v4044_v27 }
0x1631   :  { %8334 = vmatprep.subr.mxu0 %v9427_v1 }
0x1632   :  { %8335 = vmatpush3.msra.mxu0 %v4043_v29  ;;  %v4501_v29 = vld [vmem:[#allocation26 + $0xf8] sm:$0xff] }
0x1633   :  { %8358 = vmatprep.subr.mxu0 %v9427_v1 }
0x16d7   :  { %v3774_v6 = vpop.f32.mrf.mxu0 }
0x16d9   :  { %v8298_v7 = vpop.f32.mrf.mxu0 }
0x16db   :  { %v3844_v9 = vpop.f32.mrf.mxu0 }
0x16dc   :  { %v3845_v14 = vadd.f32 %v3844_v9, %v3774_v6 }
0x16dd   :  { %v8303_v15 = vpop.f32.mrf.mxu0 }
0x16de   :  { %v3858_v16 = vadd.f32 %v7188_v11, %v3845_v14 }
0x16e0   :  { %v3865_v17 = vmul.f32 %v8815_v8, %v3858_v16 }
0x16e2   :  { %vm3877_vm13 = vcmp.ge.f32.partialorder %v3865_v17, 0.0 }
0x16e3   :  { %v3878_v19 = vsel %vm3877_vm13, 1.0, %v9429_v18  ;;  %v3953_v20 = vpop.f32.mrf.mxu0 }
0x16e4   :  { %v10154_v21 = vmul.f32 %v3878_v19, %v3865_v17  ;;  %v7199_v19 = vld [vmem:[%s10544_s11 + $0x18] sm:$0xff] }
0x16e5   :  { %v8314_v22 = vpop.f32.mrf.mxu0 }
0x16e6   :  { %8318 = vmatmul.mubr.msk.f32.vlgmr.msra.gmra.mxu1 %vm2890_vm4, %v10154_v21 }
0x16e7   :  { %8355 = vmatprep.mubr.msk.f32.mxu1 %vm9428_vm1, %v9427_v1  ;;  %8340 = vmatpush3.msra.mxu1 %v4143_v30 }
0x16e8   :  { %8341 = vmatprep.subr.mxu1 %v9427_v1 }
0x16e9   :  { %8342 = vmatpush3.msra.mxu1 %v4142_v31  ;;  %v4500_v31 = vld [vmem:[#allocation26 + $0xf0] sm:$0xff] }
0x16ea   :  { %8343 = vmatprep.subr.mxu1 %v9427_v1 }
0x16eb   :  { %8344 = vmatpush3.msra.mxu1 %v4141_v34  ;;  %v4499_v34 = vld [vmem:[#allocation26 + $0xe8] sm:$0xff] }
0x16ec   :  { %8345 = vmatprep.subr.mxu1 %v9427_v1 }
0x16ed   :  { %8346 = vmatpush3.msra.mxu1 %v4140_v35  ;;  %v4498_v35 = vld [vmem:[#allocation26 + $0xe0] sm:$0xff] }
0x16ee   :  { %8347 = vmatprep.subr.mxu1 %v9427_v1 }
0x16ef   :  { %8348 = vmatpush3.msra.mxu1 %v4139_v36  ;;  %v4497_v36 = vld [vmem:[#allocation26 + $0xd8] sm:$0xff] }
0x16f0   :  { %8349 = vmatprep.subr.mxu1 %v9427_v1 }
0x16f1   :  { %8350 = vmatpush3.msra.mxu1 %v4138_v49 }
0x16f2   :  { %8351 = vmatprep.subr.mxu1 %v9427_v1 }
0x16f3   :  { %8352 = vmatpush3.msra.mxu1 %v4137_v52  ;;  %v4685_v52 = vld [vmem:[#allocation29 + $0x1f8] sm:$0xff] }
0x16f4   :  { %8353 = vmatprep.subr.mxu1 %v9427_v1 }
0x16f5   :  { %8354 = vmatpush3.msra.mxu1 %v4136_v43  ;;  %v4684_v43 = vld [vmem:[#allocation29 + $0x1f0] sm:$0xff] }
0x16f6   :  { %8377 = vmatprep.subr.mxu1 %v9427_v1 }
0x17a6   :  { %v4026_v37 = vpop.f32.mrf.mxu1 }
0x17a7   :  { %v4027_v39 = vadd.f32 %v4026_v37, %v3953_v20  ;;  %v4496_v37 = vld [vmem:[#allocation26 + $0xd0] sm:$0xff] }
0x17a8   :  { %v8319_v13 = vpop.f32.mrf.mxu1 }
0x17a9   :  { %v4038_v40 = vadd.f32 %v7192_v38, %v4027_v39  ;;  %v4495_v38 = vld [vmem:[#allocation26 + $0xc8] sm:$0xff]  ;;  %v4494_v39 = vld [vmem:[#allocation26 + $0xc0] sm:$0xff] }
0x17aa   :  { %v4594_v13 = vld [vmem:[#allocation29 + $0x1b8] sm:$0xff] }
0x17ab   :  { %vm4039_vm14 = vcmp.ge.f32.partialorder %v4038_v40, 0.0  ;;  %v4040_v41 = vmul.f32 0.01, %v4038_v40 }
0x17ad   :  { %v4041_v44 = vsel %vm4039_vm14, %v4038_v40, %v4040_v41  ;;  %v4593_v40 = vld [vmem:[#allocation29 + $0x1b0] sm:$0xff]  ;;  %v4592_v41 = vld [vmem:[#allocation29 + $0x1a8] sm:$0xff] }
0x17ae   :  { %8337 = vmatmul.mubr.msk.f32.vlgmr.msra.gmra.mxu0 %vm2990_vm9, %v4041_v44  ;;  %v4590_v44 = vld [vmem:[#allocation29 + $0x198] sm:$0xff] }
0x17af   :  { %8359 = vmatpush3.msra.mxu0 %v4234_v25  ;;  %8374 = vmatprep.mubr.msk.f32.mxu0 %vm9428_vm1, %v9427_v1  ;;  %v4591_v25 = vld [vmem:[#allocation29 + $0x1a0] sm:$0xff] }
0x17b0   :  { %8360 = vmatprep.subr.mxu0 %v9427_v1 }
0x17b1   :  { %8361 = vmatpush3.msra.mxu0 %v4233_v45 }
0x17b2   :  { %8362 = vmatprep.subr.mxu0 %v9427_v1 }
0x17b3   :  { %8363 = vmatpush3.msra.mxu0 %v4232_v46  ;;  %v7202_v46 = vld [vmem:[#allocation25 + $0x3] ss:$0 sm:$0xff] }
0x17b4   :  { %8364 = vmatprep.subr.mxu0 %v9427_v1 }
0x17b5   :  { %8365 = vmatpush3.msra.mxu0 %v4231_v47 }
0x17b6   :  { %8366 = vmatprep.subr.mxu0 %v9427_v1 }
0x17b7   :  { %8367 = vmatpush3.msra.mxu0 %v4230_v48 }
0x17b8   :  { %8368 = vmatprep.subr.mxu0 %v9427_v1 }
0x17b9   :  { %8369 = vmatpush3.msra.mxu0 %v4229_v50 }
0x17ba   :  { %8370 = vmatprep.subr.mxu0 %v9427_v1 }
0x17bb   :  { %8371 = vmatpush3.msra.mxu0 %v4228_v54 }
0x17bc   :  { %8372 = vmatprep.subr.mxu0 %v9427_v1 }
0x17bd   :  { %8373 = vmatpush3.msra.mxu0 %v4227_v55  ;;  %v4683_v55 = vld [vmem:[#allocation29 + $0x1e8] sm:$0xff] }
0x17be   :  { %8412 = vmatprep.subr.mxu0 %v9427_v1 }
0x186e   :  { %v4128_v57 = vpop.f32.mrf.mxu0 }
0x186f   :  { %v4129_v58 = vadd.f32 %v7193_v56, %v4128_v57  ;;  %v4682_v56 = vld [vmem:[#allocation29 + $0x1e0] sm:$0xff]  ;;  %v4681_v57 = vld [vmem:[#allocation29 + $0x1d8] sm:$0xff] }
0x1870   :  { %v8338_v60 = vpop.f32.mrf.mxu0 }
0x1871   :  { %vm4132_vm15 = vcmp.ge.f32.partialorder %v4129_v58, 0.0  ;;  %v4133_v61 = vmul.f32 0.01, %v4129_v58  ;;  %v4680_v60 = vld [vmem:[#allocation29 + $0x1d0] sm:$0xff] }
0x1873   :  { %v4134_v59 = vsel %vm4132_vm15, %v4129_v58, %v4133_v61  ;;  %v4589_v58 = vld [vmem:[#allocation29 + $0x190] sm:$0xff]  ;;  %v4588_v61 = vld [vmem:[#allocation29 + $0x188] sm:$0xff] }
0x1874   :  { %8356 = vmatmul.mubr.msk.f32.vlgmr.msra.gmra.mxu1 %vm2990_vm9, %v4134_v59  ;;  %8375 = vmatmul.mubr.msk.f32.vlgmr.msra.gmra.mxu0 %vm2990_vm9, %v4134_v59  ;;  %v4587_v59 = vld [vmem:[#allocation29 + $0x180] sm:$0xff] }
0x1875   :  { %8378 = vmatpush3.msra.mxu1 %v4335_v63  ;;  %8385 = vmatprep.mubr.msk.f32.mxu1 %vm9428_vm1, %v9427_v1  ;;  %v4679_v63 = vld [vmem:[#allocation29 + $0x1c8] sm:$0xff] }
0x1876   :  { %8379 = vmatprep.subr.mxu1 %v9427_v1  ;;  %8428 = vmatprep.mubr.msk.f32.mxu0 %vm9428_vm1, %v9427_v1 }
0x1877   :  { %8380 = vmatpush3.msra.mxu1 %v4334_v0  ;;  %8413 = vmatpush3.msra.mxu0 %v4594_v13  ;;  %v4678_v0 = vld [vmem:[#allocation29 + $0x1c0] sm:$0xff] }
0x1878   :  { %8381 = vmatprep.subr.mxu1 %v9427_v1  ;;  %8414 = vmatprep.subr.mxu0 %v9427_v1 }
0x1879   :  { %8382 = vmatpush3.msra.mxu1 %v4333_v62  ;;  %8415 = vmatpush3.msra.mxu0 %v4593_v40  ;;  %v7203_v62 = vld [vmem:[#allocation28 + $0x3] ss:$0 sm:$0xff] }
0x187a   :  { %8383 = vmatprep.subr.mxu1 %v9427_v1  ;;  %8416 = vmatprep.subr.mxu0 %v9427_v1 }
0x187b   :  { %8384 = vmatpush3.msra.mxu1 %v4332_v2  ;;  %8417 = vmatpush3.msra.mxu0 %v4592_v41 }
0x187c   :  { %8386 = vmatmul.mubr.msk.f32.vlgmr.msra.gmra.mxu1 %vm594_vm7, %v9731_v33  ;;  %8388 = vmatprep.subr.mxu1 %v9427_v1 }
0x187d   :  { %8390 = vmatprep.mubr.msk.f32.mxu1 %vm9428_vm1, %v9427_v1  ;;  %8389 = vmatpush3.msra.mxu1 %v7199_v19 }
0x187e   :  { %8393 = vmatprep.subr.mxu1 %v9427_v1  ;;  %8418 = vmatprep.subr.mxu0 %v9427_v1 }
0x187f   :  { %8419 = vmatpush3.msra.mxu0 %v4591_v25 }
0x1880   :  { %8420 = vmatprep.subr.mxu0 %v9427_v1 }
0x1881   :  { %8421 = vmatpush3.msra.mxu0 %v4590_v44 }
0x1882   :  { %8422 = vmatprep.subr.mxu0 %v9427_v1 }
0x1883   :  { %8423 = vmatpush3.msra.mxu0 %v4589_v58  ;;  %v5210_v58 = vld [vmem:[#allocation40 + $0x18] sm:$0xff] }
0x1884   :  { %8424 = vmatprep.subr.mxu0 %v9427_v1 }
0x1885   :  { %8425 = vmatpush3.msra.mxu0 %v4588_v61  ;;  %v7215_v61 = vld [vmem:[#allocation37] ss:$0 sm:$0xff] }
0x1886   :  { %8426 = vmatprep.subr.mxu0 %v9427_v1 }
0x1887   :  { %8427 = vmatpush3.msra.mxu0 %v4587_v59 }
0x1888   :  { %8450 = vmatprep.subr.mxu0 %v9427_v1 }
0x1934   :  { %v4221_v5 = vpop.f32.mrf.mxu1  ;;  %v4309_v6 = vpop.f32.mrf.mxu0 }
0x1935   :  { %v4222_v7 = vadd.f32 %v7195_v3, %v4221_v5  ;;  %v4310_v8 = vadd.f32 %v7197_v4, %v4309_v6 }
0x1936   :  { %v8357_v9 = vpop.f32.mrf.mxu1  ;;  %v8376_v11 = vpop.f32.mrf.mxu0 }
0x1937   :  { %8772 = vtanh.f32 %v4222_v7  ;;  %4321 = vrot.lane.b32.xlu1 %v4310_v8, %s9397_s28  ;;  %v4775_v7 = vld [vmem:[#allocation22 + $0x18] sm:$0xff]  ;;  %v7211_v8 = vld [vmem:[#allocation32] ss:$0 sm:$0xff]  ;;  %v7205_v9 = vld [vmem:[#allocation31 + $0x6] ss:$0 sm:$0xff] }
0x193b   :  { %4927 = vrot.lane.b32.xlu1 %v7211_v8, %s9397_s28  ;;  %v5207_v8 = vld [vmem:[#allocation40] sm:$0xff] }
0x193c   :  { %v4402_v14 = vpop.f32.mrf.mxu1 }
0x193e   :  { %v8387_v15 = vpop.f32.mrf.mxu1 }
0x1944   :  { %v10198_v16 = vpop.eup %8772 }
0x1945   :  { %v4313_v17 = vmul.f32 1.442695, %v10198_v16 }
0x1947   :  { %8774 = vpow2.f32 %v4313_v17 }
0x1954   :  { %v8775_v20 = vpop.eup %8774 }
0x1955   :  { %4316 = vrot.lane.b32.xlu0 %v8775_v20, %s9397_s28 }
0x19a9   :  { %v4322_v26 = vpop.permute.xlu1 %4321 }
0x19ad   :  { %v4928_v40 = vpop.permute.xlu1 %4927 }
0x19c7   :  { %v4317_v22 = vpop.permute.xlu0 %4316 }
0x19c8   :  { %v4319_v24 = vmul.f32 %v4317_v22, %v10154_v21 }
0x19ca   :  { %v4324_v27 = vadd.f32 %v4322_v26, %v4319_v24  ;;  %v7207_v24 = vld [vmem:[#allocation31 + $0x7] ss:$0 sm:$0xff] }
0x19cc   :  { %4407 = vrot.lane.b32.xlu0 %v4324_v27, %s9432_s15 }
0x1a3e   :  { %v10206_v30 = vpop.permute.xlu0 %4407 }
0x1a3f   :  { %8391 = vmatmul.mubr.msk.f32.vlgmr.msra.gmra.mxu1 %vm2890_vm4, %v10206_v30 }
0x1a40   :  { %8394 = vmatpush3.msra.mxu1 %v4501_v29  ;;  %8409 = vmatprep.mubr.msk.f32.mxu1 %vm9428_vm1, %v9427_v1 }
0x1a41   :  { %8395 = vmatprep.subr.mxu1 %v9427_v1 }
0x1a42   :  { %8396 = vmatpush3.msra.mxu1 %v4500_v31 }
0x1a43   :  { %8397 = vmatprep.subr.mxu1 %v9427_v1 }
0x1a44   :  { %8398 = vmatpush3.msra.mxu1 %v4499_v34  ;;  %v4773_v34 = vld [vmem:[#allocation22 + $0x10] sm:$0xff] }
0x1a45   :  { %8399 = vmatprep.subr.mxu1 %v9427_v1 }
0x1a46   :  { %8400 = vmatpush3.msra.mxu1 %v4498_v35  ;;  %v4961_v35 = vld [vmem:[#allocation35 + $0x18] sm:$0xff] }
0x1a47   :  { %8401 = vmatprep.subr.mxu1 %v9427_v1 }
0x1a48   :  { %8402 = vmatpush3.msra.mxu1 %v4497_v36  ;;  %v4960_v36 = vld [vmem:[#allocation35 + $0x10] sm:$0xff] }
0x1a49   :  { %8403 = vmatprep.subr.mxu1 %v9427_v1 }
0x1a4a   :  { %8404 = vmatpush3.msra.mxu1 %v4496_v37  ;;  %v4958_v37 = vld [vmem:[#allocation35] sm:$0xff] }
0x1a4b   :  { %8405 = vmatprep.subr.mxu1 %v9427_v1 }
0x1a4c   :  { %8406 = vmatpush3.msra.mxu1 %v4495_v38  ;;  %v4957_v38 = vld [vmem:[%s10545_s13] sm:$0xf] }
0x1a4d   :  { %8407 = vmatprep.subr.mxu1 %v9427_v1 }
0x1a4e   :  { %8408 = vmatpush3.msra.mxu1 %v4494_v39 }
0x1a4f   :  { %8431 = vmatprep.subr.mxu1 %v9427_v1 }
0x1aff   :  { %v4477_v45 = vpop.f32.mrf.mxu1 }
0x1b00   :  { %v4478_v47 = vadd.f32 %v4477_v45, %v4402_v14 }
0x1b01   :  { %v8392_v48 = vpop.f32.mrf.mxu1 }
0x1b02   :  { %v4489_v49 = vadd.f32 %v7202_v46, %v4478_v47  ;;  %v10274_v47 = vld [vmem:[#allocation32 + $0x1] sm:$0x1] }
0x1b03   :  { %v4935_v48 = vrot.slane %v10274_v47, %v9707_v10 }
0x1b04   :  { %vm4490_vm0 = vcmp.ge.f32.partialorder %v4489_v49, 0.0  ;;  %v4491_v50 = vmul.f32 0.01, %v4489_v49 }
0x1b06   :  { %v4492_v54 = vsel %vm4490_vm0, %v4489_v49, %v4491_v50  ;;  %vm576_vm0 = vcmask 188416  }
0x1b07   :  { %8410 = vmatmul.mubr.msk.f32.vlgmr.msra.gmra.mxu1 %vm2990_vm9, %v4492_v54 }
0x1b08   :  { %8432 = vmatpush3.msra.mxu1 %v4685_v52  ;;  %8447 = vmatprep.mubr.msk.f32.mxu1 %vm9428_vm1, %v9427_v1 }
0x1b09   :  { %8433 = vmatprep.subr.mxu1 %v9427_v1 }
0x1b0a   :  { %8434 = vmatpush3.msra.mxu1 %v4684_v43  ;;  %v5123_v43 = vld [vmem:[#allocation38 + $0x18] sm:$0xff] }
0x1b0b   :  { %8435 = vmatprep.subr.mxu1 %v9427_v1 }
0x1b0c   :  { %8436 = vmatpush3.msra.mxu1 %v4683_v55  ;;  %v5122_v55 = vld [vmem:[#allocation38 + $0x10] sm:$0xff] }
0x1b0d   :  { %8437 = vmatprep.subr.mxu1 %v9427_v1 }
0x1b0e   :  { %8438 = vmatpush3.msra.mxu1 %v4682_v56  ;;  %v5121_v56 = vld [vmem:[#allocation38 + $0x8] sm:$0xff] }
0x1b0f   :  { %8439 = vmatprep.subr.mxu1 %v9427_v1 }
0x1b10   :  { %8440 = vmatpush3.msra.mxu1 %v4681_v57  ;;  %v5120_v57 = vld [vmem:[#allocation38] sm:$0xff] }
0x1b11   :  { %8441 = vmatprep.subr.mxu1 %v9427_v1 }
0x1b12   :  { %8442 = vmatpush3.msra.mxu1 %v4680_v60 }
0x1b13   :  { %8443 = vmatprep.subr.mxu1 %v9427_v1 }
0x1b14   :  { %8444 = vmatpush3.msra.mxu1 %v4679_v63 }
0x1b15   :  { %8445 = vmatprep.subr.mxu1 %v9427_v1 }
0x1b16   :  { %8446 = vmatpush3.msra.mxu1 %v4678_v0 }
0x1b17   :  { %8471 = vmatprep.subr.mxu1 %v9427_v1 }
0x1bc7   :  { %v4579_v2 = vpop.f32.mrf.mxu1 }
0x1bc8   :  { %v4580_v3 = vadd.f32 %v7203_v62, %v4579_v2  ;;  %v5296_v2 = vld [vmem:[#allocation40 + $0x38] sm:$0xff] }
0x1bc9   :  { %v8411_v4 = vpop.f32.mrf.mxu1 }
0x1bca   :  { %vm4583_vm2 = vcmp.ge.f32.partialorder %v4580_v3, 0.0  ;;  %v4584_v5 = vmul.f32 0.01, %v4580_v3  ;;  %v5209_v4 = vld [vmem:[#allocation40 + $0x10] sm:$0xff] }
0x1bcc   :  { %v4585_v6 = vsel %vm4583_vm2, %v4580_v3, %v4584_v5  ;;  %v5295_v5 = vld [vmem:[#allocation40 + $0x30] sm:$0xff]  ;;  %vm2803_vm2 = vcmask 122880  }
0x1bcd   :  { %8429 = vmatmul.mubr.msk.f32.vlgmr.msra.gmra.mxu0 %vm2990_vm9, %v4585_v6  ;;  %8448 = vmatmul.mubr.msk.f32.vlgmr.msra.gmra.mxu1 %vm2990_vm9, %v4585_v6  ;;  %v5208_v6 = vld [vmem:[#allocation40 + $0x8] sm:$0xff] }
0x1bce   :  { %8452 = vmatprep.mubr.msk.f32.mxu0 %vm9428_vm1, %v9427_v1  ;;  %8473 = vmatprep.mubr.msk.f32.mxu1 %vm9428_vm1, %v9427_v1 }
0x1bcf   :  { %8451 = vmatpush3.msra.mxu0 %v4775_v7  ;;  %8472 = vmatpush3.msk.msra.mxu1 %vm672_vm5, %v4957_v38  ;;  %v5294_v7 = vld [vmem:[#allocation40 + $0x28] sm:$0xff] }
0x1bd0   :  { %8455 = vmatprep.subr.mxu0 %v9427_v1  ;;  %8487 = vmatprep.subr.mxu1 %v9427_v1 }
0x1c8d   :  { %v4672_v11 = vpop.f32.mrf.mxu0  ;;  %v4760_v14 = vpop.f32.mrf.mxu1 }
0x1c8e   :  { %v4673_v15 = vadd.f32 %v7205_v9, %v4672_v11  ;;  %v4761_v27 = vadd.f32 %v7207_v24, %v4760_v14  ;;  %v5293_v9 = vld [vmem:[#allocation40 + $0x20] sm:$0xff]  ;;  %v7216_v11 = vld [vmem:[%s10546_s12] ss:$0 sm:$0xff] }
0x1c8f   :  { %v8430_v17 = vpop.f32.mrf.mxu0  ;;  %v8449_v19 = vpop.f32.mrf.mxu1 }
0x1c90   :  { %8776 = vtanh.f32 %v4673_v15 }
0x1c9d   :  { %v10247_v20 = vpop.eup %8776 }
0x1c9e   :  { %v4764_v22 = vmul.f32 1.442695, %v10247_v20 }
0x1ca0   :  { %8778 = vpow2.f32 %v4764_v22  ;;  %v5397_v22 = vld [vmem:[#allocation35 + $0x38] sm:$0xff] }
0x1cad   :  { %v8779_v26 = vpop.eup %8778 }
0x1cae   :  { %v4766_v29 = vmul.f32 %v8779_v26, %v10154_v21  ;;  %v4959_v21 = vld [vmem:[#allocation35 + $0x8] sm:$0xff]  ;;  %v5396_v26 = vld [vmem:[#allocation35 + $0x30] sm:$0xff] }
0x1cb0   :  { %v4767_v31 = vadd.f32 %v4766_v29, %v4761_v27  ;;  %v5395_v27 = vld [vmem:[#allocation35 + $0x28] sm:$0xff]  ;;  %v5394_v29 = vld [vmem:[#allocation35 + $0x20] sm:$0xff] }
0x1cb2   :  { %8453 = vmatmul.mubr.msk.f32.vlgmr.msra.gmra.mxu0 %vm2890_vm4, %v4767_v31  ;;  %v7218_v31 = vld [vmem:[%s9588_s14] ss:$0 sm:$0xff] }
0x1cb3   :  { %8456 = vmatpush3.msra.mxu0 %v4773_v34  ;;  %8457 = vmatprep.mubr.msk.f32.mxu0 %vm9428_vm1, %v9427_v1  ;;  %v7221_v34 = vld [vmem:[%s9588_s14 + $0x1] ss:$0 sm:$0xff] }
0x1cb4   :  { %8460 = vmatprep.subr.mxu0 %v9427_v1 }
0x1cb6   :  { %8458 = vmatmul.mubr.msk.f32.vlgmr.msra.gmra.mxu0 %vm2890_vm4, %v10206_v30 }
0x1cb7   :  { %8461 = vmatpush3.msra.mxu0 %v4961_v35  ;;  %8468 = vmatprep.mubr.msk.f32.mxu0 %vm9428_vm1, %v9427_v1 }
0x1cb8   :  { %8462 = vmatprep.subr.mxu0 %v9427_v1 }
0x1cb9   :  { %8463 = vmatpush3.msra.mxu0 %v4960_v36 }
0x1cba   :  { %8464 = vmatprep.subr.mxu0 %v9427_v1 }
0x1cbb   :  { %8465 = vmatpush3.msra.mxu0 %v4959_v21 }
0x1cbc   :  { %8466 = vmatprep.subr.mxu0 %v9427_v1 }
0x1cbd   :  { %8467 = vmatpush3.msra.mxu0 %v4958_v37 }
0x1cbe   :  { %8469 = vmatmul.mubr.msk.f32.vlgmr.msra.gmra.mxu0 %vm594_vm7, %v9731_v33  ;;  %8476 = vmatprep.subr.mxu0 %v9427_v1 }
0x1cbf   :  { %8484 = vmatprep.mubr.msk.f32.mxu0 %vm9428_vm1, %v9427_v1  ;;  %8477 = vmatpush3.msra.mxu0 %v5123_v43  ;;  %v5562_v43 = vld [vmem:[#allocation38 + $0x38] sm:$0xff] }
0x1cc0   :  { %8478 = vmatprep.subr.mxu0 %v9427_v1 }
0x1cc1   :  { %8479 = vmatpush3.msra.mxu0 %v5122_v55  ;;  %v5561_v55 = vld [vmem:[#allocation38 + $0x30] sm:$0xff] }
0x1cc2   :  { %8480 = vmatprep.subr.mxu0 %v9427_v1 }
0x1cc3   :  { %8481 = vmatpush3.msra.mxu0 %v5121_v56  ;;  %v5560_v56 = vld [vmem:[#allocation38 + $0x28] sm:$0xff] }
0x1cc4   :  { %8482 = vmatprep.subr.mxu0 %v9427_v1 }
0x1cc5   :  { %8483 = vmatpush3.msra.mxu0 %v5120_v57  ;;  %v5559_v57 = vld [vmem:[#allocation38 + $0x20] sm:$0xff] }
0x1cc6   :  { %8498 = vmatprep.subr.mxu0 %v9427_v1 }
0x1d72   :  { %v4845_v30 = vpop.f32.mrf.mxu0 }
0x1d74   :  { %v8454_v39 = vpop.f32.mrf.mxu0 }
0x1d76   :  { %v4915_v13 = vpop.f32.mrf.mxu0 }
0x1d77   :  { %v10270_v41 = vadd.f32 %v4915_v13, %v4845_v30 }
0x1d78   :  { %v8459_v25 = vpop.f32.mrf.mxu0 }
0x1d79   :  { %v4930_v44 = vadd.f32 %v4928_v40, %v10270_v41 }
0x1d7b   :  { %4938 = vrot.lane.b32.xlu0 %v4930_v44, %s9432_s15  ;;  %v7223_v44 = vld [vmem:[%s10545_s13 + $0x4] sm:$0xf] }
0x1d7e   :  { %v5028_v45 = vpop.f32.mrf.mxu0 }
0x1d80   :  { %v8470_v46 = vpop.f32.mrf.mxu0 }
0x1ded   :  { %v4939_v49 = vpop.permute.xlu0 %4938 }
0x1dee   :  { %v4941_v50 = vmul.f32 %v4939_v49, %v4935_v48 }
0x1df0   :  { %vm4954_vm3 = vcmp.ge.f32.partialorder %v4941_v50, 0.0 }
0x1df1   :  { %v4955_v52 = vsel %vm4954_vm3, 1.0, %v9429_v18  ;;  %vm4945_vm3 = vcmask 57344  }
0x1df2   :  { %v10279_v54 = vmul.f32 %v4955_v52, %v4941_v50 }
0x1df4   :  { %8474 = vmatmul.mubr.msk.f32.vlgmr.msra.gmra.mxu1 %vm5032_vm8, %v10279_v54 }
0x1df5   :  { %8495 = vmatprep.mubr.msk.f32.mxu1 %vm9428_vm1, %v9427_v1  ;;  %8488 = vmatpush3.msra.mxu1 %v5210_v58  ;;  %v5651_v58 = vld [vmem:[#allocation40 + $0x58] sm:$0xff] }
0x1df6   :  { %8489 = vmatprep.subr.mxu1 %v9427_v1 }
0x1df7   :  { %8490 = vmatpush3.msra.mxu1 %v5209_v4  ;;  %v5737_v4 = vld [vmem:[#allocation40 + $0x70] sm:$0xff] }
0x1df8   :  { %8491 = vmatprep.subr.mxu1 %v9427_v1 }
0x1df9   :  { %8492 = vmatpush3.msra.mxu1 %v5208_v6  ;;  %v5736_v6 = vld [vmem:[#allocation40 + $0x68] sm:$0xff] }
0x1dfa   :  { %8493 = vmatprep.subr.mxu1 %v9427_v1 }
0x1dfb   :  { %8494 = vmatpush3.msra.mxu1 %v5207_v8  ;;  %v5735_v8 = vld [vmem:[#allocation40 + $0x60] sm:$0xff] }
0x1dfc   :  { %8509 = vmatprep.subr.mxu1 %v9427_v1 }
0x1eb4   :  { %v5105_v60 = vpop.f32.mrf.mxu1 }
0x1eb5   :  { %v5106_v63 = vadd.f32 %v5105_v60, %v5028_v45 }
0x1eb6   :  { %v8475_v59 = vpop.f32.mrf.mxu1 }
0x1eb7   :  { %v5116_v0 = vadd.f32 %v7215_v61, %v5106_v63  ;;  %v7227_v61 = vld [vmem:[#allocation37 + $0x1] ss:$0 sm:$0xff] }
0x1eb9   :  { %vm5117_vm9 = vcmp.ge.f32.partialorder %v5116_v0, 0.0  ;;  %v5118_v62 = vmul.f32 0.01, %v5116_v0 }
0x1ebb   :  { %v5119_v3 = vsel %vm5117_vm9, %v5116_v0, %v5118_v62 }
0x1ebc   :  { %8485 = vmatmul.mubr.msk.f32.vlgmr.msra.gmra.mxu0 %vm594_vm7, %v5119_v3 }
0x1ebd   :  { %8499 = vmatpush3.msra.mxu0 %v5296_v2  ;;  %8506 = vmatprep.mubr.msk.f32.mxu0 %vm9428_vm1, %v9427_v1  ;;  %v5738_v2 = vld [vmem:[#allocation40 + $0x78] sm:$0xff] }
0x1ebe   :  { %8500 = vmatprep.subr.mxu0 %v9427_v1 }
0x1ebf   :  { %8501 = vmatpush3.msra.mxu0 %v5295_v5  ;;  %v5650_v5 = vld [vmem:[#allocation40 + $0x50] sm:$0xff] }
0x1ec0   :  { %8502 = vmatprep.subr.mxu0 %v9427_v1 }
0x1ec1   :  { %8503 = vmatpush3.msra.mxu0 %v5294_v7  ;;  %v5649_v7 = vld [vmem:[#allocation40 + $0x48] sm:$0xff] }
0x1ec2   :  { %8504 = vmatprep.subr.mxu0 %v9427_v1 }
0x1ec3   :  { %8505 = vmatpush3.msra.mxu0 %v5293_v9  ;;  %v5648_v9 = vld [vmem:[#allocation40 + $0x40] sm:$0xff] }
0x1ec4   :  { %8520 = vmatprep.subr.mxu0 %v9427_v1 }
0x1f7c   :  { %v5200_v14 = vpop.f32.mrf.mxu0 }
0x1f7d   :  { %v5201_v15 = vadd.f32 %v7216_v11, %v5200_v14  ;;  %v7229_v11 = vld [vmem:[%s10546_s12 + $0x1] ss:$0 sm:$0xff] }
0x1f7e   :  { %v8486_v17 = vpop.f32.mrf.mxu0 }
0x1f7f   :  { %vm5204_vm10 = vcmp.ge.f32.partialorder %v5201_v15, 0.0  ;;  %v5205_v19 = vmul.f32 0.01, %v5201_v15 }
0x1f81   :  { %v5206_v24 = vsel %vm5204_vm10, %v5201_v15, %v5205_v19 }
0x1f82   :  { %8496 = vmatmul.mubr.msk.f32.vlgmr.msra.gmra.mxu1 %vm594_vm7, %v5206_v24  ;;  %8507 = vmatmul.mubr.msk.f32.vlgmr.msra.gmra.mxu0 %vm594_vm7, %v5206_v24 }
0x1f83   :  { %8510 = vmatpush3.msra.mxu1 %v5397_v22  ;;  %8517 = vmatprep.mubr.msk.f32.mxu1 %vm9428_vm1, %v9427_v1  ;;  %v6015_v22 = vld [vmem:[#allocation35 + $0x58] sm:$0xff] }
0x1f84   :  { %8511 = vmatprep.subr.mxu1 %v9427_v1  ;;  %8522 = vmatprep.mubr.msk.f32.mxu0 %vm9428_vm1, %v9427_v1 }
0x1f85   :  { %8512 = vmatpush3.msra.mxu1 %v5396_v26  ;;  %8521 = vmatpush3.msk.msra.mxu0 %vm672_vm5, %v7223_v44  ;;  %v6014_v26 = vld [vmem:[#allocation35 + $0x50] sm:$0xff]  ;;  %v7235_v44 = vld [vmem:[%s9588_s14 + $0x3] ss:$0 sm:$0xff] }
0x1f86   :  { %8513 = vmatprep.subr.mxu1 %v9427_v1  ;;  %8536 = vmatprep.subr.mxu0 %v9427_v1 }
0x1f87   :  { %8514 = vmatpush3.msra.mxu1 %v5395_v27  ;;  %v6013_v27 = vld [vmem:[#allocation35 + $0x48] sm:$0xff] }
0x1f88   :  { %8515 = vmatprep.subr.mxu1 %v9427_v1 }
0x1f89   :  { %8516 = vmatpush3.msra.mxu1 %v5394_v29  ;;  %v6012_v29 = vld [vmem:[#allocation35 + $0x40] sm:$0xff] }
0x1f8a   :  { %8518 = vmatmul.mubr.msk.f32.vlgmr.msra.gmra.mxu1 %vm594_vm7, %v9731_v33  ;;  %8525 = vmatprep.subr.mxu1 %v9427_v1 }
0x1f8b   :  { %8533 = vmatprep.mubr.msk.f32.mxu1 %vm9428_vm1, %v9427_v1  ;;  %8526 = vmatpush3.msra.mxu1 %v5562_v43  ;;  %v7242_v43 = vld [vmem:[%s10545_s13 + $0x8] sm:$0xf] }
0x1f8c   :  { %8527 = vmatprep.subr.mxu1 %v9427_v1 }
0x1f8d   :  { %8528 = vmatpush3.msra.mxu1 %v5561_v55 }
0x1f8e   :  { %8529 = vmatprep.subr.mxu1 %v9427_v1 }
0x1f8f   :  { %8530 = vmatpush3.msra.mxu1 %v5560_v56  ;;  %v10383_v56 = vld [vmem:[#allocation32 + $0x3] sm:$0x1] }
0x1f90   :  { %8531 = vmatprep.subr.mxu1 %v9427_v1 }
0x1f91   :  { %8532 = vmatpush3.msra.mxu1 %v5559_v57 }
0x1f92   :  { %8547 = vmatprep.subr.mxu1 %v9427_v1 }
0x2042   :  { %v5287_v35 = vpop.f32.mrf.mxu1  ;;  %v5371_v36 = vpop.f32.mrf.mxu0 }
0x2043   :  { %v5288_v21 = vadd.f32 %v7218_v31, %v5287_v35  ;;  %v5372_v37 = vadd.f32 %v7221_v34, %v5371_v36  ;;  %v5827_v31 = vld [vmem:[#allocation34 + $0x4] sm:$0xf]  ;;  %v7232_v34 = vld [vmem:[%s9588_s14 + $0x2] ss:$0 sm:$0xff] }
0x2044   :  { %v8497_v30 = vpop.f32.mrf.mxu1  ;;  %v8508_v38 = vpop.f32.mrf.mxu0 }
0x2045   :  { %8780 = vtanh.f32 %v5288_v21  ;;  %5383 = vrot.lane.b32.xlu0 %v5372_v37, %s9423_s5 }
0x204a   :  { %v5464_v39 = vpop.f32.mrf.mxu1 }
0x204c   :  { %v8519_v13 = vpop.f32.mrf.mxu1 }
0x2052   :  { %v10318_v40 = vpop.eup %8780 }
0x2053   :  { %v5375_v25 = vmul.f32 1.442695, %v10318_v40 }
0x2055   :  { %8782 = vpow2.f32 %v5375_v25 }
0x2062   :  { %v8783_v45 = vpop.eup %8782 }
0x2063   :  { %5378 = vrot.lane.b32.xlu1 %v8783_v45, %s9423_s5 }
0x20b7   :  { %v5384_v49 = vpop.permute.xlu0 %5383 }
0x20d5   :  { %v5379_v46 = vpop.permute.xlu1 %5378 }
0x20d6   :  { %v5381_v48 = vmul.f32 %v5379_v46, %v10279_v54 }
0x20d8   :  { %v5386_v50 = vadd.f32 %v5384_v49, %v5381_v48 }
0x20da   :  { %5469 = vrot.lane.b32.xlu1 %v5386_v50, %s9433_s9  ;;  %v5825_v50 = vld [vmem:[#allocation34] sm:$0xf] }
0x214c   :  { %v10327_v52 = vpop.permute.xlu1 %5469 }
0x214d   :  { %8523 = vmatmul.mubr.msk.f32.vlgmr.msra.gmra.mxu0 %vm5032_vm8, %v10327_v52 }
0x214e   :  { %8544 = vmatprep.mubr.msk.f32.mxu0 %vm9428_vm1, %v9427_v1  ;;  %8537 = vmatpush3.msra.mxu0 %v5651_v58  ;;  %v7241_v58 = vld [vmem:[#allocation32 + $0x2] ss:$0 sm:$0xff] }
0x214f   :  { %8538 = vmatprep.subr.mxu0 %v9427_v1 }
0x2150   :  { %8539 = vmatpush3.msra.mxu0 %v5650_v5  ;;  %v6175_v5 = vld [vmem:[#allocation38 + $0x40] sm:$0xff] }
0x2151   :  { %8540 = vmatprep.subr.mxu0 %v9427_v1 }
0x2152   :  { %8541 = vmatpush3.msra.mxu0 %v5649_v7  ;;  %v7246_v7 = vld [vmem:[#allocation37 + $0x2] ss:$0 sm:$0xff] }
0x2153   :  { %8542 = vmatprep.subr.mxu0 %v9427_v1 }
0x2154   :  { %8543 = vmatpush3.msra.mxu0 %v5648_v9 }
0x2155   :  { %8558 = vmatprep.subr.mxu0 %v9427_v1 }
0x220d   :  { %v5542_v60 = vpop.f32.mrf.mxu0 }
0x220e   :  { %v5543_v63 = vadd.f32 %v5542_v60, %v5464_v39 }
0x220f   :  { %v8524_v59 = vpop.f32.mrf.mxu0 }
0x2210   :  { %v5554_v0 = vadd.f32 %v7227_v61, %v5543_v63  ;;  %v5992_v61 = vrot.slane %v10383_v56, %v9707_v10 }
0x2212   :  { %vm5555_vm11 = vcmp.ge.f32.partialorder %v5554_v0, 0.0  ;;  %v5556_v62 = vmul.f32 0.01, %v5554_v0 }
0x2214   :  { %v5557_v3 = vsel %vm5555_vm11, %v5554_v0, %v5556_v62 }
0x2215   :  { %8534 = vmatmul.mubr.msk.f32.vlgmr.msra.gmra.mxu1 %vm594_vm7, %v5557_v3  ;;  %v6177_v3 = vld [vmem:[#allocation38 + $0x50] sm:$0xff] }
0x2216   :  { %8548 = vmatpush3.msra.mxu1 %v5738_v2  ;;  %8555 = vmatprep.mubr.msk.f32.mxu1 %vm9428_vm1, %v9427_v1  ;;  %v6178_v2 = vld [vmem:[#allocation38 + $0x58] sm:$0xff] }
0x2217   :  { %8549 = vmatprep.subr.mxu1 %v9427_v1 }
0x2218   :  { %8550 = vmatpush3.msra.mxu1 %v5737_v4  ;;  %v6176_v4 = vld [vmem:[#allocation38 + $0x48] sm:$0xff] }
0x2219   :  { %8551 = vmatprep.subr.mxu1 %v9427_v1 }
0x221a   :  { %8552 = vmatpush3.msra.mxu1 %v5736_v6 }
0x221b   :  { %8553 = vmatprep.subr.mxu1 %v9427_v1 }
0x221c   :  { %8554 = vmatpush3.msra.mxu1 %v5735_v8 }
0x221d   :  { %8568 = vmatprep.subr.mxu1 %v9427_v1 }
0x22d5   :  { %v5640_v14 = vpop.f32.mrf.mxu1 }
0x22d6   :  { %v5641_v15 = vadd.f32 %v7229_v11, %v5640_v14 }
0x22d7   :  { %v8535_v17 = vpop.f32.mrf.mxu1 }
0x22d8   :  { %vm5644_vm12 = vcmp.ge.f32.partialorder %v5641_v15, 0.0  ;;  %v5645_v19 = vmul.f32 0.01, %v5641_v15 }
0x22da   :  { %v5646_v24 = vsel %vm5644_vm12, %v5641_v15, %v5645_v19  ;;  %v6354_v15 = vld [vmem:[#allocation40 + $0xb8] sm:$0xff]  ;;  %v6266_v19 = vld [vmem:[#allocation40 + $0x90] sm:$0xff] }
0x22db   :  { %8545 = vmatmul.mubr.msk.f32.vlgmr.msra.gmra.mxu0 %vm594_vm7, %v5646_v24  ;;  %8556 = vmatmul.mubr.msk.f32.vlgmr.msra.gmra.mxu1 %vm594_vm7, %v5646_v24  ;;  %v6265_v24 = vld [vmem:[#allocation40 + $0x88] sm:$0xff] }
0x22dc   :  { %8569 = vmatpush3.msra.mxu1 %v6015_v22  ;;  %8576 = vmatprep.mubr.msk.f32.mxu1 %vm9428_vm1, %v9427_v1  ;;  %v6353_v22 = vld [vmem:[#allocation40 + $0xb0] sm:$0xff] }
0x22dd   :  { %8570 = vmatprep.subr.mxu1 %v9427_v1  ;;  %8560 = vmatprep.mubr.msk.f32.mxu0 %vm9428_vm1, %v9427_v1 }
0x22de   :  { %8571 = vmatpush3.msra.mxu1 %v6014_v26  ;;  %8559 = vmatpush3.msk.msra.mxu0 %vm672_vm5, %v5827_v31  ;;  %v6352_v26 = vld [vmem:[#allocation40 + $0xa8] sm:$0xff] }
0x22df   :  { %8572 = vmatprep.subr.mxu1 %v9427_v1  ;;  %8563 = vmatprep.subr.mxu0 %v9427_v1  ;;  %v7248_v31 = vld [vmem:[%s10546_s12 + $0x2] ss:$0 sm:$0xff] }
0x22e0   :  { %8573 = vmatpush3.msra.mxu1 %v6013_v27  ;;  %v6264_v27 = vld [vmem:[#allocation40 + $0x80] sm:$0xff] }
0x22e1   :  { %8574 = vmatprep.subr.mxu1 %v9427_v1 }
0x22e2   :  { %8575 = vmatpush3.msra.mxu1 %v6012_v29  ;;  %v6351_v29 = vld [vmem:[#allocation40 + $0xa0] sm:$0xff] }
0x22e3   :  { %8577 = vmatmul.mubr.msk.f32.vlgmr.msra.gmra.mxu1 %vm594_vm7, %v9731_v33  ;;  %8595 = vmatprep.subr.mxu1 %v9427_v1 }
0x22e4   :  { %8603 = vmatprep.mubr.msk.f32.mxu1 %vm9428_vm1, %v9427_v1 }
0x239b   :  { %v5729_v35 = vpop.f32.mrf.mxu0  ;;  %v5813_v36 = vpop.f32.mrf.mxu1 }
0x239c   :  { %v5730_v21 = vadd.f32 %v7232_v34, %v5729_v35  ;;  %v5814_v46 = vadd.f32 %v7235_v44, %v5813_v36  ;;  %v7251_v44 = vld [vmem:[%s9588_s14 + $0x4] ss:$0 sm:$0xff] }
0x239d   :  { %v8546_v37 = vpop.f32.mrf.mxu0  ;;  %v8557_v30 = vpop.f32.mrf.mxu1 }
0x239e   :  { %8784 = vtanh.f32 %v5730_v21  ;;  %v6455_v37 = vld [vmem:[#allocation35 + $0x78] sm:$0xff] }
0x23a3   :  { %v6082_v38 = vpop.f32.mrf.mxu1 }
0x23a5   :  { %v8578_v39 = vpop.f32.mrf.mxu1 }
0x23a6   :  { %v6453_v39 = vld [vmem:[#allocation35 + $0x68] sm:$0xff] }
0x23ab   :  { %v10366_v13 = vpop.eup %8784 }
0x23ac   :  { %v5817_v25 = vmul.f32 1.442695, %v10366_v13 }
0x23ae   :  { %8786 = vpow2.f32 %v5817_v25  ;;  %v6452_v25 = vld [vmem:[#allocation35 + $0x60] sm:$0xff] }
0x23bb   :  { %v8787_v45 = vpop.eup %8786 }
0x23bc   :  { %v5819_v48 = vmul.f32 %v8787_v45, %v10279_v54  ;;  %v7254_v45 = vld [vmem:[%s9588_s14 + $0x5] ss:$0 sm:$0xff] }
0x23be   :  { %v5820_v49 = vadd.f32 %v5819_v48, %v5814_v46 }
0x23c0   :  { %8561 = vmatmul.mubr.msk.f32.vlgmr.msra.gmra.mxu0 %vm5032_vm8, %v5820_v49 }
0x23c1   :  { %8564 = vmatpush3.msk.msra.mxu0 %vm672_vm5, %v5825_v50  ;;  %8565 = vmatprep.mubr.msk.f32.mxu0 %vm9428_vm1, %v9427_v1 }
0x23c2   :  { %8579 = vmatprep.subr.mxu0 %v9427_v1 }
0x23c4   :  { %8566 = vmatmul.mubr.msk.f32.vlgmr.msra.gmra.mxu0 %vm5032_vm8, %v10327_v52 }
0x23c5   :  { %8581 = vmatprep.mubr.msk.f32.mxu0 %vm9428_vm1, %v9427_v1  ;;  %8580 = vmatpush3.msk.msra.mxu0 %vm672_vm5, %v7242_v43 }
0x23c6   :  { %8584 = vmatprep.subr.mxu0 %v9427_v1 }
0x2480   :  { %v5900_v54 = vpop.f32.mrf.mxu0 }
0x2482   :  { %v8562_v55 = vpop.f32.mrf.mxu0 }
0x2484   :  { %v5973_v57 = vpop.f32.mrf.mxu0 }
0x2485   :  { %v5974_v60 = vadd.f32 %v5973_v57, %v5900_v54 }
0x2486   :  { %v8567_v63 = vpop.f32.mrf.mxu0 }
0x2487   :  { %v5987_v52 = vadd.f32 %v7241_v58, %v5974_v60 }
0x2489   :  { %v5994_v59 = vmul.f32 %v5992_v61, %v5987_v52  ;;  %v8809_v61 = vld [vmem:[#allocation7 + $0x3] sm:$0x1] }
0x248a   :  { %v1684_v63 = vand.u32 2147483647, %v8809_v61  ;;  %v6795_v61 = vld [vmem:[#allocation40 + $0xf0] sm:$0xff] }
0x248b   :  { %vm6006_vm13 = vcmp.ge.f32.partialorder %v5994_v59, 0.0 }
0x248c   :  { %v6007_v0 = vsel %vm6006_vm13, 1.0, %v9429_v18  ;;  %v6267_v18 = vld [vmem:[#allocation40 + $0x98] sm:$0xff] }
0x248d   :  { %v10388_v62 = vmul.f32 %v6007_v0, %v5994_v59  ;;  %8596 = vmatpush3.msra.mxu1 %v6267_v18  ;;  %v8810_v59 = vld [vmem:[#allocation20 + $0x3] sm:$0x1] }
0x248e   :  { %8597 = vmatprep.subr.mxu1 %v9427_v1  ;;  %v3866_v0 = vand.u32 2147483647, %v8810_v59  ;;  %v6793_v59 = vld [vmem:[#allocation40 + $0xe0] sm:$0xff] }
0x248f   :  { %8582 = vmatmul.mubr.msk.f32.vlgmr.msra.gmra.mxu0 %vm5032_vm8, %v10388_v62  ;;  %8598 = vmatpush3.msra.mxu1 %v6266_v19  ;;  %v4768_v19 = vsel %vm2890_vm4, %v10247_v20, 0.0 }
0x2490   :  { %8592 = vmatprep.mubr.msk.f32.mxu0 %vm9428_vm1, %v9427_v1  ;;  %8585 = vmatpush3.msra.mxu0 %v6178_v2 }
0x2491   :  { %8586 = vmatprep.subr.mxu0 %v9427_v1  ;;  %8599 = vmatprep.subr.mxu1 %v9427_v1 }
0x2492   :  { %8587 = vmatpush3.msra.mxu0 %v6177_v3  ;;  %8600 = vmatpush3.msra.mxu1 %v6265_v24 }
0x2493   :  { %8588 = vmatprep.subr.mxu0 %v9427_v1  ;;  %8601 = vmatprep.subr.mxu1 %v9427_v1 }
0x2494   :  { %8589 = vmatpush3.msra.mxu0 %v6176_v4  ;;  %8602 = vmatpush3.msra.mxu1 %v6264_v27 }
0x2495   :  { %8590 = vmatprep.subr.mxu0 %v9427_v1  ;;  %8617 = vmatprep.subr.mxu1 %v9427_v1 }
0x2496   :  { %8591 = vmatpush3.msra.mxu0 %v6175_v5 }
0x2497   :  { %8606 = vmatprep.subr.mxu0 %v9427_v1 }
0x254f   :  { %v6158_v6 = vpop.f32.mrf.mxu0 }
0x2550   :  { %v6159_v8 = vadd.f32 %v6158_v6, %v6082_v38  ;;  %v6454_v38 = vld [vmem:[#allocation35 + $0x70] sm:$0xff] }
0x2551   :  { %v8583_v9 = vpop.f32.mrf.mxu0 }
0x2552   :  { %v6170_v11 = vadd.f32 %v7246_v7, %v6159_v8  ;;  %v2618_v9 = vsel %vm668_vm6, %v10002_v28, 0.0  ;;  %v5387_v28 = vsel %vm5032_vm8, %v10318_v40, 0.0 }
0x2554   :  { %vm6171_vm14 = vcmp.ge.f32.partialorder %v6170_v11, 0.0  ;;  %v6172_v14 = vmul.f32 0.01, %v6170_v11 }
0x2556   :  { %v6173_v17 = vsel %vm6171_vm14, %v6170_v11, %v6172_v14  ;;  %v3255_v14 = vsel %vm2890_vm4, %v10079_v53, 0.0 }
0x2557   :  { %8593 = vmatmul.mubr.msk.f32.vlgmr.msra.gmra.mxu0 %vm594_vm7, %v6173_v17  ;;  %v4942_v17 = vand.u32 2147483647, %v10274_v47 }
0x2558   :  { %8607 = vmatpush3.msra.mxu0 %v6354_v15  ;;  %8614 = vmatprep.mubr.msk.f32.mxu0 %vm9428_vm1, %v9427_v1 }
0x2559   :  { %8608 = vmatprep.subr.mxu0 %v9427_v1 }
0x255a   :  { %8609 = vmatpush3.msra.mxu0 %v6353_v22  ;;  %v5995_v22 = vand.u32 2147483647, %v10383_v56  ;;  %v8811_v56 = vld [vmem:[#allocation20 + $0x1] sm:$0x1] }
0x255b   :  { %8610 = vmatprep.subr.mxu0 %v9427_v1 }
0x255c   :  { %8611 = vmatpush3.msra.mxu0 %v6352_v26 }
0x255d   :  { %8612 = vmatprep.subr.mxu0 %v9427_v1 }
0x255e   :  { %8613 = vmatpush3.msra.mxu0 %v6351_v29 }
0x255f   :  { %8628 = vmatprep.subr.mxu0 %v9427_v1 }
0x2617   :  { %v6256_v34 = vpop.f32.mrf.mxu0 }
0x2618   :  { %v6257_v35 = vadd.f32 %v7248_v31, %v6256_v34  ;;  %v7256_v31 = vld [vmem:[%s10545_s13 + $0xc] sm:$0xf] }
0x2619   :  { %v8594_v36 = vpop.f32.mrf.mxu0 }
0x261a   :  { %vm6260_vm15 = vcmp.ge.f32.partialorder %v6257_v35, 0.0  ;;  %v6261_v21 = vmul.f32 0.01, %v6257_v35  ;;  %v2800_v36 = vand.u32 2147483647, %v8811_v56 }
0x261c   :  { %v6262_v30 = vsel %vm6260_vm15, %v6257_v35, %v6261_v21  ;;  %v1049_v21 = vsel %vm668_vm6, %v9785_v32, 0.0  ;;  %v4325_v32 = vsel %vm2890_vm4, %v10198_v16, 0.0  ;;  %v6619_v16 = vld [vmem:[#allocation38 + $0x70] sm:$0xff] }
0x261d   :  { %8604 = vmatmul.mubr.msk.f32.vlgmr.msra.gmra.mxu1 %vm594_vm7, %v6262_v30  ;;  %8615 = vmatmul.mubr.msk.f32.vlgmr.msra.gmra.mxu0 %vm594_vm7, %v6262_v30  ;;  %v1508_v30 = vsel %vm668_vm6, %v9849_v42, 0.0  ;;  %v5821_v42 = vsel %vm5032_vm8, %v10366_v13, 0.0  ;;  %v6618_v13 = vld [vmem:[#allocation38 + $0x68] sm:$0xff] }
0x261e   :  { %8618 = vmatpush3.msra.mxu1 %v6455_v37  ;;  %8625 = vmatprep.mubr.msk.f32.mxu1 %vm9428_vm1, %v9427_v1 }
0x261f   :  { %8619 = vmatprep.subr.mxu1 %v9427_v1  ;;  %8630 = vmatprep.mubr.msk.f32.mxu0 %vm9428_vm1, %v9427_v1 }
0x2620   :  { %8620 = vmatpush3.msra.mxu1 %v6454_v38  ;;  %8629 = vmatpush3.msk.msra.mxu0 %vm672_vm5, %v7256_v31 }
0x2621   :  { %8621 = vmatprep.subr.mxu1 %v9427_v1  ;;  %8644 = vmatprep.subr.mxu0 %v9427_v1 }
0x2622   :  { %8622 = vmatpush3.msra.mxu1 %v6453_v39  ;;  %v2159_v39 = vsel %vm668_vm6, %v9937_v12, 0.0 }
0x2623   :  { %8623 = vmatprep.subr.mxu1 %v9427_v1 }
0x2624   :  { %8624 = vmatpush3.msra.mxu1 %v6452_v25 }
0x2625   :  { %8626 = vmatmul.mubr.msk.f32.vlgmr.msra.gmra.mxu1 %vm594_vm7, %v9731_v33  ;;  %8633 = vmatprep.subr.mxu1 %v9427_v1  ;;  %v8808_v33 = vld [vmem:[#allocation7 + $0x1] sm:$0x1] }
0x2626   :  { %8641 = vmatprep.mubr.msk.f32.mxu1 %vm9428_vm1, %v9427_v1  ;;  %v573_v58 = vand.u32 2147483647, %v8808_v33  ;;  %v6796_v33 = vld [vmem:[#allocation40 + $0xf8] sm:$0xff] }
0x26dd   :  { %v6345_v46 = vpop.f32.mrf.mxu1  ;;  %v6429_v48 = vpop.f32.mrf.mxu0 }
0x26de   :  { %v6346_v49 = vadd.f32 %v7251_v44, %v6345_v46  ;;  %v6430_v50 = vadd.f32 %v7254_v45, %v6429_v48  ;;  %v3698_v44 = vsel %vm2890_vm4, %v10127_v23, 0.0  ;;  %v6620_v23 = vld [vmem:[#allocation38 + $0x78] sm:$0xff]  ;;  %v6617_v46 = vld [vmem:[#allocation38 + $0x60] sm:$0xff] }
0x26df   :  { %v8605_v43 = vpop.f32.mrf.mxu1  ;;  %v8616_v54 = vpop.f32.mrf.mxu0  ;;  %8634 = vmatpush3.msra.mxu1 %v6620_v23 }
0x26e0   :  { %8788 = vtanh.f32 %v6346_v49  ;;  %6441 = vrot.lane.b32.xlu1 %v6430_v50, %s9423_s5  ;;  %8635 = vmatprep.subr.mxu1 %v9427_v1  ;;  %v7260_v49 = vld [vmem:[#allocation37 + $0x3] ss:$0 sm:$0xff] }
0x26e1   :  { %8790 = vlog2.f32 %v573_v58  ;;  %8636 = vmatpush3.msra.mxu1 %v6619_v16 }
0x26e2   :  { %8637 = vmatprep.subr.mxu1 %v9427_v1 }
0x26e3   :  { %8638 = vmatpush3.msra.mxu1 %v6618_v13 }
0x26e4   :  { %8639 = vmatprep.subr.mxu1 %v9427_v1 }
0x26e5   :  { %v10427_v55 = vpop.f32.mrf.mxu1  ;;  %8640 = vmatpush3.msra.mxu1 %v6617_v46 }
0x26e6   :  { %8655 = vmatprep.subr.mxu1 %v9427_v1 }
0x26e7   :  { %v8627_v57 = vpop.f32.mrf.mxu1 }
0x26ed   :  { %v10429_v60 = vpop.eup %8788 }
0x26ee   :  { %v6433_v52 = vmul.f32 1.442695, %v10429_v60  ;;  %v8791_v2 = vpop.eup %8790  ;;  %v6445_v12 = vsel %vm5032_vm8, %v10429_v60, 0.0  ;;  %v6708_v60 = vld [vmem:[#allocation40 + $0xd0] sm:$0xff] }
0x26ef   :  { %v575_v4 = vmul.f32 0.6931472, %v8791_v2 }
0x26f0   :  { %8792 = vpow2.f32 %v6433_v52  ;;  %v6706_v52 = vld [vmem:[#allocation40 + $0xc0] sm:$0xff] }
0x26f1   :  { %8794 = vlog2.f32 %v1684_v63  ;;  %v577_v18 = vsel %vm576_vm0, %v575_v4, 0.0  ;;  %v6794_v63 = vld [vmem:[#allocation40 + $0xe8] sm:$0xff] }
0x26f2   :  { %8796 = vlog2.f32 %v3866_v0  ;;  %v7262_v0 = vld [vmem:[%s10546_s12 + $0x3] ss:$0 sm:$0xff] }
0x26f3   :  { %8798 = vlog2.f32 %v4942_v17 }
0x26f4   :  { %8800 = vlog2.f32 %v5995_v22  ;;  %v7268_v22 = vld [vmem:[%s9588_s14 + $0x7] ss:$0 sm:$0xff] }
0x26f5   :  { %8802 = vlog2.f32 %v2800_v36 }
0x26fd   :  { %v8793_v3 = vpop.eup %8792 }
0x26fe   :  { %v8795_v5 = vpop.eup %8794  ;;  %6436 = vrot.lane.b32.xlu0 %v8793_v3, %s9423_s5 }
0x26ff   :  { %v1686_v6 = vmul.f32 0.6931472, %v8795_v5  ;;  %v8797_v8 = vpop.eup %8796 }
0x2700   :  { %v3868_v11 = vmul.f32 0.6931472, %v8797_v8  ;;  %v8799_v53 = vpop.eup %8798 }
0x2701   :  { %v1687_v7 = vsel %vm576_vm0, %v1686_v6, 0.0  ;;  %v4944_v24 = vmul.f32 0.6931472, %v8799_v53  ;;  %v8801_v27 = vpop.eup %8800  ;;  %v6886_v6 = vld [vmem:[#allocation34 + $0xc] sm:$0xf] }
0x2702   :  { %v3869_v15 = vsel %vm2803_vm2, %v3868_v11, 0.0  ;;  %v5997_v47 = vmul.f32 0.6931472, %v8801_v27  ;;  %v8803_v37 = vpop.eup %8802 }
0x2703   :  { %v4946_v26 = vsel %vm4945_vm3, %v4944_v24, 0.0  ;;  %v2802_v38 = vmul.f32 0.6931472, %v8803_v37 }
0x2704   :  { %578 = vadd.xlane.f32.xlu1 %v577_v18  ;;  %v5998_v29 = vsel %vm4945_vm3, %v5997_v47, 0.0  ;;  %v6884_v47 = vld [vmem:[#allocation34 + $0x8] sm:$0xf] }
0x2705   :  { %v2804_v25 = vsel %vm2803_vm2, %v2802_v38, 0.0 }
0x2708   :  { %1688 = vadd.xlane.f32.xlu1 %v1687_v7  ;;  %v7265_v7 = vld [vmem:[%s9588_s14 + $0x6] ss:$0 sm:$0xff]  ;;  %s9434_s14 = smov [#allocation41]  }
0x270c   :  { %2619 = vadd.xlane.f32.xlu1 %v2618_v9 }
0x2710   :  { %3256 = vadd.xlane.f32.xlu1 %v3255_v14 }
0x2714   :  { %3870 = vadd.xlane.f32.xlu1 %v3869_v15 }
0x2718   :  { %4769 = vadd.xlane.f32.xlu1 %v4768_v19 }
0x271c   :  { %5388 = vadd.xlane.f32.xlu1 %v5387_v28 }
0x2720   :  { %5999 = vadd.xlane.f32.xlu1 %v5998_v29 }
0x2752   :  { %v6442_v34 = vpop.permute.xlu1 %6441 }
0x2770   :  { %v6437_v20 = vpop.permute.xlu0 %6436 }
0x2771   :  { %v6439_v40 = vmul.f32 %v6437_v20, %v10388_v62 }
0x2773   :  { %v6444_v35 = vadd.f32 %v6442_v34, %v6439_v40 }
0x2775   :  { %6527 = vrot.lane.b32.xlu0 %v6444_v35, %s9433_s9 }
0x278d   :  { %v579_v31 = vpop.xlane.xlu1 %578 }
0x278e   :  { %v583_v20 = vrot.slane %v579_v31, %v9707_v10 }
0x2791   :  { %v1689_v35 = vpop.xlane.xlu1 %1688 }
0x2794   :  { %1050 = vadd.xlane.f32.xlu0 %v1049_v21 }
0x2795   :  { %v2620_v38 = vpop.xlane.xlu1 %2619 }
0x2798   :  { %1509 = vadd.xlane.f32.xlu0 %v1508_v30 }
0x279c   :  { %2160 = vadd.xlane.f32.xlu0 %v2159_v39 }
0x27a0   :  { %2805 = vadd.xlane.f32.xlu0 %v2804_v25 }
0x27a4   :  { %3699 = vadd.xlane.f32.xlu0 %v3698_v44  ;;  %v3257_v44 = vpop.xlane.xlu1 %3256 }
0x27a8   :  { %4326 = vadd.xlane.f32.xlu0 %v4325_v32 }
0x27ac   :  { %4947 = vadd.xlane.f32.xlu0 %v4946_v26 }
0x27b0   :  { %5822 = vadd.xlane.f32.xlu0 %v5821_v42 }
0x27b4   :  { %6446 = vadd.xlane.f32.xlu0 %v6445_v12  ;;  %v3871_v12 = vpop.xlane.xlu1 %3870 }
0x27ca   :  { %7037 = vrot.lane.b32.xlu0 %v10270_v41, %s9397_s28  ;;  %v6709_v41 = vld [vmem:[#allocation40 + $0xd8] sm:$0xff]  ;;  %s7057_s28 = sshll.u32 %s9434_s14, 4  ;;  %s7058_s28 = int_to_ptr.vmem [resolvable:$true] %s7057_s28 }
0x27cb   :  { %p9321_p0 = scmp.lt.s32.totalorder %s7058_s28, %s7058_s28 }
0x27e7   :  { %v10466_v45 = vpop.permute.xlu0 %6527 }
0x27e8   :  { %8631 = vmatmul.mubr.msk.f32.vlgmr.msra.gmra.mxu0 %vm5032_vm8, %v10466_v45 }
0x27e9   :  { %8652 = vmatprep.mubr.msk.f32.mxu0 %vm9428_vm1, %v9427_v1  ;;  %8645 = vmatpush3.msra.mxu0 %v6709_v41 }
0x27ea   :  { %8646 = vmatprep.subr.mxu0 %v9427_v1 }
0x27eb   :  { %8647 = vmatpush3.msra.mxu0 %v6708_v60 }
0x27ec   :  { %8648 = vmatprep.subr.mxu0 %v9427_v1 }
0x281d   :  { %v1051_v29 = vpop.xlane.xlu0 %1050 }
0x281e   :  { %v1052_v34 = vadd.f32 %v1051_v29, %v583_v20 }
0x2821   :  { %v1510_v40 = vpop.xlane.xlu0 %1509 }
0x2822   :  { %v1511_v56 = vadd.f32 %v1510_v40, %v1052_v34 }
0x2825   :  { %v2161_v36 = vpop.xlane.xlu0 %2160 }
0x2829   :  { %v2806_v37 = vpop.xlane.xlu0 %2805 }
0x282d   :  { %v3700_v42 = vpop.xlane.xlu0 %3699 }
0x2831   :  { %v4327_v16 = vpop.xlane.xlu0 %4326 }
0x2835   :  { %v4948_v41 = vpop.xlane.xlu0 %4947 }
0x28a8   :  { %v6600_v48 = vpop.f32.mrf.mxu0 }
0x28a9   :  { %v6601_v50 = vadd.f32 %v6600_v48, %v10427_v55  ;;  %v6707_v55 = vld [vmem:[#allocation40 + $0xc8] sm:$0xff]  ;;  %v4770_v48 = vpop.xlane.xlu1 %4769 }
0x28aa   :  { %v8632_v43 = vpop.f32.mrf.mxu0  ;;  %8649 = vmatpush3.msra.mxu0 %v6707_v55 }
0x28ab   :  { %v6612_v54 = vadd.f32 %v7260_v49, %v6601_v50  ;;  %8650 = vmatprep.subr.mxu0 %v9427_v1  ;;  %v4952_v50 = vrot.slane %v4948_v41, %v9707_v10 }
0x28ac   :  { %8651 = vmatpush3.msra.mxu0 %v6706_v52 }
0x28ad   :  { %vm6613_vm6 = vcmp.ge.f32.partialorder %v6612_v54, 0.0  ;;  %v6614_v57 = vmul.f32 0.01, %v6612_v54  ;;  %8666 = vmatprep.subr.mxu0 %v9427_v1 }
0x28af   :  { %v6615_v58 = vsel %vm6613_vm6, %v6612_v54, %v6614_v57  ;;  %v5389_v54 = vpop.xlane.xlu1 %5388 }
0x28b0   :  { %8642 = vmatmul.mubr.msk.f32.vlgmr.msra.gmra.mxu1 %vm594_vm7, %v6615_v58  ;;  %v5823_v58 = vpop.xlane.xlu0 %5822 }
0x28b1   :  { %8656 = vmatpush3.msra.mxu1 %v6796_v33  ;;  %8663 = vmatprep.mubr.msk.f32.mxu1 %vm9428_vm1, %v9427_v1 }
0x28b2   :  { %8657 = vmatprep.subr.mxu1 %v9427_v1 }
0x28b3   :  { %8658 = vmatpush3.msra.mxu1 %v6795_v61  ;;  %v6000_v33 = vpop.xlane.xlu1 %5999 }
0x28b4   :  { %8659 = vmatprep.subr.mxu1 %v9427_v1  ;;  %v6004_v61 = vrot.slane %v6000_v33, %v9707_v10 }
0x28b5   :  { %8660 = vmatpush3.msra.mxu1 %v6794_v63  ;;  %v6447_v63 = vpop.xlane.xlu0 %6446 }
0x28b6   :  { %8661 = vmatprep.subr.mxu1 %v9427_v1 }
0x28b7   :  { %8662 = vmatpush3.msra.mxu1 %v6793_v59 }
0x2970   :  { %v6698_v2 = vpop.f32.mrf.mxu1 }
0x2971   :  { %v6699_v3 = vadd.f32 %v7262_v0, %v6698_v2 }
0x2972   :  { %v8643_v4 = vpop.f32.mrf.mxu1 }
0x2973   :  { %vm6702_vm9 = vcmp.ge.f32.partialorder %v6699_v3, 0.0  ;;  %v6703_v5 = vmul.f32 0.01, %v6699_v3 }
0x2975   :  { %v6704_v18 = vsel %vm6702_vm9, %v6699_v3, %v6703_v5 }
0x2976   :  { %8653 = vmatmul.mubr.msk.f32.vlgmr.msra.gmra.mxu0 %vm594_vm7, %v6704_v18  ;;  %8664 = vmatmul.mubr.msk.f32.vlgmr.msra.gmra.mxu1 %vm594_vm7, %v6704_v18  ;;  %vm7047_vm7 = vcmask 195584  }
0x2977   :  { %8668 = vmatprep.mubr.msk.f32.mxu0 %vm9428_vm1, %v9427_v1  ;;  %8667 = vmatpush3.msk.msra.mxu0 %vm672_vm5, %v6886_v6  ;;  %v7038_v6 = vpop.permute.xlu0 %7037 }
0x2978   :  { %8671 = vmatprep.subr.mxu0 %v9427_v1 }
0x2a36   :  { %v6787_v8 = vpop.f32.mrf.mxu0  ;;  %v6871_v9 = vpop.f32.mrf.mxu1 }
0x2a37   :  { %v6788_v11 = vadd.f32 %v7265_v7, %v6787_v8  ;;  %v6872_v24 = vadd.f32 %v7268_v22, %v6871_v9 }
0x2a38   :  { %v8654_v14 = vpop.f32.mrf.mxu0  ;;  %v8665_v15 = vpop.f32.mrf.mxu1 }
0x2a39   :  { %8804 = vtanh.f32 %v6788_v11 }
0x2a46   :  { %v8805_v17 = vpop.eup %8804 }
0x2a47   :  { %v6875_v19 = vmul.f32 1.442695, %v8805_v17  ;;  %v6879_v28 = vsel %vm5032_vm8, %v8805_v17, 0.0 }
0x2a48   :  { %6880 = vadd.xlane.f32.xlu1 %v6879_v28 }
0x2a49   :  { %8806 = vpow2.f32 %v6875_v19 }
0x2a56   :  { %v8807_v53 = vpop.eup %8806 }
0x2a57   :  { %v6877_v26 = vmul.f32 %v8807_v53, %v10388_v62  ;;  %v1693_v62 = vrot.slane %v1689_v35, %v9707_v10 }
0x2a59   :  { %v6878_v27 = vadd.f32 %v6877_v26, %v6872_v24  ;;  %v1694_v21 = vadd.f32 %v1693_v62, %v1511_v56 }
0x2a5b   :  { %8669 = vmatmul.mubr.msk.f32.vlgmr.msra.gmra.mxu0 %vm5032_vm8, %v6878_v27  ;;  %v2162_v30 = vadd.f32 %v2161_v36, %v1694_v21 }
0x2a5c   :  { %8672 = vmatpush3.msk.msra.mxu0 %vm672_vm5, %v6884_v47  ;;  %8673 = vmatprep.mubr.msk.f32.mxu0 %vm9428_vm1, %v9427_v1  ;;  %v2810_v1 = vrot.slane %v2806_v37, %v9707_v10  ;;  %vm7049_vm1 = vcmask 7168   ;;  %vm7045_vm5 = vcmask 130048  }
0x2a5d   :  { %v2621_v39 = vadd.f32 %v2620_v38, %v2162_v30 }
0x2a5f   :  { %8674 = vmatmul.mubr.msk.f32.vlgmr.msra.gmra.mxu0 %vm5032_vm8, %v10466_v45  ;;  %v2811_v25 = vadd.f32 %v2810_v1, %v2621_v39  ;;  %v3875_v45 = vrot.slane %v3871_v12, %v9707_v10  ;;  %v7044_v10 = vsel %vm2890_vm4, %v10027_v51, %v7038_v6 }
0x2a61   :  { %v3258_v32 = vadd.f32 %v3257_v44, %v2811_v25 }
0x2a63   :  { %v3701_v23 = vadd.f32 %v3700_v42, %v3258_v32 }
0x2a65   :  { %v3876_v13 = vadd.f32 %v3875_v45, %v3701_v23 }
0x2a67   :  { %v4328_v46 = vadd.f32 %v4327_v16, %v3876_v13 }
0x2a69   :  { %v4771_v49 = vadd.f32 %v4770_v48, %v4328_v46 }
0x2a6b   :  { %v4953_v43 = vadd.f32 %v4952_v50, %v4771_v49 }
0x2a6d   :  { %v5390_v57 = vadd.f32 %v5389_v54, %v4953_v43 }
0x2a6f   :  { %v5824_v60 = vadd.f32 %v5823_v58, %v5390_v57 }
0x2a71   :  { %v6005_v55 = vadd.f32 %v6004_v61, %v5824_v60 }
0x2a73   :  { %v6448_v52 = vadd.f32 %v6447_v63, %v6005_v55 }
0x2ad1   :  { %v6881_v59 = vpop.xlane.xlu1 %6880 }
0x2ad2   :  { %v6882_v0 = vadd.f32 %v6881_v59, %v6448_v52 }
0x2ad4   :  { %7050 = vst.msk [vmem:[%s9598_s24] sm:$0xff] %vm7049_vm1, %v6882_v0  ;;  %s9316_s24 = scalar_lea.vmem %s7058_s28, 128 }
0x2ad5   :  { %p9317_p13 = scmp.ne.s32.totalorder %s7058_s28, %s9316_s24  ;;  %p9322_p1 = scmp.lt.s32.totalorder %s9316_s24, %s9316_s24 }
0x2ad7   :  { %p9323_p2 = por %p9322_p1, %p9321_p0 }
0x2ad9   :  { %p9324_p3 = pnand %p9323_p2, %p9317_p13 }
0x2b1b   :  { %v6959_v2 = vpop.f32.mrf.mxu0 }
0x2b1d   :  { %v8670_v3 = vpop.f32.mrf.mxu0 }
0x2b1f   :  { %v7032_v4 = vpop.f32.mrf.mxu0 }
0x2b20   :  { %v7033_v5 = vadd.f32 %v7032_v4, %v6959_v2 }
0x2b21   :  { %v8675_v18 = vpop.f32.mrf.mxu0 }
0x2b22   :  { %7041 = vrot.lane.b32.xlu1 %v7033_v5, %s9404_s8 }
0x2b94   :  { %v7042_v7 = vpop.permute.xlu1 %7041 }
0x2b95   :  { %v7046_v8 = vsel %vm7045_vm5, %v7044_v10, %v7042_v7 }
0x2b96   :  { %7048 = vst.msk [vmem:[#allocation41] sm:$0xff] %vm7047_vm7, %v7046_v8 }
0x2b97   :  { %9327 = shalt.err (!%p9324_p3)
}
0x2b98   :  { %7060 = dma.vmem_to_hbm [thread:$0]  %s7058_s28, 128, %s9593_s25, [#allocation4]  }
0x2b99   :  { %9362 = dma.done.wait [#allocation4], 128  }
0x2b9a   :  { %9363 = vsyncadd [#allocation4], 4294967168 }
0x2b9b   :  { %7068 = vsyncpa [#allocation3], 1 }
0x2b9c   :  { %7069 = vsyncpa [#allocation6], 1 }
0x2b9d   :  { %7070 = vsyncpa [#allocation9], 1 }
0x2b9e   :  { %7071 = vsyncpa [#allocation12], 1 }
0x2b9f   :  { %7072 = vsyncpa [#allocation15], 1 }
0x2ba0   :  { %7073 = vsyncpa [#allocation18], 1 }
0x2ba1   :  { %7074 = vsyncpa [#allocation21], 1 }
0x2ba2   :  { %7075 = vsyncpa [#allocation24], 1 }
0x2ba3   :  { %7076 = vsyncpa [#allocation27], 1 }
0x2ba4   :  { %7077 = vsyncpa [#allocation30], 1 }
0x2ba5   :  { %7078 = vsyncpa [#allocation33], 1 }
0x2ba6   :  { %7079 = vsyncpa [#allocation36], 1 }
0x2ba7   :  { %7080 = vsyncpa [#allocation39], 1 }
0x2ba8   :  { %7081 = vsyncpa [#allocation4], 1 }

</bundles_post_ra>
